<compile_context>
chip_gen: v7x
topology: tpu7x:2x2x1
jax: 0.10.0
libtpu: 0.0.40
codegen_flags: <defaults>
</compile_context>

<pallas_src>
import functools

import numpy as np

import jax
import jax.numpy as jnp
from jax.experimental import pallas as pl
from jax.experimental.pallas import tpu as pltpu


# ---------------------------------------------------------------------------
# The fused kernel: one image per grid step, everything in VMEM.
# ---------------------------------------------------------------------------
def _cifar_fused_kernel(x_ref, s1_ref, m1e_ref, m1o_ref, b1_ref,
                        s2_ref, m2e_ref, m2o_ref, b2_ref,
                        wf1k_ref, bf1_ref, wf2_ref, bf2_ref, wf3_ref, bf3_ref,
                        out_ref):
    f32 = jnp.float32
    dot = functools.partial(jnp.dot, preferred_element_type=f32)

    x = x_ref[...]                                    # (32, 96) = (H, W*Cin)

    # ---- conv1 (5x5, 3->6) fused with 2x2 maxpool --------------------------
    # acc1[rp][cp] = conv pre-activation at rows 2h+rp, cols 2w+cp.
    acc1 = [[jnp.zeros((14, 84), f32) for _ in range(2)] for _ in range(2)]
    for di in range(5):                               # vertical taps
        for rp in range(2):                           # pool-window row parity
            xs = dot(s1_ref[rp * 5 + di], x)          # (14,32)@(32,96) -> (14,96)
            acc1[rp][0] += dot(xs, m1e_ref[di])       # even pool cols  (14,84)
            acc1[rp][1] += dot(xs, m1o_ref[di])       # odd  pool cols  (14,84)
    pre1 = jnp.maximum(jnp.maximum(acc1[0][0], acc1[0][1]),
                       jnp.maximum(acc1[1][0], acc1[1][1]))
    a1 = jnp.maximum(pre1 + b1_ref[...], 0.0)         # (14, 84) = (H2, W2*6)

    # ---- conv2 (5x5, 6->16) fused with 2x2 maxpool --------------------------
    acc2 = [[jnp.zeros((5, 80), f32) for _ in range(2)] for _ in range(2)]
    for di in range(5):
        for rp in range(2):
            ys = dot(s2_ref[rp * 5 + di], a1)         # (5,14)@(14,84) -> (5,84)
            acc2[rp][0] += dot(ys, m2e_ref[di])       # (5, 80)
            acc2[rp][1] += dot(ys, m2o_ref[di])
    pre2 = jnp.maximum(jnp.maximum(acc2[0][0], acc2[0][1]),
                       jnp.maximum(acc2[1][0], acc2[1][1]))
    a2 = jnp.maximum(pre2 + b2_ref[...], 0.0)         # (5, 80) = (H3, W3*16)

    # ---- fc1 (400 -> 120): PyTorch NCHW flatten order folded into wf1k -----
    h1 = bf1_ref[...]                                 # (1, 120)
    for h in range(5):
        h1 = h1 + dot(a2[h:h + 1, :], wf1k_ref[h])    # (1,80)@(80,120)
    h1 = jnp.maximum(h1, 0.0)

    # ---- fc2 (120 -> 84) + relu, fc3 (84 -> classes) ------------------------
    h2 = jnp.maximum(dot(h1, wf2_ref[...]) + bf2_ref[...], 0.0)
    out = dot(h2, wf3_ref[...]) + bf3_ref[...]        # (1, classes)
    out_ref[...] = out.astype(out_ref.dtype)


_WEIGHT_KEYS = ("s1", "m1e", "m1o", "b1t", "s2", "m2e", "m2o", "b2t",
                "wf1k", "bf1", "wf2", "bf2", "wf3", "bf3")


def _full_spec(arr):
    zeros = (0,) * arr.ndim
    return pl.BlockSpec(arr.shape, lambda b: zeros)   # whole array, resident in VMEM


def cifar_forward_fused(prep, x):
    """x: (B, 3, 32, 32) NCHW float32 -> logits (B, classes)."""
    B = x.shape[0]
    classes = prep["bf3"].shape[-1]
    # Single boundary layout conversion: NCHW -> (B, H, W*Cin).
    x2 = jnp.transpose(x, (0, 2, 3, 1)).reshape(B, 32, 32 * 3).astype(jnp.float32)
    weights = [prep[k] for k in _WEIGHT_KEYS]

    out = pl.pallas_call(
        _cifar_fused_kernel,
        out_shape=jax.ShapeDtypeStruct((B, 1, classes), jnp.float32),
        grid=(B,),
        in_specs=[pl.BlockSpec((None, 32, 96), lambda b: (b, 0, 0))]
        + [_full_spec(w) for w in weights],
        out_specs=pl.BlockSpec((None, 1, classes), lambda b: (b, 0, 0)),
        compiler_params=pltpu.CompilerParams(
            dimension_semantics=("parallel",),        # shards batch over v7x's 2 TCs
            vmem_limit_bytes=32 * 1024 * 1024,        # explicit, portable across gens
        ),
    )(x2, *weights)
    return out.reshape(B, classes)


cifar_forward = jax.jit(cifar_forward_fused)


# ---------------------------------------------------------------------------
# Parameter init (deterministic, PyTorch-style uniform(-1/sqrt(fan_in), +))
# ---------------------------------------------------------------------------
def _uniform(key, shape, fan_in):
    bound = 1.0 / jnp.sqrt(jnp.float32(fan_in))
    return jax.random.uniform(key, shape, jnp.float32, -bound, bound)


def init_params(key, classes):
    ks = jax.random.split(key, 10)
    p = {}
    p["w1"] = _uniform(ks[0], (6, 3, 5, 5), 3 * 5 * 5)
    p["b1"] = _uniform(ks[1], (6,), 3 * 5 * 5)
    p["w2"] = _uniform(ks[2], (16, 6, 5, 5), 6 * 5 * 5)
    p["b2"] = _uniform(ks[3], (16,), 6 * 5 * 5)
    p["wf1"] = _uniform(ks[4], (120, 400), 400)
    p["bf1"] = _uniform(ks[5], (120,), 400)
    p["wf2"] = _uniform(ks[6], (84, 120), 120)
    p["bf2"] = _uniform(ks[7], (84,), 120)
    p["wf3"] = _uniform(ks[8], (classes, 84), 84)
    p["bf3"] = _uniform(ks[9], (classes,), 84)
    return p


# ---------------------------------------------------------------------------
# One-time repack of PyTorch-layout params into fused-kernel operands.
# ---------------------------------------------------------------------------
def prepare_params(p):
    f32 = np.float32
    w1 = np.asarray(p["w1"], f32); b1 = np.asarray(p["b1"], f32)
    w2 = np.asarray(p["w2"], f32); b2 = np.asarray(p["b2"], f32)
    wf1 = np.asarray(p["wf1"], f32); bf1 = np.asarray(p["bf1"], f32)
    wf2 = np.asarray(p["wf2"], f32); bf2 = np.asarray(p["bf2"], f32)
    wf3 = np.asarray(p["wf3"], f32); bf3 = np.asarray(p["bf3"], f32)
    K = 5

    def pack_conv(w, h_in, w_in):
        cout, cin = w.shape[0], w.shape[1]
        wo, ho = w_in - K + 1, h_in - K + 1
        wp, hp = wo // 2, ho // 2
        # Banded conv matrices (one per vertical tap di), with the horizontal pool
        # parity folded in:  m[par,di][(w+dj)*cin+ci, wq*cout+co] = w[co,ci,di,dj],
        # where w = 2*wq + par.
        m = np.zeros((2, K, w_in * cin, wp * cout), f32)
        for par in range(2):
            for di in range(K):
                for wq in range(wp):
                    w_out = 2 * wq + par
                    for dj in range(K):
                        m[par, di,
                          (w_out + dj) * cin:(w_out + dj + 1) * cin,
                          wq * cout:(wq + 1) * cout] = w[:, :, di, dj].T
        # Row-shift + vertical pool-parity selectors:
        #   (s[par*K+di] @ X)[hq, :] == X[2*hq + par + di, :]
        s = np.zeros((2 * K, hp, h_in), f32)
        for par in range(2):
            for di in range(K):
                for hq in range(hp):
                    s[par * K + di, hq, 2 * hq + par + di] = 1.0
        return m[0], m[1], s

    m1e, m1o, s1 = pack_conv(w1, 32, 32)     # (5,96,84) x2, (10,14,32)
    m2e, m2o, s2 = pack_conv(w2, 14, 14)     # (5,84,80) x2, (10,5,14)

    # fc1 weight regrouped per pooled row h so that row h of the (5, 80) activation
    # (layout (W2, C)) multiplies wf1k[h]; folds PyTorch's view(-1, 400) NCHW order.
    wf1k = wf1.reshape(-1, 16, 5, 5).transpose(2, 3, 1, 0).reshape(5, 80, -1)

    prep = {
        "s1": s1, "m1e": m1e, "m1o": m1o, "b1t": np.tile(b1, 14)[None, :],
        "s2": s2, "m2e": m2e, "m2o": m2o, "b2t": np.tile(b2, 5)[None, :],
        "wf1k": wf1k, "bf1": bf1[None, :],
        "wf2": wf2.T.copy(), "bf2": bf2[None, :],
        "wf3": wf3.T.copy(), "bf3": bf3[None, :],
    }
    return {k: jnp.asarray(v) for k, v in prep.items()}


# ---------------------------------------------------------------------------
# Pure-JAX/XLA reference (mirrors the PyTorch module) for validation.
# ---------------------------------------------------------------------------
def reference_forward(p, x):
    dn = ("NCHW", "OIHW", "NCHW")
    y = jax.lax.conv_general_dilated(x, p["w1"], (1, 1), "VALID", dimension_numbers=dn)
    y = jax.nn.relu(y + p["b1"][None, :, None, None])
    y = jax.lax.reduce_window(y, -jnp.inf, jax.lax.max, (1, 1, 2, 2), (1, 1, 2, 2), "VALID")
    y = jax.lax.conv_general_dilated(y, p["w2"], (1, 1), "VALID", dimension_numbers=dn)
    y = jax.nn.relu(y + p["b2"][None, :, None, None])
    y = jax.lax.reduce_window(y, -jnp.inf, jax.lax.max, (1, 1, 2, 2), (1, 1, 2, 2), "VALID")
    y = y.reshape(y.shape[0], 16 * 5 * 5)
    y = jax.nn.relu(y @ p["wf1"].T + p["bf1"])
    y = jax.nn.relu(y @ p["wf2"].T + p["bf2"])
    return y @ p["wf3"].T + p["bf3"]


if __name__ == "__main__":
    classes = 10
    key = jax.random.PRNGKey(0)
    kp, kx = jax.random.split(key)
    params = init_params(kp, classes)
    prep = prepare_params(params)
    x = jax.random.normal(kx, (2, 3, 32, 32), jnp.float32)

    out = cifar_forward(prep, x)
    jax.block_until_ready(out)
    assert out.shape == (2, classes), out.shape
    assert bool(jnp.all(jnp.isfinite(out)))

    ref = reference_forward(params, x)
    max_err = float(jnp.max(jnp.abs(out - ref)))
    assert max_err < 1e-3, f"mismatch vs XLA reference: {max_err}"

    print("KERNEL_OK")
</pallas_src>

<mosaic_0001>
module attributes {stable_mosaic.version = 11 : i64} {
  func.func @_cifar_fused_kernel(%arg0: i32, %arg1: memref<1x32x96xf32, #tpu.memory_space<vmem>>, %arg2: memref<10x14x32xf32, #tpu.memory_space<vmem>>, %arg3: memref<5x96x84xf32, #tpu.memory_space<vmem>>, %arg4: memref<5x96x84xf32, #tpu.memory_space<vmem>>, %arg5: memref<1x84xf32, #tpu.memory_space<vmem>>, %arg6: memref<10x5x14xf32, #tpu.memory_space<vmem>>, %arg7: memref<5x84x80xf32, #tpu.memory_space<vmem>>, %arg8: memref<5x84x80xf32, #tpu.memory_space<vmem>>, %arg9: memref<1x80xf32, #tpu.memory_space<vmem>>, %arg10: memref<5x80x120xf32, #tpu.memory_space<vmem>>, %arg11: memref<1x120xf32, #tpu.memory_space<vmem>>, %arg12: memref<120x84xf32, #tpu.memory_space<vmem>>, %arg13: memref<1x84xf32, #tpu.memory_space<vmem>>, %arg14: memref<84x10xf32, #tpu.memory_space<vmem>>, %arg15: memref<1x10xf32, #tpu.memory_space<vmem>>, %arg16: memref<1x1x10xf32, #tpu.memory_space<vmem>>) attributes {dimension_semantics = [#tpu.dimension_semantics<parallel>], iteration_bounds = array<i64: 2>, scalar_prefetch = 0 : i64, scratch_operands = 0 : i64, tpu.core_type = #tpu.core_type<tc>, window_params = [{transform_indices = @transform_0, window_bounds = array<i64: 1, 32, 96>}, {pipeline_mode = #tpu.pipeline_mode<synchronous>, transform_indices = @transform_1, window_bounds = array<i64: 10, 14, 32>}, {pipeline_mode = #tpu.pipeline_mode<synchronous>, transform_indices = @transform_2, window_bounds = array<i64: 5, 96, 84>}, {pipeline_mode = #tpu.pipeline_mode<synchronous>, transform_indices = @transform_3, window_bounds = array<i64: 5, 96, 84>}, {pipeline_mode = #tpu.pipeline_mode<synchronous>, transform_indices = @transform_4, window_bounds = array<i64: 1, 84>}, {pipeline_mode = #tpu.pipeline_mode<synchronous>, transform_indices = @transform_5, window_bounds = array<i64: 10, 5, 14>}, {pipeline_mode = #tpu.pipeline_mode<synchronous>, transform_indices = @transform_6, window_bounds = array<i64: 5, 84, 80>}, {pipeline_mode = #tpu.pipeline_mode<synchronous>, transform_indices = @transform_7, window_bounds = array<i64: 5, 84, 80>}, {pipeline_mode = #tpu.pipeline_mode<synchronous>, transform_indices = @transform_8, window_bounds = array<i64: 1, 80>}, {pipeline_mode = #tpu.pipeline_mode<synchronous>, transform_indices = @transform_9, window_bounds = array<i64: 5, 80, 120>}, {pipeline_mode = #tpu.pipeline_mode<synchronous>, transform_indices = @transform_10, window_bounds = array<i64: 1, 120>}, {pipeline_mode = #tpu.pipeline_mode<synchronous>, transform_indices = @transform_11, window_bounds = array<i64: 120, 84>}, {pipeline_mode = #tpu.pipeline_mode<synchronous>, transform_indices = @transform_12, window_bounds = array<i64: 1, 84>}, {pipeline_mode = #tpu.pipeline_mode<synchronous>, transform_indices = @transform_13, window_bounds = array<i64: 84, 10>}, {pipeline_mode = #tpu.pipeline_mode<synchronous>, transform_indices = @transform_14, window_bounds = array<i64: 1, 10>}, {transform_indices = @transform_15, window_bounds = array<i64: 1, 1, 10>}]} {
    %c0 = arith.constant 0 : index
    %c0_0 = arith.constant 0 : index
    %c0_1 = arith.constant 0 : index
    %0 = vector.load %arg1[%c0, %c0_0, %c0_1] : memref<1x32x96xf32, #tpu.memory_space<vmem>>, vector<1x32x96xf32>
    %1 = vector.shape_cast %0 : vector<1x32x96xf32> to vector<32x96xf32>
    %cst = arith.constant 0.000000e+00 : f32
    %2 = vector.broadcast %cst : f32 to vector<14x84xf32>
    %cst_2 = arith.constant 0.000000e+00 : f32
    %3 = vector.broadcast %cst_2 : f32 to vector<14x84xf32>
    %cst_3 = arith.constant 0.000000e+00 : f32
    %4 = vector.broadcast %cst_3 : f32 to vector<14x84xf32>
    %cst_4 = arith.constant 0.000000e+00 : f32
    %5 = vector.broadcast %cst_4 : f32 to vector<14x84xf32>
    %c0_5 = arith.constant 0 : index
    %c0_6 = arith.constant 0 : index
    %c0_7 = arith.constant 0 : index
    %6 = vector.load %arg2[%c0_5, %c0_6, %c0_7] : memref<10x14x32xf32, #tpu.memory_space<vmem>>, vector<1x14x32xf32>
    %7 = vector.shape_cast %6 : vector<1x14x32xf32> to vector<14x32xf32>
    %cst_8 = arith.constant dense<0.000000e+00> : vector<14x96xf32>
    %8 = tpu.matmul %7, %1, %cst_8 {dimension_numbers = #tpu.dot_dimension_numbers<[1], [0], [0], [1], [0, 0, 1, 1], [], []>} : vector<14x32xf32>, vector<32x96xf32>, vector<14x96xf32> -> vector<14x96xf32>
    %c0_9 = arith.constant 0 : index
    %c0_10 = arith.constant 0 : index
    %c0_11 = arith.constant 0 : index
    %9 = vector.load %arg3[%c0_9, %c0_10, %c0_11] : memref<5x96x84xf32, #tpu.memory_space<vmem>>, vector<1x96x84xf32>
    %10 = vector.shape_cast %9 : vector<1x96x84xf32> to vector<96x84xf32>
    %cst_12 = arith.constant dense<0.000000e+00> : vector<14x84xf32>
    %11 = tpu.matmul %8, %10, %cst_12 {dimension_numbers = #tpu.dot_dimension_numbers<[1], [0], [0], [1], [0, 0, 1, 1], [], []>} : vector<14x96xf32>, vector<96x84xf32>, vector<14x84xf32> -> vector<14x84xf32>
    %12 = arith.addf %2, %11 : vector<14x84xf32>
    %c0_13 = arith.constant 0 : index
    %c0_14 = arith.constant 0 : index
    %c0_15 = arith.constant 0 : index
    %13 = vector.load %arg4[%c0_13, %c0_14, %c0_15] : memref<5x96x84xf32, #tpu.memory_space<vmem>>, vector<1x96x84xf32>
    %14 = vector.shape_cast %13 : vector<1x96x84xf32> to vector<96x84xf32>
    %cst_16 = arith.constant dense<0.000000e+00> : vector<14x84xf32>
    %15 = tpu.matmul %8, %14, %cst_16 {dimension_numbers = #tpu.dot_dimension_numbers<[1], [0], [0], [1], [0, 0, 1, 1], [], []>} : vector<14x96xf32>, vector<96x84xf32>, vector<14x84xf32> -> vector<14x84xf32>
    %16 = arith.addf %3, %15 : vector<14x84xf32>
    %c5 = arith.constant 5 : index
    %c0_17 = arith.constant 0 : index
    %c0_18 = arith.constant 0 : index
    %17 = vector.load %arg2[%c5, %c0_17, %c0_18] : memref<10x14x32xf32, #tpu.memory_space<vmem>>, vector<1x14x32xf32>
    %18 = vector.shape_cast %17 : vector<1x14x32xf32> to vector<14x32xf32>
    %cst_19 = arith.constant dense<0.000000e+00> : vector<14x96xf32>
    %19 = tpu.matmul %18, %1, %cst_19 {dimension_numbers = #tpu.dot_dimension_numbers<[1], [0], [0], [1], [0, 0, 1, 1], [], []>} : vector<14x32xf32>, vector<32x96xf32>, vector<14x96xf32> -> vector<14x96xf32>
    %c0_20 = arith.constant 0 : index
    %c0_21 = arith.constant 0 : index
    %c0_22 = arith.constant 0 : index
    %20 = vector.load %arg3[%c0_20, %c0_21, %c0_22] : memref<5x96x84xf32, #tpu.memory_space<vmem>>, vector<1x96x84xf32>
    %21 = vector.shape_cast %20 : vector<1x96x84xf32> to vector<96x84xf32>
    %cst_23 = arith.constant dense<0.000000e+00> : vector<14x84xf32>
    %22 = tpu.matmul %19, %21, %cst_23 {dimension_numbers = #tpu.dot_dimension_numbers<[1], [0], [0], [1], [0, 0, 1, 1], [], []>} : vector<14x96xf32>, vector<96x84xf32>, vector<14x84xf32> -> vector<14x84xf32>
    %23 = arith.addf %4, %22 : vector<14x84xf32>
    %c0_24 = arith.constant 0 : index
    %c0_25 = arith.constant 0 : index
    %c0_26 = arith.constant 0 : index
    %24 = vector.load %arg4[%c0_24, %c0_25, %c0_26] : memref<5x96x84xf32, #tpu.memory_space<vmem>>, vector<1x96x84xf32>
    %25 = vector.shape_cast %24 : vector<1x96x84xf32> to vector<96x84xf32>
    %cst_27 = arith.constant dense<0.000000e+00> : vector<14x84xf32>
    %26 = tpu.matmul %19, %25, %cst_27 {dimension_numbers = #tpu.dot_dimension_numbers<[1], [0], [0], [1], [0, 0, 1, 1], [], []>} : vector<14x96xf32>, vector<96x84xf32>, vector<14x84xf32> -> vector<14x84xf32>
    %27 = arith.addf %5, %26 : vector<14x84xf32>
    %c1 = arith.constant 1 : index
    %c0_28 = arith.constant 0 : index
    %c0_29 = arith.constant 0 : index
    %28 = vector.load %arg2[%c1, %c0_28, %c0_29] : memref<10x14x32xf32, #tpu.memory_space<vmem>>, vector<1x14x32xf32>
    %29 = vector.shape_cast %28 : vector<1x14x32xf32> to vector<14x32xf32>
    %cst_30 = arith.constant dense<0.000000e+00> : vector<14x96xf32>
    %30 = tpu.matmul %29, %1, %cst_30 {dimension_numbers = #tpu.dot_dimension_numbers<[1], [0], [0], [1], [0, 0, 1, 1], [], []>} : vector<14x32xf32>, vector<32x96xf32>, vector<14x96xf32> -> vector<14x96xf32>
    %c1_31 = arith.constant 1 : index
    %c0_32 = arith.constant 0 : index
    %c0_33 = arith.constant 0 : index
    %31 = vector.load %arg3[%c1_31, %c0_32, %c0_33] : memref<5x96x84xf32, #tpu.memory_space<vmem>>, vector<1x96x84xf32>
    %32 = vector.shape_cast %31 : vector<1x96x84xf32> to vector<96x84xf32>
    %cst_34 = arith.constant dense<0.000000e+00> : vector<14x84xf32>
    %33 = tpu.matmul %30, %32, %cst_34 {dimension_numbers = #tpu.dot_dimension_numbers<[1], [0], [0], [1], [0, 0, 1, 1], [], []>} : vector<14x96xf32>, vector<96x84xf32>, vector<14x84xf32> -> vector<14x84xf32>
    %34 = arith.addf %12, %33 : vector<14x84xf32>
    %c1_35 = arith.constant 1 : index
    %c0_36 = arith.constant 0 : index
    %c0_37 = arith.constant 0 : index
    %35 = vector.load %arg4[%c1_35, %c0_36, %c0_37] : memref<5x96x84xf32, #tpu.memory_space<vmem>>, vector<1x96x84xf32>
    %36 = vector.shape_cast %35 : vector<1x96x84xf32> to vector<96x84xf32>
    %cst_38 = arith.constant dense<0.000000e+00> : vector<14x84xf32>
    %37 = tpu.matmul %30, %36, %cst_38 {dimension_numbers = #tpu.dot_dimension_numbers<[1], [0], [0], [1], [0, 0, 1, 1], [], []>} : vector<14x96xf32>, vector<96x84xf32>, vector<14x84xf32> -> vector<14x84xf32>
    %38 = arith.addf %16, %37 : vector<14x84xf32>
    %c6 = arith.constant 6 : index
    %c0_39 = arith.constant 0 : index
    %c0_40 = arith.constant 0 : index
    %39 = vector.load %arg2[%c6, %c0_39, %c0_40] : memref<10x14x32xf32, #tpu.memory_space<vmem>>, vector<1x14x32xf32>
    %40 = vector.shape_cast %39 : vector<1x14x32xf32> to vector<14x32xf32>
    %cst_41 = arith.constant dense<0.000000e+00> : vector<14x96xf32>
    %41 = tpu.matmul %40, %1, %cst_41 {dimension_numbers = #tpu.dot_dimension_numbers<[1], [0], [0], [1], [0, 0, 1, 1], [], []>} : vector<14x32xf32>, vector<32x96xf32>, vector<14x96xf32> -> vector<14x96xf32>
    %c1_42 = arith.constant 1 : index
    %c0_43 = arith.constant 0 : index
    %c0_44 = arith.constant 0 : index
    %42 = vector.load %arg3[%c1_42, %c0_43, %c0_44] : memref<5x96x84xf32, #tpu.memory_space<vmem>>, vector<1x96x84xf32>
    %43 = vector.shape_cast %42 : vector<1x96x84xf32> to vector<96x84xf32>
    %cst_45 = arith.constant dense<0.000000e+00> : vector<14x84xf32>
    %44 = tpu.matmul %41, %43, %cst_45 {dimension_numbers = #tpu.dot_dimension_numbers<[1], [0], [0], [1], [0, 0, 1, 1], [], []>} : vector<14x96xf32>, vector<96x84xf32>, vector<14x84xf32> -> vector<14x84xf32>
    %45 = arith.addf %23, %44 : vector<14x84xf32>
    %c1_46 = arith.constant 1 : index
    %c0_47 = arith.constant 0 : index
    %c0_48 = arith.constant 0 : index
    %46 = vector.load %arg4[%c1_46, %c0_47, %c0_48] : memref<5x96x84xf32, #tpu.memory_space<vmem>>, vector<1x96x84xf32>
    %47 = vector.shape_cast %46 : vector<1x96x84xf32> to vector<96x84xf32>
    %cst_49 = arith.constant dense<0.000000e+00> : vector<14x84xf32>
    %48 = tpu.matmul %41, %47, %cst_49 {dimension_numbers = #tpu.dot_dimension_numbers<[1], [0], [0], [1], [0, 0, 1, 1], [], []>} : vector<14x96xf32>, vector<96x84xf32>, vector<14x84xf32> -> vector<14x84xf32>
    %49 = arith.addf %27, %48 : vector<14x84xf32>
    %c2 = arith.constant 2 : index
    %c0_50 = arith.constant 0 : index
    %c0_51 = arith.constant 0 : index
    %50 = vector.load %arg2[%c2, %c0_50, %c0_51] : memref<10x14x32xf32, #tpu.memory_space<vmem>>, vector<1x14x32xf32>
    %51 = vector.shape_cast %50 : vector<1x14x32xf32> to vector<14x32xf32>
    %cst_52 = arith.constant dense<0.000000e+00> : vector<14x96xf32>
    %52 = tpu.matmul %51, %1, %cst_52 {dimension_numbers = #tpu.dot_dimension_numbers<[1], [0], [0], [1], [0, 0, 1, 1], [], []>} : vector<14x32xf32>, vector<32x96xf32>, vector<14x96xf32> -> vector<14x96xf32>
    %c2_53 = arith.constant 2 : index
    %c0_54 = arith.constant 0 : index
    %c0_55 = arith.constant 0 : index
    %53 = vector.load %arg3[%c2_53, %c0_54, %c0_55] : memref<5x96x84xf32, #tpu.memory_space<vmem>>, vector<1x96x84xf32>
    %54 = vector.shape_cast %53 : vector<1x96x84xf32> to vector<96x84xf32>
    %cst_56 = arith.constant dense<0.000000e+00> : vector<14x84xf32>
    %55 = tpu.matmul %52, %54, %cst_56 {dimension_numbers = #tpu.dot_dimension_numbers<[1], [0], [0], [1], [0, 0, 1, 1], [], []>} : vector<14x96xf32>, vector<96x84xf32>, vector<14x84xf32> -> vector<14x84xf32>
    %56 = arith.addf %34, %55 : vector<14x84xf32>
    %c2_57 = arith.constant 2 : index
    %c0_58 = arith.constant 0 : index
    %c0_59 = arith.constant 0 : index
    %57 = vector.load %arg4[%c2_57, %c0_58, %c0_59] : memref<5x96x84xf32, #tpu.memory_space<vmem>>, vector<1x96x84xf32>
    %58 = vector.shape_cast %57 : vector<1x96x84xf32> to vector<96x84xf32>
    %cst_60 = arith.constant dense<0.000000e+00> : vector<14x84xf32>
    %59 = tpu.matmul %52, %58, %cst_60 {dimension_numbers = #tpu.dot_dimension_numbers<[1], [0], [0], [1], [0, 0, 1, 1], [], []>} : vector<14x96xf32>, vector<96x84xf32>, vector<14x84xf32> -> vector<14x84xf32>
    %60 = arith.addf %38, %59 : vector<14x84xf32>
    %c7 = arith.constant 7 : index
    %c0_61 = arith.constant 0 : index
    %c0_62 = arith.constant 0 : index
    %61 = vector.load %arg2[%c7, %c0_61, %c0_62] : memref<10x14x32xf32, #tpu.memory_space<vmem>>, vector<1x14x32xf32>
    %62 = vector.shape_cast %61 : vector<1x14x32xf32> to vector<14x32xf32>
    %cst_63 = arith.constant dense<0.000000e+00> : vector<14x96xf32>
    %63 = tpu.matmul %62, %1, %cst_63 {dimension_numbers = #tpu.dot_dimension_numbers<[1], [0], [0], [1], [0, 0, 1, 1], [], []>} : vector<14x32xf32>, vector<32x96xf32>, vector<14x96xf32> -> vector<14x96xf32>
    %c2_64 = arith.constant 2 : index
    %c0_65 = arith.constant 0 : index
    %c0_66 = arith.constant 0 : index
    %64 = vector.load %arg3[%c2_64, %c0_65, %c0_66] : memref<5x96x84xf32, #tpu.memory_space<vmem>>, vector<1x96x84xf32>
    %65 = vector.shape_cast %64 : vector<1x96x84xf32> to vector<96x84xf32>
    %cst_67 = arith.constant dense<0.000000e+00> : vector<14x84xf32>
    %66 = tpu.matmul %63, %65, %cst_67 {dimension_numbers = #tpu.dot_dimension_numbers<[1], [0], [0], [1], [0, 0, 1, 1], [], []>} : vector<14x96xf32>, vector<96x84xf32>, vector<14x84xf32> -> vector<14x84xf32>
    %67 = arith.addf %45, %66 : vector<14x84xf32>
    %c2_68 = arith.constant 2 : index
    %c0_69 = arith.constant 0 : index
    %c0_70 = arith.constant 0 : index
    %68 = vector.load %arg4[%c2_68, %c0_69, %c0_70] : memref<5x96x84xf32, #tpu.memory_space<vmem>>, vector<1x96x84xf32>
    %69 = vector.shape_cast %68 : vector<1x96x84xf32> to vector<96x84xf32>
    %cst_71 = arith.constant dense<0.000000e+00> : vector<14x84xf32>
    %70 = tpu.matmul %63, %69, %cst_71 {dimension_numbers = #tpu.dot_dimension_numbers<[1], [0], [0], [1], [0, 0, 1, 1], [], []>} : vector<14x96xf32>, vector<96x84xf32>, vector<14x84xf32> -> vector<14x84xf32>
    %71 = arith.addf %49, %70 : vector<14x84xf32>
    %c3 = arith.constant 3 : index
    %c0_72 = arith.constant 0 : index
    %c0_73 = arith.constant 0 : index
    %72 = vector.load %arg2[%c3, %c0_72, %c0_73] : memref<10x14x32xf32, #tpu.memory_space<vmem>>, vector<1x14x32xf32>
    %73 = vector.shape_cast %72 : vector<1x14x32xf32> to vector<14x32xf32>
    %cst_74 = arith.constant dense<0.000000e+00> : vector<14x96xf32>
    %74 = tpu.matmul %73, %1, %cst_74 {dimension_numbers = #tpu.dot_dimension_numbers<[1], [0], [0], [1], [0, 0, 1, 1], [], []>} : vector<14x32xf32>, vector<32x96xf32>, vector<14x96xf32> -> vector<14x96xf32>
    %c3_75 = arith.constant 3 : index
    %c0_76 = arith.constant 0 : index
    %c0_77 = arith.constant 0 : index
    %75 = vector.load %arg3[%c3_75, %c0_76, %c0_77] : memref<5x96x84xf32, #tpu.memory_space<vmem>>, vector<1x96x84xf32>
    %76 = vector.shape_cast %75 : vector<1x96x84xf32> to vector<96x84xf32>
    %cst_78 = arith.constant dense<0.000000e+00> : vector<14x84xf32>
    %77 = tpu.matmul %74, %76, %cst_78 {dimension_numbers = #tpu.dot_dimension_numbers<[1], [0], [0], [1], [0, 0, 1, 1], [], []>} : vector<14x96xf32>, vector<96x84xf32>, vector<14x84xf32> -> vector<14x84xf32>
    %78 = arith.addf %56, %77 : vector<14x84xf32>
    %c3_79 = arith.constant 3 : index
    %c0_80 = arith.constant 0 : index
    %c0_81 = arith.constant 0 : index
    %79 = vector.load %arg4[%c3_79, %c0_80, %c0_81] : memref<5x96x84xf32, #tpu.memory_space<vmem>>, vector<1x96x84xf32>
    %80 = vector.shape_cast %79 : vector<1x96x84xf32> to vector<96x84xf32>
    %cst_82 = arith.constant dense<0.000000e+00> : vector<14x84xf32>
    %81 = tpu.matmul %74, %80, %cst_82 {dimension_numbers = #tpu.dot_dimension_numbers<[1], [0], [0], [1], [0, 0, 1, 1], [], []>} : vector<14x96xf32>, vector<96x84xf32>, vector<14x84xf32> -> vector<14x84xf32>
    %82 = arith.addf %60, %81 : vector<14x84xf32>
    %c8 = arith.constant 8 : index
    %c0_83 = arith.constant 0 : index
    %c0_84 = arith.constant 0 : index
    %83 = vector.load %arg2[%c8, %c0_83, %c0_84] : memref<10x14x32xf32, #tpu.memory_space<vmem>>, vector<1x14x32xf32>
    %84 = vector.shape_cast %83 : vector<1x14x32xf32> to vector<14x32xf32>
    %cst_85 = arith.constant dense<0.000000e+00> : vector<14x96xf32>
    %85 = tpu.matmul %84, %1, %cst_85 {dimension_numbers = #tpu.dot_dimension_numbers<[1], [0], [0], [1], [0, 0, 1, 1], [], []>} : vector<14x32xf32>, vector<32x96xf32>, vector<14x96xf32> -> vector<14x96xf32>
    %c3_86 = arith.constant 3 : index
    %c0_87 = arith.constant 0 : index
    %c0_88 = arith.constant 0 : index
    %86 = vector.load %arg3[%c3_86, %c0_87, %c0_88] : memref<5x96x84xf32, #tpu.memory_space<vmem>>, vector<1x96x84xf32>
    %87 = vector.shape_cast %86 : vector<1x96x84xf32> to vector<96x84xf32>
    %cst_89 = arith.constant dense<0.000000e+00> : vector<14x84xf32>
    %88 = tpu.matmul %85, %87, %cst_89 {dimension_numbers = #tpu.dot_dimension_numbers<[1], [0], [0], [1], [0, 0, 1, 1], [], []>} : vector<14x96xf32>, vector<96x84xf32>, vector<14x84xf32> -> vector<14x84xf32>
    %89 = arith.addf %67, %88 : vector<14x84xf32>
    %c3_90 = arith.constant 3 : index
    %c0_91 = arith.constant 0 : index
    %c0_92 = arith.constant 0 : index
    %90 = vector.load %arg4[%c3_90, %c0_91, %c0_92] : memref<5x96x84xf32, #tpu.memory_space<vmem>>, vector<1x96x84xf32>
    %91 = vector.shape_cast %90 : vector<1x96x84xf32> to vector<96x84xf32>
    %cst_93 = arith.constant dense<0.000000e+00> : vector<14x84xf32>
    %92 = tpu.matmul %85, %91, %cst_93 {dimension_numbers = #tpu.dot_dimension_numbers<[1], [0], [0], [1], [0, 0, 1, 1], [], []>} : vector<14x96xf32>, vector<96x84xf32>, vector<14x84xf32> -> vector<14x84xf32>
    %93 = arith.addf %71, %92 : vector<14x84xf32>
    %c4 = arith.constant 4 : index
    %c0_94 = arith.constant 0 : index
    %c0_95 = arith.constant 0 : index
    %94 = vector.load %arg2[%c4, %c0_94, %c0_95] : memref<10x14x32xf32, #tpu.memory_space<vmem>>, vector<1x14x32xf32>
    %95 = vector.shape_cast %94 : vector<1x14x32xf32> to vector<14x32xf32>
    %cst_96 = arith.constant dense<0.000000e+00> : vector<14x96xf32>
    %96 = tpu.matmul %95, %1, %cst_96 {dimension_numbers = #tpu.dot_dimension_numbers<[1], [0], [0], [1], [0, 0, 1, 1], [], []>} : vector<14x32xf32>, vector<32x96xf32>, vector<14x96xf32> -> vector<14x96xf32>
    %c4_97 = arith.constant 4 : index
    %c0_98 = arith.constant 0 : index
    %c0_99 = arith.constant 0 : index
    %97 = vector.load %arg3[%c4_97, %c0_98, %c0_99] : memref<5x96x84xf32, #tpu.memory_space<vmem>>, vector<1x96x84xf32>
    %98 = vector.shape_cast %97 : vector<1x96x84xf32> to vector<96x84xf32>
    %cst_100 = arith.constant dense<0.000000e+00> : vector<14x84xf32>
    %99 = tpu.matmul %96, %98, %cst_100 {dimension_numbers = #tpu.dot_dimension_numbers<[1], [0], [0], [1], [0, 0, 1, 1], [], []>} : vector<14x96xf32>, vector<96x84xf32>, vector<14x84xf32> -> vector<14x84xf32>
    %100 = arith.addf %78, %99 : vector<14x84xf32>
    %c4_101 = arith.constant 4 : index
    %c0_102 = arith.constant 0 : index
    %c0_103 = arith.constant 0 : index
    %101 = vector.load %arg4[%c4_101, %c0_102, %c0_103] : memref<5x96x84xf32, #tpu.memory_space<vmem>>, vector<1x96x84xf32>
    %102 = vector.shape_cast %101 : vector<1x96x84xf32> to vector<96x84xf32>
    %cst_104 = arith.constant dense<0.000000e+00> : vector<14x84xf32>
    %103 = tpu.matmul %96, %102, %cst_104 {dimension_numbers = #tpu.dot_dimension_numbers<[1], [0], [0], [1], [0, 0, 1, 1], [], []>} : vector<14x96xf32>, vector<96x84xf32>, vector<14x84xf32> -> vector<14x84xf32>
    %104 = arith.addf %82, %103 : vector<14x84xf32>
    %c9 = arith.constant 9 : index
    %c0_105 = arith.constant 0 : index
    %c0_106 = arith.constant 0 : index
    %105 = vector.load %arg2[%c9, %c0_105, %c0_106] : memref<10x14x32xf32, #tpu.memory_space<vmem>>, vector<1x14x32xf32>
    %106 = vector.shape_cast %105 : vector<1x14x32xf32> to vector<14x32xf32>
    %cst_107 = arith.constant dense<0.000000e+00> : vector<14x96xf32>
    %107 = tpu.matmul %106, %1, %cst_107 {dimension_numbers = #tpu.dot_dimension_numbers<[1], [0], [0], [1], [0, 0, 1, 1], [], []>} : vector<14x32xf32>, vector<32x96xf32>, vector<14x96xf32> -> vector<14x96xf32>
    %c4_108 = arith.constant 4 : index
    %c0_109 = arith.constant 0 : index
    %c0_110 = arith.constant 0 : index
    %108 = vector.load %arg3[%c4_108, %c0_109, %c0_110] : memref<5x96x84xf32, #tpu.memory_space<vmem>>, vector<1x96x84xf32>
    %109 = vector.shape_cast %108 : vector<1x96x84xf32> to vector<96x84xf32>
    %cst_111 = arith.constant dense<0.000000e+00> : vector<14x84xf32>
    %110 = tpu.matmul %107, %109, %cst_111 {dimension_numbers = #tpu.dot_dimension_numbers<[1], [0], [0], [1], [0, 0, 1, 1], [], []>} : vector<14x96xf32>, vector<96x84xf32>, vector<14x84xf32> -> vector<14x84xf32>
    %111 = arith.addf %89, %110 : vector<14x84xf32>
    %c4_112 = arith.constant 4 : index
    %c0_113 = arith.constant 0 : index
    %c0_114 = arith.constant 0 : index
    %112 = vector.load %arg4[%c4_112, %c0_113, %c0_114] : memref<5x96x84xf32, #tpu.memory_space<vmem>>, vector<1x96x84xf32>
    %113 = vector.shape_cast %112 : vector<1x96x84xf32> to vector<96x84xf32>
    %cst_115 = arith.constant dense<0.000000e+00> : vector<14x84xf32>
    %114 = tpu.matmul %107, %113, %cst_115 {dimension_numbers = #tpu.dot_dimension_numbers<[1], [0], [0], [1], [0, 0, 1, 1], [], []>} : vector<14x96xf32>, vector<96x84xf32>, vector<14x84xf32> -> vector<14x84xf32>
    %115 = arith.addf %93, %114 : vector<14x84xf32>
    %116 = arith.maximumf %100, %104 : vector<14x84xf32>
    %117 = arith.maximumf %111, %115 : vector<14x84xf32>
    %118 = arith.maximumf %116, %117 : vector<14x84xf32>
    %c0_116 = arith.constant 0 : index
    %c0_117 = arith.constant 0 : index
    %119 = vector.load %arg5[%c0_116, %c0_117] : memref<1x84xf32, #tpu.memory_space<vmem>>, vector<1x84xf32>
    %120 = vector.broadcast %119 : vector<1x84xf32> to vector<14x84xf32>
    %121 = arith.addf %118, %120 : vector<14x84xf32>
    %cst_118 = arith.constant 0.000000e+00 : f32
    %122 = vector.broadcast %cst_118 : f32 to vector<14x84xf32>
    %123 = arith.maximumf %121, %122 : vector<14x84xf32>
    %cst_119 = arith.constant 0.000000e+00 : f32
    %124 = vector.broadcast %cst_119 : f32 to vector<5x80xf32>
    %cst_120 = arith.constant 0.000000e+00 : f32
    %125 = vector.broadcast %cst_120 : f32 to vector<5x80xf32>
    %cst_121 = arith.constant 0.000000e+00 : f32
    %126 = vector.broadcast %cst_121 : f32 to vector<5x80xf32>
    %cst_122 = arith.constant 0.000000e+00 : f32
    %127 = vector.broadcast %cst_122 : f32 to vector<5x80xf32>
    %c0_123 = arith.constant 0 : index
    %c0_124 = arith.constant 0 : index
    %c0_125 = arith.constant 0 : index
    %128 = vector.load %arg6[%c0_123, %c0_124, %c0_125] : memref<10x5x14xf32, #tpu.memory_space<vmem>>, vector<1x5x14xf32>
    %129 = vector.shape_cast %128 : vector<1x5x14xf32> to vector<5x14xf32>
    %cst_126 = arith.constant dense<0.000000e+00> : vector<5x84xf32>
    %130 = tpu.matmul %129, %123, %cst_126 {dimension_numbers = #tpu.dot_dimension_numbers<[1], [0], [0], [1], [0, 0, 1, 1], [], []>} : vector<5x14xf32>, vector<14x84xf32>, vector<5x84xf32> -> vector<5x84xf32>
    %c0_127 = arith.constant 0 : index
    %c0_128 = arith.constant 0 : index
    %c0_129 = arith.constant 0 : index
    %131 = vector.load %arg7[%c0_127, %c0_128, %c0_129] : memref<5x84x80xf32, #tpu.memory_space<vmem>>, vector<1x84x80xf32>
    %132 = vector.shape_cast %131 : vector<1x84x80xf32> to vector<84x80xf32>
    %cst_130 = arith.constant dense<0.000000e+00> : vector<5x80xf32>
    %133 = tpu.matmul %130, %132, %cst_130 {dimension_numbers = #tpu.dot_dimension_numbers<[1], [0], [0], [1], [0, 0, 1, 1], [], []>} : vector<5x84xf32>, vector<84x80xf32>, vector<5x80xf32> -> vector<5x80xf32>
    %134 = arith.addf %124, %133 : vector<5x80xf32>
    %c0_131 = arith.constant 0 : index
    %c0_132 = arith.constant 0 : index
    %c0_133 = arith.constant 0 : index
    %135 = vector.load %arg8[%c0_131, %c0_132, %c0_133] : memref<5x84x80xf32, #tpu.memory_space<vmem>>, vector<1x84x80xf32>
    %136 = vector.shape_cast %135 : vector<1x84x80xf32> to vector<84x80xf32>
    %cst_134 = arith.constant dense<0.000000e+00> : vector<5x80xf32>
    %137 = tpu.matmul %130, %136, %cst_134 {dimension_numbers = #tpu.dot_dimension_numbers<[1], [0], [0], [1], [0, 0, 1, 1], [], []>} : vector<5x84xf32>, vector<84x80xf32>, vector<5x80xf32> -> vector<5x80xf32>
    %138 = arith.addf %125, %137 : vector<5x80xf32>
    %c5_135 = arith.constant 5 : index
    %c0_136 = arith.constant 0 : index
    %c0_137 = arith.constant 0 : index
    %139 = vector.load %arg6[%c5_135, %c0_136, %c0_137] : memref<10x5x14xf32, #tpu.memory_space<vmem>>, vector<1x5x14xf32>
    %140 = vector.shape_cast %139 : vector<1x5x14xf32> to vector<5x14xf32>
    %cst_138 = arith.constant dense<0.000000e+00> : vector<5x84xf32>
    %141 = tpu.matmul %140, %123, %cst_138 {dimension_numbers = #tpu.dot_dimension_numbers<[1], [0], [0], [1], [0, 0, 1, 1], [], []>} : vector<5x14xf32>, vector<14x84xf32>, vector<5x84xf32> -> vector<5x84xf32>
    %c0_139 = arith.constant 0 : index
    %c0_140 = arith.constant 0 : index
    %c0_141 = arith.constant 0 : index
    %142 = vector.load %arg7[%c0_139, %c0_140, %c0_141] : memref<5x84x80xf32, #tpu.memory_space<vmem>>, vector<1x84x80xf32>
    %143 = vector.shape_cast %142 : vector<1x84x80xf32> to vector<84x80xf32>
    %cst_142 = arith.constant dense<0.000000e+00> : vector<5x80xf32>
    %144 = tpu.matmul %141, %143, %cst_142 {dimension_numbers = #tpu.dot_dimension_numbers<[1], [0], [0], [1], [0, 0, 1, 1], [], []>} : vector<5x84xf32>, vector<84x80xf32>, vector<5x80xf32> -> vector<5x80xf32>
    %145 = arith.addf %126, %144 : vector<5x80xf32>
    %c0_143 = arith.constant 0 : index
    %c0_144 = arith.constant 0 : index
    %c0_145 = arith.constant 0 : index
    %146 = vector.load %arg8[%c0_143, %c0_144, %c0_145] : memref<5x84x80xf32, #tpu.memory_space<vmem>>, vector<1x84x80xf32>
    %147 = vector.shape_cast %146 : vector<1x84x80xf32> to vector<84x80xf32>
    %cst_146 = arith.constant dense<0.000000e+00> : vector<5x80xf32>
    %148 = tpu.matmul %141, %147, %cst_146 {dimension_numbers = #tpu.dot_dimension_numbers<[1], [0], [0], [1], [0, 0, 1, 1], [], []>} : vector<5x84xf32>, vector<84x80xf32>, vector<5x80xf32> -> vector<5x80xf32>
    %149 = arith.addf %127, %148 : vector<5x80xf32>
    %c1_147 = arith.constant 1 : index
    %c0_148 = arith.constant 0 : index
    %c0_149 = arith.constant 0 : index
    %150 = vector.load %arg6[%c1_147, %c0_148, %c0_149] : memref<10x5x14xf32, #tpu.memory_space<vmem>>, vector<1x5x14xf32>
    %151 = vector.shape_cast %150 : vector<1x5x14xf32> to vector<5x14xf32>
    %cst_150 = arith.constant dense<0.000000e+00> : vector<5x84xf32>
    %152 = tpu.matmul %151, %123, %cst_150 {dimension_numbers = #tpu.dot_dimension_numbers<[1], [0], [0], [1], [0, 0, 1, 1], [], []>} : vector<5x14xf32>, vector<14x84xf32>, vector<5x84xf32> -> vector<5x84xf32>
    %c1_151 = arith.constant 1 : index
    %c0_152 = arith.constant 0 : index
    %c0_153 = arith.constant 0 : index
    %153 = vector.load %arg7[%c1_151, %c0_152, %c0_153] : memref<5x84x80xf32, #tpu.memory_space<vmem>>, vector<1x84x80xf32>
    %154 = vector.shape_cast %153 : vector<1x84x80xf32> to vector<84x80xf32>
    %cst_154 = arith.constant dense<0.000000e+00> : vector<5x80xf32>
    %155 = tpu.matmul %152, %154, %cst_154 {dimension_numbers = #tpu.dot_dimension_numbers<[1], [0], [0], [1], [0, 0, 1, 1], [], []>} : vector<5x84xf32>, vector<84x80xf32>, vector<5x80xf32> -> vector<5x80xf32>
    %156 = arith.addf %134, %155 : vector<5x80xf32>
    %c1_155 = arith.constant 1 : index
    %c0_156 = arith.constant 0 : index
    %c0_157 = arith.constant 0 : index
    %157 = vector.load %arg8[%c1_155, %c0_156, %c0_157] : memref<5x84x80xf32, #tpu.memory_space<vmem>>, vector<1x84x80xf32>
    %158 = vector.shape_cast %157 : vector<1x84x80xf32> to vector<84x80xf32>
    %cst_158 = arith.constant dense<0.000000e+00> : vector<5x80xf32>
    %159 = tpu.matmul %152, %158, %cst_158 {dimension_numbers = #tpu.dot_dimension_numbers<[1], [0], [0], [1], [0, 0, 1, 1], [], []>} : vector<5x84xf32>, vector<84x80xf32>, vector<5x80xf32> -> vector<5x80xf32>
    %160 = arith.addf %138, %159 : vector<5x80xf32>
    %c6_159 = arith.constant 6 : index
    %c0_160 = arith.constant 0 : index
    %c0_161 = arith.constant 0 : index
    %161 = vector.load %arg6[%c6_159, %c0_160, %c0_161] : memref<10x5x14xf32, #tpu.memory_space<vmem>>, vector<1x5x14xf32>
    %162 = vector.shape_cast %161 : vector<1x5x14xf32> to vector<5x14xf32>
    %cst_162 = arith.constant dense<0.000000e+00> : vector<5x84xf32>
    %163 = tpu.matmul %162, %123, %cst_162 {dimension_numbers = #tpu.dot_dimension_numbers<[1], [0], [0], [1], [0, 0, 1, 1], [], []>} : vector<5x14xf32>, vector<14x84xf32>, vector<5x84xf32> -> vector<5x84xf32>
    %c1_163 = arith.constant 1 : index
    %c0_164 = arith.constant 0 : index
    %c0_165 = arith.constant 0 : index
    %164 = vector.load %arg7[%c1_163, %c0_164, %c0_165] : memref<5x84x80xf32, #tpu.memory_space<vmem>>, vector<1x84x80xf32>
    %165 = vector.shape_cast %164 : vector<1x84x80xf32> to vector<84x80xf32>
    %cst_166 = arith.constant dense<0.000000e+00> : vector<5x80xf32>
    %166 = tpu.matmul %163, %165, %cst_166 {dimension_numbers = #tpu.dot_dimension_numbers<[1], [0], [0], [1], [0, 0, 1, 1], [], []>} : vector<5x84xf32>, vector<84x80xf32>, vector<5x80xf32> -> vector<5x80xf32>
    %167 = arith.addf %145, %166 : vector<5x80xf32>
    %c1_167 = arith.constant 1 : index
    %c0_168 = arith.constant 0 : index
    %c0_169 = arith.constant 0 : index
    %168 = vector.load %arg8[%c1_167, %c0_168, %c0_169] : memref<5x84x80xf32, #tpu.memory_space<vmem>>, vector<1x84x80xf32>
    %169 = vector.shape_cast %168 : vector<1x84x80xf32> to vector<84x80xf32>
    %cst_170 = arith.constant dense<0.000000e+00> : vector<5x80xf32>
    %170 = tpu.matmul %163, %169, %cst_170 {dimension_numbers = #tpu.dot_dimension_numbers<[1], [0], [0], [1], [0, 0, 1, 1], [], []>} : vector<5x84xf32>, vector<84x80xf32>, vector<5x80xf32> -> vector<5x80xf32>
    %171 = arith.addf %149, %170 : vector<5x80xf32>
    %c2_171 = arith.constant 2 : index
    %c0_172 = arith.constant 0 : index
    %c0_173 = arith.constant 0 : index
    %172 = vector.load %arg6[%c2_171, %c0_172, %c0_173] : memref<10x5x14xf32, #tpu.memory_space<vmem>>, vector<1x5x14xf32>
    %173 = vector.shape_cast %172 : vector<1x5x14xf32> to vector<5x14xf32>
    %cst_174 = arith.constant dense<0.000000e+00> : vector<5x84xf32>
    %174 = tpu.matmul %173, %123, %cst_174 {dimension_numbers = #tpu.dot_dimension_numbers<[1], [0], [0], [1], [0, 0, 1, 1], [], []>} : vector<5x14xf32>, vector<14x84xf32>, vector<5x84xf32> -> vector<5x84xf32>
    %c2_175 = arith.constant 2 : index
    %c0_176 = arith.constant 0 : index
    %c0_177 = arith.constant 0 : index
    %175 = vector.load %arg7[%c2_175, %c0_176, %c0_177] : memref<5x84x80xf32, #tpu.memory_space<vmem>>, vector<1x84x80xf32>
    %176 = vector.shape_cast %175 : vector<1x84x80xf32> to vector<84x80xf32>
    %cst_178 = arith.constant dense<0.000000e+00> : vector<5x80xf32>
    %177 = tpu.matmul %174, %176, %cst_178 {dimension_numbers = #tpu.dot_dimension_numbers<[1], [0], [0], [1], [0, 0, 1, 1], [], []>} : vector<5x84xf32>, vector<84x80xf32>, vector<5x80xf32> -> vector<5x80xf32>
    %178 = arith.addf %156, %177 : vector<5x80xf32>
    %c2_179 = arith.constant 2 : index
    %c0_180 = arith.constant 0 : index
    %c0_181 = arith.constant 0 : index
    %179 = vector.load %arg8[%c2_179, %c0_180, %c0_181] : memref<5x84x80xf32, #tpu.memory_space<vmem>>, vector<1x84x80xf32>
    %180 = vector.shape_cast %179 : vector<1x84x80xf32> to vector<84x80xf32>
    %cst_182 = arith.constant dense<0.000000e+00> : vector<5x80xf32>
    %181 = tpu.matmul %174, %180, %cst_182 {dimension_numbers = #tpu.dot_dimension_numbers<[1], [0], [0], [1], [0, 0, 1, 1], [], []>} : vector<5x84xf32>, vector<84x80xf32>, vector<5x80xf32> -> vector<5x80xf32>
    %182 = arith.addf %160, %181 : vector<5x80xf32>
    %c7_183 = arith.constant 7 : index
    %c0_184 = arith.constant 0 : index
    %c0_185 = arith.constant 0 : index
    %183 = vector.load %arg6[%c7_183, %c0_184, %c0_185] : memref<10x5x14xf32, #tpu.memory_space<vmem>>, vector<1x5x14xf32>
    %184 = vector.shape_cast %183 : vector<1x5x14xf32> to vector<5x14xf32>
    %cst_186 = arith.constant dense<0.000000e+00> : vector<5x84xf32>
    %185 = tpu.matmul %184, %123, %cst_186 {dimension_numbers = #tpu.dot_dimension_numbers<[1], [0], [0], [1], [0, 0, 1, 1], [], []>} : vector<5x14xf32>, vector<14x84xf32>, vector<5x84xf32> -> vector<5x84xf32>
    %c2_187 = arith.constant 2 : index
    %c0_188 = arith.constant 0 : index
    %c0_189 = arith.constant 0 : index
    %186 = vector.load %arg7[%c2_187, %c0_188, %c0_189] : memref<5x84x80xf32, #tpu.memory_space<vmem>>, vector<1x84x80xf32>
    %187 = vector.shape_cast %186 : vector<1x84x80xf32> to vector<84x80xf32>
    %cst_190 = arith.constant dense<0.000000e+00> : vector<5x80xf32>
    %188 = tpu.matmul %185, %187, %cst_190 {dimension_numbers = #tpu.dot_dimension_numbers<[1], [0], [0], [1], [0, 0, 1, 1], [], []>} : vector<5x84xf32>, vector<84x80xf32>, vector<5x80xf32> -> vector<5x80xf32>
    %189 = arith.addf %167, %188 : vector<5x80xf32>
    %c2_191 = arith.constant 2 : index
    %c0_192 = arith.constant 0 : index
    %c0_193 = arith.constant 0 : index
    %190 = vector.load %arg8[%c2_191, %c0_192, %c0_193] : memref<5x84x80xf32, #tpu.memory_space<vmem>>, vector<1x84x80xf32>
    %191 = vector.shape_cast %190 : vector<1x84x80xf32> to vector<84x80xf32>
    %cst_194 = arith.constant dense<0.000000e+00> : vector<5x80xf32>
    %192 = tpu.matmul %185, %191, %cst_194 {dimension_numbers = #tpu.dot_dimension_numbers<[1], [0], [0], [1], [0, 0, 1, 1], [], []>} : vector<5x84xf32>, vector<84x80xf32>, vector<5x80xf32> -> vector<5x80xf32>
    %193 = arith.addf %171, %192 : vector<5x80xf32>
    %c3_195 = arith.constant 3 : index
    %c0_196 = arith.constant 0 : index
    %c0_197 = arith.constant 0 : index
    %194 = vector.load %arg6[%c3_195, %c0_196, %c0_197] : memref<10x5x14xf32, #tpu.memory_space<vmem>>, vector<1x5x14xf32>
    %195 = vector.shape_cast %194 : vector<1x5x14xf32> to vector<5x14xf32>
    %cst_198 = arith.constant dense<0.000000e+00> : vector<5x84xf32>
    %196 = tpu.matmul %195, %123, %cst_198 {dimension_numbers = #tpu.dot_dimension_numbers<[1], [0], [0], [1], [0, 0, 1, 1], [], []>} : vector<5x14xf32>, vector<14x84xf32>, vector<5x84xf32> -> vector<5x84xf32>
    %c3_199 = arith.constant 3 : index
    %c0_200 = arith.constant 0 : index
    %c0_201 = arith.constant 0 : index
    %197 = vector.load %arg7[%c3_199, %c0_200, %c0_201] : memref<5x84x80xf32, #tpu.memory_space<vmem>>, vector<1x84x80xf32>
    %198 = vector.shape_cast %197 : vector<1x84x80xf32> to vector<84x80xf32>
    %cst_202 = arith.constant dense<0.000000e+00> : vector<5x80xf32>
    %199 = tpu.matmul %196, %198, %cst_202 {dimension_numbers = #tpu.dot_dimension_numbers<[1], [0], [0], [1], [0, 0, 1, 1], [], []>} : vector<5x84xf32>, vector<84x80xf32>, vector<5x80xf32> -> vector<5x80xf32>
    %200 = arith.addf %178, %199 : vector<5x80xf32>
    %c3_203 = arith.constant 3 : index
    %c0_204 = arith.constant 0 : index
    %c0_205 = arith.constant 0 : index
    %201 = vector.load %arg8[%c3_203, %c0_204, %c0_205] : memref<5x84x80xf32, #tpu.memory_space<vmem>>, vector<1x84x80xf32>
    %202 = vector.shape_cast %201 : vector<1x84x80xf32> to vector<84x80xf32>
    %cst_206 = arith.constant dense<0.000000e+00> : vector<5x80xf32>
    %203 = tpu.matmul %196, %202, %cst_206 {dimension_numbers = #tpu.dot_dimension_numbers<[1], [0], [0], [1], [0, 0, 1, 1], [], []>} : vector<5x84xf32>, vector<84x80xf32>, vector<5x80xf32> -> vector<5x80xf32>
    %204 = arith.addf %182, %203 : vector<5x80xf32>
    %c8_207 = arith.constant 8 : index
    %c0_208 = arith.constant 0 : index
    %c0_209 = arith.constant 0 : index
    %205 = vector.load %arg6[%c8_207, %c0_208, %c0_209] : memref<10x5x14xf32, #tpu.memory_space<vmem>>, vector<1x5x14xf32>
    %206 = vector.shape_cast %205 : vector<1x5x14xf32> to vector<5x14xf32>
    %cst_210 = arith.constant dense<0.000000e+00> : vector<5x84xf32>
    %207 = tpu.matmul %206, %123, %cst_210 {dimension_numbers = #tpu.dot_dimension_numbers<[1], [0], [0], [1], [0, 0, 1, 1], [], []>} : vector<5x14xf32>, vector<14x84xf32>, vector<5x84xf32> -> vector<5x84xf32>
    %c3_211 = arith.constant 3 : index
    %c0_212 = arith.constant 0 : index
    %c0_213 = arith.constant 0 : index
    %208 = vector.load %arg7[%c3_211, %c0_212, %c0_213] : memref<5x84x80xf32, #tpu.memory_space<vmem>>, vector<1x84x80xf32>
    %209 = vector.shape_cast %208 : vector<1x84x80xf32> to vector<84x80xf32>
    %cst_214 = arith.constant dense<0.000000e+00> : vector<5x80xf32>
    %210 = tpu.matmul %207, %209, %cst_214 {dimension_numbers = #tpu.dot_dimension_numbers<[1], [0], [0], [1], [0, 0, 1, 1], [], []>} : vector<5x84xf32>, vector<84x80xf32>, vector<5x80xf32> -> vector<5x80xf32>
    %211 = arith.addf %189, %210 : vector<5x80xf32>
    %c3_215 = arith.constant 3 : index
    %c0_216 = arith.constant 0 : index
    %c0_217 = arith.constant 0 : index
    %212 = vector.load %arg8[%c3_215, %c0_216, %c0_217] : memref<5x84x80xf32, #tpu.memory_space<vmem>>, vector<1x84x80xf32>
    %213 = vector.shape_cast %212 : vector<1x84x80xf32> to vector<84x80xf32>
    %cst_218 = arith.constant dense<0.000000e+00> : vector<5x80xf32>
    %214 = tpu.matmul %207, %213, %cst_218 {dimension_numbers = #tpu.dot_dimension_numbers<[1], [0], [0], [1], [0, 0, 1, 1], [], []>} : vector<5x84xf32>, vector<84x80xf32>, vector<5x80xf32> -> vector<5x80xf32>
    %215 = arith.addf %193, %214 : vector<5x80xf32>
    %c4_219 = arith.constant 4 : index
    %c0_220 = arith.constant 0 : index
    %c0_221 = arith.constant 0 : index
    %216 = vector.load %arg6[%c4_219, %c0_220, %c0_221] : memref<10x5x14xf32, #tpu.memory_space<vmem>>, vector<1x5x14xf32>
    %217 = vector.shape_cast %216 : vector<1x5x14xf32> to vector<5x14xf32>
    %cst_222 = arith.constant dense<0.000000e+00> : vector<5x84xf32>
    %218 = tpu.matmul %217, %123, %cst_222 {dimension_numbers = #tpu.dot_dimension_numbers<[1], [0], [0], [1], [0, 0, 1, 1], [], []>} : vector<5x14xf32>, vector<14x84xf32>, vector<5x84xf32> -> vector<5x84xf32>
    %c4_223 = arith.constant 4 : index
    %c0_224 = arith.constant 0 : index
    %c0_225 = arith.constant 0 : index
    %219 = vector.load %arg7[%c4_223, %c0_224, %c0_225] : memref<5x84x80xf32, #tpu.memory_space<vmem>>, vector<1x84x80xf32>
    %220 = vector.shape_cast %219 : vector<1x84x80xf32> to vector<84x80xf32>
    %cst_226 = arith.constant dense<0.000000e+00> : vector<5x80xf32>
    %221 = tpu.matmul %218, %220, %cst_226 {dimension_numbers = #tpu.dot_dimension_numbers<[1], [0], [0], [1], [0, 0, 1, 1], [], []>} : vector<5x84xf32>, vector<84x80xf32>, vector<5x80xf32> -> vector<5x80xf32>
    %222 = arith.addf %200, %221 : vector<5x80xf32>
    %c4_227 = arith.constant 4 : index
    %c0_228 = arith.constant 0 : index
    %c0_229 = arith.constant 0 : index
    %223 = vector.load %arg8[%c4_227, %c0_228, %c0_229] : memref<5x84x80xf32, #tpu.memory_space<vmem>>, vector<1x84x80xf32>
    %224 = vector.shape_cast %223 : vector<1x84x80xf32> to vector<84x80xf32>
    %cst_230 = arith.constant dense<0.000000e+00> : vector<5x80xf32>
    %225 = tpu.matmul %218, %224, %cst_230 {dimension_numbers = #tpu.dot_dimension_numbers<[1], [0], [0], [1], [0, 0, 1, 1], [], []>} : vector<5x84xf32>, vector<84x80xf32>, vector<5x80xf32> -> vector<5x80xf32>
    %226 = arith.addf %204, %225 : vector<5x80xf32>
    %c9_231 = arith.constant 9 : index
    %c0_232 = arith.constant 0 : index
    %c0_233 = arith.constant 0 : index
    %227 = vector.load %arg6[%c9_231, %c0_232, %c0_233] : memref<10x5x14xf32, #tpu.memory_space<vmem>>, vector<1x5x14xf32>
    %228 = vector.shape_cast %227 : vector<1x5x14xf32> to vector<5x14xf32>
    %cst_234 = arith.constant dense<0.000000e+00> : vector<5x84xf32>
    %229 = tpu.matmul %228, %123, %cst_234 {dimension_numbers = #tpu.dot_dimension_numbers<[1], [0], [0], [1], [0, 0, 1, 1], [], []>} : vector<5x14xf32>, vector<14x84xf32>, vector<5x84xf32> -> vector<5x84xf32>
    %c4_235 = arith.constant 4 : index
    %c0_236 = arith.constant 0 : index
    %c0_237 = arith.constant 0 : index
    %230 = vector.load %arg7[%c4_235, %c0_236, %c0_237] : memref<5x84x80xf32, #tpu.memory_space<vmem>>, vector<1x84x80xf32>
    %231 = vector.shape_cast %230 : vector<1x84x80xf32> to vector<84x80xf32>
    %cst_238 = arith.constant dense<0.000000e+00> : vector<5x80xf32>
    %232 = tpu.matmul %229, %231, %cst_238 {dimension_numbers = #tpu.dot_dimension_numbers<[1], [0], [0], [1], [0, 0, 1, 1], [], []>} : vector<5x84xf32>, vector<84x80xf32>, vector<5x80xf32> -> vector<5x80xf32>
    %233 = arith.addf %211, %232 : vector<5x80xf32>
    %c4_239 = arith.constant 4 : index
    %c0_240 = arith.constant 0 : index
    %c0_241 = arith.constant 0 : index
    %234 = vector.load %arg8[%c4_239, %c0_240, %c0_241] : memref<5x84x80xf32, #tpu.memory_space<vmem>>, vector<1x84x80xf32>
    %235 = vector.shape_cast %234 : vector<1x84x80xf32> to vector<84x80xf32>
    %cst_242 = arith.constant dense<0.000000e+00> : vector<5x80xf32>
    %236 = tpu.matmul %229, %235, %cst_242 {dimension_numbers = #tpu.dot_dimension_numbers<[1], [0], [0], [1], [0, 0, 1, 1], [], []>} : vector<5x84xf32>, vector<84x80xf32>, vector<5x80xf32> -> vector<5x80xf32>
    %237 = arith.addf %215, %236 : vector<5x80xf32>
    %238 = arith.maximumf %222, %226 : vector<5x80xf32>
    %239 = arith.maximumf %233, %237 : vector<5x80xf32>
    %240 = arith.maximumf %238, %239 : vector<5x80xf32>
    %c0_243 = arith.constant 0 : index
    %c0_244 = arith.constant 0 : index
    %241 = vector.load %arg9[%c0_243, %c0_244] : memref<1x80xf32, #tpu.memory_space<vmem>>, vector<1x80xf32>
    %242 = vector.broadcast %241 : vector<1x80xf32> to vector<5x80xf32>
    %243 = arith.addf %240, %242 : vector<5x80xf32>
    %cst_245 = arith.constant 0.000000e+00 : f32
    %244 = vector.broadcast %cst_245 : f32 to vector<5x80xf32>
    %245 = arith.maximumf %243, %244 : vector<5x80xf32>
    %c0_246 = arith.constant 0 : index
    %c0_247 = arith.constant 0 : index
    %246 = vector.load %arg11[%c0_246, %c0_247] : memref<1x120xf32, #tpu.memory_space<vmem>>, vector<1x120xf32>
    %247 = vector.extract_strided_slice %245 {offsets = [0, 0], sizes = [1, 80], strides = [1, 1]} : vector<5x80xf32> to vector<1x80xf32>
    %c0_248 = arith.constant 0 : index
    %c0_249 = arith.constant 0 : index
    %c0_250 = arith.constant 0 : index
    %248 = vector.load %arg10[%c0_248, %c0_249, %c0_250] : memref<5x80x120xf32, #tpu.memory_space<vmem>>, vector<1x80x120xf32>
    %249 = vector.shape_cast %248 : vector<1x80x120xf32> to vector<80x120xf32>
    %cst_251 = arith.constant dense<0.000000e+00> : vector<1x120xf32>
    %250 = tpu.matmul %247, %249, %cst_251 {dimension_numbers = #tpu.dot_dimension_numbers<[1], [0], [0], [1], [0, 0, 1, 1], [], []>} : vector<1x80xf32>, vector<80x120xf32>, vector<1x120xf32> -> vector<1x120xf32>
    %251 = arith.addf %246, %250 : vector<1x120xf32>
    %252 = vector.extract_strided_slice %245 {offsets = [1, 0], sizes = [1, 80], strides = [1, 1]} : vector<5x80xf32> to vector<1x80xf32>
    %c1_252 = arith.constant 1 : index
    %c0_253 = arith.constant 0 : index
    %c0_254 = arith.constant 0 : index
    %253 = vector.load %arg10[%c1_252, %c0_253, %c0_254] : memref<5x80x120xf32, #tpu.memory_space<vmem>>, vector<1x80x120xf32>
    %254 = vector.shape_cast %253 : vector<1x80x120xf32> to vector<80x120xf32>
    %cst_255 = arith.constant dense<0.000000e+00> : vector<1x120xf32>
    %255 = tpu.matmul %252, %254, %cst_255 {dimension_numbers = #tpu.dot_dimension_numbers<[1], [0], [0], [1], [0, 0, 1, 1], [], []>} : vector<1x80xf32>, vector<80x120xf32>, vector<1x120xf32> -> vector<1x120xf32>
    %256 = arith.addf %251, %255 : vector<1x120xf32>
    %257 = vector.extract_strided_slice %245 {offsets = [2, 0], sizes = [1, 80], strides = [1, 1]} : vector<5x80xf32> to vector<1x80xf32>
    %c2_256 = arith.constant 2 : index
    %c0_257 = arith.constant 0 : index
    %c0_258 = arith.constant 0 : index
    %258 = vector.load %arg10[%c2_256, %c0_257, %c0_258] : memref<5x80x120xf32, #tpu.memory_space<vmem>>, vector<1x80x120xf32>
    %259 = vector.shape_cast %258 : vector<1x80x120xf32> to vector<80x120xf32>
    %cst_259 = arith.constant dense<0.000000e+00> : vector<1x120xf32>
    %260 = tpu.matmul %257, %259, %cst_259 {dimension_numbers = #tpu.dot_dimension_numbers<[1], [0], [0], [1], [0, 0, 1, 1], [], []>} : vector<1x80xf32>, vector<80x120xf32>, vector<1x120xf32> -> vector<1x120xf32>
    %261 = arith.addf %256, %260 : vector<1x120xf32>
    %262 = vector.extract_strided_slice %245 {offsets = [3, 0], sizes = [1, 80], strides = [1, 1]} : vector<5x80xf32> to vector<1x80xf32>
    %c3_260 = arith.constant 3 : index
    %c0_261 = arith.constant 0 : index
    %c0_262 = arith.constant 0 : index
    %263 = vector.load %arg10[%c3_260, %c0_261, %c0_262] : memref<5x80x120xf32, #tpu.memory_space<vmem>>, vector<1x80x120xf32>
    %264 = vector.shape_cast %263 : vector<1x80x120xf32> to vector<80x120xf32>
    %cst_263 = arith.constant dense<0.000000e+00> : vector<1x120xf32>
    %265 = tpu.matmul %262, %264, %cst_263 {dimension_numbers = #tpu.dot_dimension_numbers<[1], [0], [0], [1], [0, 0, 1, 1], [], []>} : vector<1x80xf32>, vector<80x120xf32>, vector<1x120xf32> -> vector<1x120xf32>
    %266 = arith.addf %261, %265 : vector<1x120xf32>
    %267 = vector.extract_strided_slice %245 {offsets = [4, 0], sizes = [1, 80], strides = [1, 1]} : vector<5x80xf32> to vector<1x80xf32>
    %c4_264 = arith.constant 4 : index
    %c0_265 = arith.constant 0 : index
    %c0_266 = arith.constant 0 : index
    %268 = vector.load %arg10[%c4_264, %c0_265, %c0_266] : memref<5x80x120xf32, #tpu.memory_space<vmem>>, vector<1x80x120xf32>
    %269 = vector.shape_cast %268 : vector<1x80x120xf32> to vector<80x120xf32>
    %cst_267 = arith.constant dense<0.000000e+00> : vector<1x120xf32>
    %270 = tpu.matmul %267, %269, %cst_267 {dimension_numbers = #tpu.dot_dimension_numbers<[1], [0], [0], [1], [0, 0, 1, 1], [], []>} : vector<1x80xf32>, vector<80x120xf32>, vector<1x120xf32> -> vector<1x120xf32>
    %271 = arith.addf %266, %270 : vector<1x120xf32>
    %cst_268 = arith.constant 0.000000e+00 : f32
    %272 = vector.broadcast %cst_268 : f32 to vector<1x120xf32>
    %273 = arith.maximumf %271, %272 : vector<1x120xf32>
    %c0_269 = arith.constant 0 : index
    %c0_270 = arith.constant 0 : index
    %274 = vector.load %arg12[%c0_269, %c0_270] : memref<120x84xf32, #tpu.memory_space<vmem>>, vector<120x84xf32>
    %cst_271 = arith.constant dense<0.000000e+00> : vector<1x84xf32>
    %275 = tpu.matmul %273, %274, %cst_271 {dimension_numbers = #tpu.dot_dimension_numbers<[1], [0], [0], [1], [0, 0, 1, 1], [], []>} : vector<1x120xf32>, vector<120x84xf32>, vector<1x84xf32> -> vector<1x84xf32>
    %c0_272 = arith.constant 0 : index
    %c0_273 = arith.constant 0 : index
    %276 = vector.load %arg13[%c0_272, %c0_273] : memref<1x84xf32, #tpu.memory_space<vmem>>, vector<1x84xf32>
    %277 = arith.addf %275, %276 : vector<1x84xf32>
    %cst_274 = arith.constant 0.000000e+00 : f32
    %278 = vector.broadcast %cst_274 : f32 to vector<1x84xf32>
    %279 = arith.maximumf %277, %278 : vector<1x84xf32>
    %c0_275 = arith.constant 0 : index
    %c0_276 = arith.constant 0 : index
    %280 = vector.load %arg14[%c0_275, %c0_276] : memref<84x10xf32, #tpu.memory_space<vmem>>, vector<84x10xf32>
    %cst_277 = arith.constant dense<0.000000e+00> : vector<1x10xf32>
    %281 = tpu.matmul %279, %280, %cst_277 {dimension_numbers = #tpu.dot_dimension_numbers<[1], [0], [0], [1], [0, 0, 1, 1], [], []>} : vector<1x84xf32>, vector<84x10xf32>, vector<1x10xf32> -> vector<1x10xf32>
    %c0_278 = arith.constant 0 : index
    %c0_279 = arith.constant 0 : index
    %282 = vector.load %arg15[%c0_278, %c0_279] : memref<1x10xf32, #tpu.memory_space<vmem>>, vector<1x10xf32>
    %283 = arith.addf %281, %282 : vector<1x10xf32>
    %c0_280 = arith.constant 0 : index
    %c0_281 = arith.constant 0 : index
    %c0_282 = arith.constant 0 : index
    %284 = vector.load %arg16[%c0_280, %c0_281, %c0_282] : memref<1x1x10xf32, #tpu.memory_space<vmem>>, vector<1x1x10xf32>
    %285 = vector.shape_cast %284 : vector<1x1x10xf32> to vector<1x10xf32>
    %286 = vector.shape_cast %283 : vector<1x10xf32> to vector<1x1x10xf32>
    tpu.vector_store %arg16[%c0_280, %c0_281, %c0_282], %286 {strides = array<i32>} : memref<1x1x10xf32, #tpu.memory_space<vmem>>, vector<1x1x10xf32>,
    return
  }
  func.func @transform_0(%arg0: i32) -> (i32, i32, i32) {
    %c0_i32 = arith.constant 0 : i32
    %c0_i32_0 = arith.constant 0 : i32
    %c0_i32_1 = arith.constant 0 : i32
    return %arg0, %c0_i32, %c0_i32_0 : i32, i32, i32
  }
  func.func @transform_1(%arg0: i32) -> (i32, i32, i32) {
    %c0_i32 = arith.constant 0 : i32
    %c0_i32_0 = arith.constant 0 : i32
    %c0_i32_1 = arith.constant 0 : i32
    %c0_i32_2 = arith.constant 0 : i32
    return %c0_i32, %c0_i32_0, %c0_i32_1 : i32, i32, i32
  }
  func.func @transform_2(%arg0: i32) -> (i32, i32, i32) {
    %c0_i32 = arith.constant 0 : i32
    %c0_i32_0 = arith.constant 0 : i32
    %c0_i32_1 = arith.constant 0 : i32
    %c0_i32_2 = arith.constant 0 : i32
    return %c0_i32, %c0_i32_0, %c0_i32_1 : i32, i32, i32
  }
  func.func @transform_3(%arg0: i32) -> (i32, i32, i32) {
    %c0_i32 = arith.constant 0 : i32
    %c0_i32_0 = arith.constant 0 : i32
    %c0_i32_1 = arith.constant 0 : i32
    %c0_i32_2 = arith.constant 0 : i32
    return %c0_i32, %c0_i32_0, %c0_i32_1 : i32, i32, i32
  }
  func.func @transform_4(%arg0: i32) -> (i32, i32) {
    %c0_i32 = arith.constant 0 : i32
    %c0_i32_0 = arith.constant 0 : i32
    %c0_i32_1 = arith.constant 0 : i32
    return %c0_i32, %c0_i32_0 : i32, i32
  }
  func.func @transform_5(%arg0: i32) -> (i32, i32, i32) {
    %c0_i32 = arith.constant 0 : i32
    %c0_i32_0 = arith.constant 0 : i32
    %c0_i32_1 = arith.constant 0 : i32
    %c0_i32_2 = arith.constant 0 : i32
    return %c0_i32, %c0_i32_0, %c0_i32_1 : i32, i32, i32
  }
  func.func @transform_6(%arg0: i32) -> (i32, i32, i32) {
    %c0_i32 = arith.constant 0 : i32
    %c0_i32_0 = arith.constant 0 : i32
    %c0_i32_1 = arith.constant 0 : i32
    %c0_i32_2 = arith.constant 0 : i32
    return %c0_i32, %c0_i32_0, %c0_i32_1 : i32, i32, i32
  }
  func.func @transform_7(%arg0: i32) -> (i32, i32, i32) {
    %c0_i32 = arith.constant 0 : i32
    %c0_i32_0 = arith.constant 0 : i32
    %c0_i32_1 = arith.constant 0 : i32
    %c0_i32_2 = arith.constant 0 : i32
    return %c0_i32, %c0_i32_0, %c0_i32_1 : i32, i32, i32
  }
  func.func @transform_8(%arg0: i32) -> (i32, i32) {
    %c0_i32 = arith.constant 0 : i32
    %c0_i32_0 = arith.constant 0 : i32
    %c0_i32_1 = arith.constant 0 : i32
    return %c0_i32, %c0_i32_0 : i32, i32
  }
  func.func @transform_9(%arg0: i32) -> (i32, i32, i32) {
    %c0_i32 = arith.constant 0 : i32
    %c0_i32_0 = arith.constant 0 : i32
    %c0_i32_1 = arith.constant 0 : i32
    %c0_i32_2 = arith.constant 0 : i32
    return %c0_i32, %c0_i32_0, %c0_i32_1 : i32, i32, i32
  }
  func.func @transform_10(%arg0: i32) -> (i32, i32) {
    %c0_i32 = arith.constant 0 : i32
    %c0_i32_0 = arith.constant 0 : i32
    %c0_i32_1 = arith.constant 0 : i32
    return %c0_i32, %c0_i32_0 : i32, i32
  }
  func.func @transform_11(%arg0: i32) -> (i32, i32) {
    %c0_i32 = arith.constant 0 : i32
    %c0_i32_0 = arith.constant 0 : i32
    %c0_i32_1 = arith.constant 0 : i32
    return %c0_i32, %c0_i32_0 : i32, i32
  }
  func.func @transform_12(%arg0: i32) -> (i32, i32) {
    %c0_i32 = arith.constant 0 : i32
    %c0_i32_0 = arith.constant 0 : i32
    %c0_i32_1 = arith.constant 0 : i32
    return %c0_i32, %c0_i32_0 : i32, i32
  }
  func.func @transform_13(%arg0: i32) -> (i32, i32) {
    %c0_i32 = arith.constant 0 : i32
    %c0_i32_0 = arith.constant 0 : i32
    %c0_i32_1 = arith.constant 0 : i32
    return %c0_i32, %c0_i32_0 : i32, i32
  }
  func.func @transform_14(%arg0: i32) -> (i32, i32) {
    %c0_i32 = arith.constant 0 : i32
    %c0_i32_0 = arith.constant 0 : i32
    %c0_i32_1 = arith.constant 0 : i32
    return %c0_i32, %c0_i32_0 : i32, i32
  }
  func.func @transform_15(%arg0: i32) -> (i32, i32, i32) {
    %c0_i32 = arith.constant 0 : i32
    %c0_i32_0 = arith.constant 0 : i32
    %c0_i32_1 = arith.constant 0 : i32
    return %arg0, %c0_i32, %c0_i32_0 : i32, i32, i32
  }
}

</mosaic_0001>

<bundles_post_ra>
// kernel: cifar_forward_fused.1
= control target key start
LH: loop header
LB: loop body
LE: loop exit
PB: predicated region body
PF: predicated region fallthrough
CT: control target
= control target key end

     0   :  { %s11772_s0 = inlined_call_operand.vmem [shape: f32[2,32,96], index: 0, kind: input, shape index: {}]   ;;  %s11773_s1 = inlined_call_operand.vmem [shape: f32[10,14,32], index: 1, kind: input, shape index: {}]   ;;  %s11774_s2 = inlined_call_operand.vmem [shape: f32[5,96,84], index: 2, kind: input, shape index: {}]   ;;  %s11775_s3 = inlined_call_operand.vmem [shape: f32[5,96,84], index: 3, kind: input, shape index: {}]   ;;  %s11776_s4 = inlined_call_operand.vmem [shape: f32[1,84], index: 4, kind: input, shape index: {}]   ;;  %s11777_s5 = inlined_call_operand.vmem [shape: f32[10,5,14], index: 5, kind: input, shape index: {}]   ;;  %s11778_s6 = inlined_call_operand.vmem [shape: f32[5,84,80], index: 6, kind: input, shape index: {}]   ;;  %s11779_s7 = inlined_call_operand.vmem [shape: f32[5,84,80], index: 7, kind: input, shape index: {}]   ;;  %s11780_s8 = inlined_call_operand.vmem [shape: f32[1,80], index: 8, kind: input, shape index: {}]   ;;  %s11781_s9 = inlined_call_operand.vmem [shape: f32[5,80,120], index: 9, kind: input, shape index: {}]   ;;  %s11782_s10 = inlined_call_operand.vmem [shape: f32[1,120], index: 10, kind: input, shape index: {}]   ;;  %s11783_s11 = inlined_call_operand.vmem [shape: f32[120,84], index: 11, kind: input, shape index: {}]   ;;  %s11784_s12 = inlined_call_operand.vmem [shape: f32[1,84], index: 12, kind: input, shape index: {}]   ;;  %s11785_s13 = inlined_call_operand.vmem [shape: f32[84,10], index: 13, kind: input, shape index: {}]   ;;  %s11786_s14 = inlined_call_operand.vmem [shape: f32[1,10], index: 14, kind: input, shape index: {}]   ;;  %s11787_s15 = inlined_call_operand.hbm [shape: f32[2,1,10], index: 15, kind: output, shape index: {}]  }
   0x1   :  { %11791 = sst [smem:[#allocation8_spill]] %s11772_s0 }
   0x2   :  { %11792 = sst [smem:[#allocation9_spill]] %s11773_s1 }
   0x3   :  { %20 = vsyncpa [#allocation3], 0 }
   0x4   :  { %22 = vsyncpa [#allocation3 + $0x1], 0  ;;  %s9853_s18 = smov 0   ;;  %s9855_s19 = smov 0  }
   0x5   :  { %s9857_s20 = smov 0   ;;  %s9859_s21 = smov 0  }
   0x6 LB: > { %11793 = sst [smem:[#allocation5_spill]] %s9762_s20  ;;  %s9874_s22 = sadd.s32 4294967295, %s9766_s21   ;;  %s9766_s21 = sphi %s9859_s21, %s11802_s21   ;;  %s9762_s20 = sphi %s9857_s20, %s11804_s20   ;;  %s9758_s19 = sphi %s9855_s19, %s11806_s19   ;;  %s9754_s18 = sphi %s9853_s18, %s11805_s18  }
   0x7   : > { %s6100_s23 = sadd.s32 4294967294, %s9766_s21   ;;  %s9878_s24 = sadd.s32 1, %s9766_s21  }
   0x8   : > { %11794 = sst [smem:[#allocation6_spill]] %s9878_s24  ;;  %s355_s25 = sadd.s32 1, %s9762_s20 }
   0x9   : > { %s352_s26 = ssub.s32 %s9766_s21, %s9878_s24  ;;  %p365_p0 = scmp.ne.s32.totalorder %s9762_s20, %s9758_s19 }
   0xa   : > { %p353_p1 = scmp.eq.s32.totalorder %s352_s26, 0  ;;  %p366_p2 = scmp.eq.s32.totalorder %s9874_s22, 1 }
   0xb   : > { %p371_p3 = scmp.ne.s32.totalorder %s9758_s19, %s9754_s18  ;;  %p372_p4 = scmp.eq.s32.totalorder %s6100_s23, 1 }
   0xc   : > { %s9889_s27 = scalar_select %p353_p1, %s9762_s20, %s355_s25  }
   0xd   : > { %p9891_p5 = por %p366_p2, %p365_p0  ;;  %p9895_p6 = por %p372_p4, %p371_p3 }
   0xe   : > { %11795 = sst [smem:[#allocation7_spill]] %s9889_s27  ;;  %p6103_p7 = scmp.ge.s32.totalorder %s9766_s21, 1 }
   0xf   : > { %p440_p8 = scmp.lt.s32.totalorder %s9766_s21, 3 }
  0x11   : > { %p441_p9 = pnand %p6103_p7, %p440_p8 }
  0x12   : > { %p487_p10 = scmp.lt.s32.totalorder (!%p441_p9), %s9874_s22, 1  ;;  %s11798_s1 = sld [smem:[#allocation9_spill]] (!%p441_p9)  ;;  %vm498_vm0 = vcmask (!%p441_p9), 261120   ;;  %v6116_v8 = vld [vmem:[%s11774_s2 + $0x60] sm:$0xff] (!%p441_p9)  ;;  %v6117_v9 = vld [vmem:[%s11774_s2 + $0x68] sm:$0xff] (!%p441_p9)  ;;  %v6118_v11 = vld [vmem:[%s11774_s2 + $0x70] sm:$0xff] (!%p441_p9) }
  0x13   : > { %444 = sbr.rel (%p441_p9) target bundleno = 4849 (0x12f1), region = 80  ;;  %s11799_s0 = sld [smem:[#allocation8_spill]] (!%p441_p9)  ;;  %v9930_v10 = vpack.c.bf16 (!%p441_p9), %v6117_v9, %v6116_v8  ;;  %v6119_v12 = vld [vmem:[%s11774_s2 + $0x78] sm:$0xff] (!%p441_p9)  ;;  %v592_v16 = vld [vmem:[%s11775_s3] sm:$0xff] (!%p441_p9)  ;;  %v593_v17 = vld [vmem:[%s11775_s3 + $0x8] sm:$0xff] (!%p441_p9)  ;;  %vm785_vm1 = vcmask (!%p441_p9), 785408  }
  0x14   : > { %v9957_v18 = vpack.c.bf16 (!%p441_p9), %v6119_v12, %v6118_v11  ;;  %v6120_v19 = vld [vmem:[%s11774_s2 + $0x80] sm:$0xff] (!%p441_p9)  ;;  %v6121_v20 = vld [vmem:[%s11774_s2 + $0x88] sm:$0xff] (!%p441_p9)  ;;  %v9970_v21 = vpack.c.bf16 (!%p441_p9), %v593_v17, %v592_v16  ;;  %v594_v22 = vld [vmem:[%s11775_s3 + $0x10] sm:$0xff] (!%p441_p9)  ;;  %vm9769_vm2 = vmmov (!%p441_p9), 0   ;;  %vm3071_vm3 = vcmask (!%p441_p9), 1045504   ;;  %s485_s30 = sand.u32 (!%p441_p9), 1, %s9758_s19  }
  0x15   : > { %v595_v23 = vld [vmem:[%s11775_s3 + $0x18] sm:$0xff] (!%p441_p9)  ;;  %v9980_v24 = vpack.c.bf16 (!%p441_p9), %v6121_v20, %v6120_v19  ;;  %v6122_v25 = vld [vmem:[%s11774_s2 + $0x90] sm:$0xff] (!%p441_p9)  ;;  %v596_v29 = vld [vmem:[%s11775_s3 + $0x20] sm:$0xff] (!%p441_p9)  ;;  %vm9771_vm4 = vmmov (!%p441_p9), 1   ;;  %vm3067_vm6 = vcmask (!%p441_p9), 113664   ;;  %vm3333_vm7 = vcmask (!%p441_p9), 1043456  }
  0x16   : > { %v6123_v26 = vld [vmem:[%s11774_s2 + $0x98] sm:$0xff] (!%p441_p9)  ;;  %v9993_v28 = vpack.c.bf16 (!%p441_p9), %v595_v23, %v594_v22  ;;  %v597_v30 = vld [vmem:[%s11775_s3 + $0x28] sm:$0xff] (!%p441_p9)  ;;  %v598_v33 = vld [vmem:[%s11775_s3 + $0x30] sm:$0xff] (!%p441_p9)  ;;  %vm3329_vm8 = vcmask (!%p441_p9), 687104   ;;  %vm5435_vm9 = vcmask (!%p441_p9), 654336   ;;  %vm5867_vm10 = vcmask (!%p441_p9), 982016  }
  0x17   : > { %v10003_v31 = vpack.c.bf16 (!%p441_p9), %v6123_v26, %v6122_v25  ;;  %v10008_v32 = vpack.c.bf16 (!%p441_p9), %v597_v30, %v596_v29  ;;  %v599_v34 = vld [vmem:[%s11775_s3 + $0x38] sm:$0xff] (!%p441_p9)  ;;  %v600_v36 = vld [vmem:[%s11775_s3 + $0x40] sm:$0xff] (!%p441_p9)  ;;  %v601_v37 = vld [vmem:[%s11775_s3 + $0x48] sm:$0xff] (!%p441_p9)  ;;  %s6487_s25 = sshll.u32 (!%p441_p9), %s9874_s22, 4  ;;  %vm6030_vm11 = vcmask (!%p441_p9), 73728  }
  0x18   : > { %v496_v0 = vld [vmem:[%s11798_s1] sm:$0xff] (!%p441_p9)  ;;  %v6108_v1 = vld [vmem:[%s11798_s1 + $0x50] sm:$0xff] (!%p441_p9)  ;;  %v497_v13 = vld [vmem:[%s11798_s1 + $0x8] sm:$0x3f] (!%p441_p9)  ;;  %v10020_v35 = vpack.c.bf16 (!%p441_p9), %v599_v34, %v598_v33  ;;  %v10031_v38 = vpack.c.bf16 (!%p441_p9), %v601_v37, %v600_v36 }
  0x19   : > { %7192 = vmatprep.mubr.msk.f32.mxu0 (!%p441_p9), %vm498_vm0, %v496_v0  ;;  %7203 = vmatprep.mubr.msk.f32.mxu1 (!%p441_p9), %vm498_vm0, %v6108_v1  ;;  %v6109_v14 = vld [vmem:[%s11798_s1 + $0x58] sm:$0x3f] (!%p441_p9)  ;;  %v6112_v15 = vld [vmem:[%s11798_s1 + $0x10] sm:$0xff] (!%p441_p9)  ;;  %v6124_v42 = vld [vmem:[%s11774_s2 + $0xa0] sm:$0xff] (!%p441_p9) }
  0x1a   : > { %s488_s17 = scalar_select %p487_p10, %s9874_s22, 1  ;;  %v6113_v27 = vld [vmem:[%s11798_s1 + $0x18] sm:$0x3f]  ;;  %v602_v39 = vld [vmem:[%s11775_s3 + $0x50] sm:$0xff]  ;;  %v6125_v43 = vld [vmem:[%s11774_s2 + $0xa8] sm:$0xff] }
  0x1b   : > { %v603_v40 = vld [vmem:[%s11775_s3 + $0x58] sm:$0xff]  ;;  %v8617_v44 = vpack.c.bf16 %v6125_v43, %v6124_v42  ;;  %v6126_v45 = vld [vmem:[%s11774_s2 + $0xb0] sm:$0xff]  ;;  %v580_v48 = vld [vmem:[%s11774_s2] sm:$0xff]  ;;  %s9772_s22 = smov [#allocation2]  }
  0x1c   : > { %s6490_s26 = sshll.u32 %s488_s17, 5  ;;  %v10041_v41 = vpack.c.bf16 %v603_v40, %v602_v39  ;;  %v6127_v46 = vld [vmem:[%s11774_s2 + $0xb8] sm:$0xff]  ;;  %v581_v49 = vld [vmem:[%s11774_s2 + $0x8] sm:$0xff]  ;;  %v582_v55 = vld [vmem:[%s11774_s2 + $0x10] sm:$0xff]  ;;  %s11730_s17 = scalar_lea.hbm %s11787_s15, %s6487_s25 }
  0x1d   : > { %s491_s24 = scalar_lea.vmem %s11799_s0, %s6490_s26  ;;  %v8621_v47 = vpack.c.bf16 %v6127_v46, %v6126_v45  ;;  %v10065_v50 = vpack.c.bf16 %v581_v49, %v580_v48  ;;  %v583_v56 = vld [vmem:[%s11774_s2 + $0x18] sm:$0xff]  ;;  %v584_v60 = vld [vmem:[%s11774_s2 + $0x20] sm:$0xff]  ;;  %v585_v61 = vld [vmem:[%s11774_s2 + $0x28] sm:$0xff]  ;;  %s486_s0 = scalar_lea.vmem [#allocation2], %s485_s30 }
  0x1e   : > { %v492_v2 = vld [vmem:[%s491_s24] sm:$0xff]  ;;  %v493_v3 = vld [vmem:[%s491_s24 + $0x8] sm:$0xff]  ;;  %v494_v4 = vld [vmem:[%s491_s24 + $0x10] sm:$0xff]  ;;  %v10085_v59 = vpack.c.bf16 %v583_v56, %v582_v55  ;;  %v10100_v62 = vpack.c.bf16 %v585_v61, %v584_v60  ;;  %s6045_s20 = sshll.u32 %s486_s0, 4  ;;  %s6033_s26 = scalar_lea.sflag [#allocation3], %s485_s30  ;;  %s11732_s20 = int_to_ptr.vmem [resolvable:$true] %s6045_s20 }
  0x1f   : > { %v9914_v5 = vpack.c.bf16 %v493_v3, %v492_v2  ;;  %v495_v6 = vld [vmem:[%s491_s24 + $0x18] sm:$0xff]  ;;  %v586_v63 = vld [vmem:[%s11774_s2 + $0x30] sm:$0xff]  ;;  %v588_v2 = vld [vmem:[%s11774_s2 + $0x40] sm:$0xff]  ;;  %s9704_s16 = scalar_lea.vmem %s11732_s20, 16  ;;  %s9708_s23 = sshll.u32 %s9772_s22, 4  ;;  %s9709_s23 = int_to_ptr.vmem [resolvable:$false] %s9708_s23 }
  0x20   : > { %v9916_v7 = vpack.c.bf16 %v495_v6, %v494_v4  ;;  %v587_v0 = vld [vmem:[%s11774_s2 + $0x38] sm:$0xff]  ;;  %v589_v3 = vld [vmem:[%s11774_s2 + $0x48] sm:$0xff]  ;;  %v590_v6 = vld [vmem:[%s11774_s2 + $0x50] sm:$0xff]  ;;  %p9705_p11 = scmp.ne.s32.totalorder %s11732_s20, %s9704_s16  ;;  %p9711_p0 = scmp.lt.s32.totalorder %s11732_s20, %s9709_s23 }
  0x21   : > { %8578 = vmatprep.subr.bf16.mxu0 %v9914_v5  ;;  %8586 = vmatprep.subr.bf16.mxu1 %v9914_v5  ;;  %v10112_v1 = vpack.c.bf16 %v587_v0, %v586_v63  ;;  %v10123_v4 = vpack.c.bf16 %v589_v3, %v588_v2  ;;  %v591_v8 = vld [vmem:[%s11774_s2 + $0x58] sm:$0xff]  ;;  %v6133_v11 = vld [vmem:[%s11775_s3 + $0x68] sm:$0xff]  ;;  %v6136_v16 = vld [vmem:[%s11775_s3 + $0x80] sm:$0xff] }
  0x22   : > { %8580 = vmatpush3.bf16.msra.mxu0 %v9914_v5  ;;  %8588 = vmatpush3.bf16.msra.mxu1 %v9914_v5  ;;  %v10133_v9 = vpack.c.bf16 %v591_v8, %v590_v6  ;;  %v6137_v17 = vld [vmem:[%s11775_s3 + $0x88] sm:$0xff]  ;;  %v6138_v19 = vld [vmem:[%s11775_s3 + $0x90] sm:$0xff]  ;;  %v6139_v20 = vld [vmem:[%s11775_s3 + $0x98] sm:$0xff]  ;;  %p9706_p12 = pnand %p9705_p11, %p9891_p5 }
  0x23   : > { %8582 = vmatprep.subr.bf16.mxu0 %v9916_v7  ;;  %8590 = vmatprep.subr.bf16.mxu1 %v9916_v7  ;;  %v8661_v22 = vpack.c.bf16 %v6139_v20, %v6138_v19  ;;  %v6140_v23 = vld [vmem:[%s11775_s3 + $0xa0] sm:$0xff]  ;;  %v6142_v26 = vld [vmem:[%s11775_s3 + $0xb0] sm:$0xff]  ;;  %v6167_v39 = vld [vmem:[%s11774_s2 + $0xd8] sm:$0xff] }
  0x24   : > { %v6148_v30 = vld [vmem:[%s11798_s1 + $0x60] sm:$0xff]  ;;  %v6179_v42 = vld [vmem:[%s11775_s3 + $0xc8] sm:$0xff]  ;;  %v6180_v46 = vld [vmem:[%s11775_s3 + $0xd0] sm:$0xff]  ;;  %p9707_p13 = pneg %p9706_p12 }
  0x25   : > { %v6178_v40 = vld [vmem:[%s11775_s3 + $0xc0] sm:$0xff]  ;;  %v6170_v49 = vld [vmem:[%s11774_s2 + $0xf0] sm:$0xff]  ;;  %v6185_v60 = vld [vmem:[%s11775_s3 + $0xf8] sm:$0xff] }
  0x26   : > { %8584 = vmatpush3.bf16.msra.mxu0 %v9916_v7  ;;  %8592 = vmatpush3.bf16.msra.mxu1 %v9916_v7  ;;  %v10267_v45 = vpack.c.bf16 %v6179_v42, %v6178_v40  ;;  %v6172_v56 = vld [vmem:[%s11774_s2 + $0x100] sm:$0xff]  ;;  %v6175_v63 = vld [vmem:[%s11774_s2 + $0x118] sm:$0xff]  ;;  %v6187_v2 = vld [vmem:[%s11775_s3 + $0x108] sm:$0xff] }
  0x27   : > { %8594 = vmatprep.subr.bf16.mxu0 %v9914_v5  ;;  %8602 = vmatprep.subr.bf16.mxu1 %v9930_v10  ;;  %v6188_v6 = vld [vmem:[%s11775_s3 + $0x110] sm:$0xff]  ;;  %v6189_v8 = vld [vmem:[%s11775_s3 + $0x118] sm:$0xff]  ;;  %v6212_v40 = vld [vmem:[%s11774_s2 + $0x160] sm:$0xff] }
  0x28   : > { %v6213_v42 = vld [vmem:[%s11774_s2 + $0x168] sm:$0xff]  ;;  %vm10643_vm5 = vmpackc.low %vm3071_vm3, %vm9771_vm4 }
  0x29   : > { %7193 = vmatmul.mubr.msk.f32.vlgmr.msra.gmra.mrb[0].mxu0 %vm498_vm0, %v497_v13  ;;  %7204 = vmatmul.mubr.msk.f32.vlgmr.msra.gmra.mrb[0].mxu1 %vm498_vm0, %v6109_v14  ;;  %v6134_v13 = vld [vmem:[%s11775_s3 + $0x70] sm:$0xff]  ;;  %v6135_v14 = vld [vmem:[%s11775_s3 + $0x78] sm:$0xff] }
  0x2a   : > { %8596 = vmatpush3.bf16.msra.mxu0 %v9914_v5  ;;  %7214 = vmatprep.mubr.msk.f32.mxu0 %vm498_vm0, %v6112_v15  ;;  %v8653_v15 = vpack.c.bf16 %v6135_v14, %v6134_v13  ;;  %v6193_v13 = vld [vmem:[%s11798_s1 + $0x78] sm:$0x3f]  ;;  %v6204_v14 = vld [vmem:[%s11774_s2 + $0x120] sm:$0xff] }
  0x2b   : > { %8598 = vmatprep.subr.bf16.mxu0 %v9916_v7  ;;  %8604 = vmatpush3.bf16.msra.mxu1 %v9930_v10 }
  0x2c   : > { %8606 = vmatprep.subr.bf16.mxu1 %v9957_v18 }
  0x2e   : > { %8600 = vmatpush3.bf16.msra.mxu0 %v9916_v7 }
  0x2f   : > { %8674 = vmatprep.subr.bf16.mxu0 %v9970_v21  ;;  %8608 = vmatpush3.bf16.msra.mxu1 %v9957_v18 }
  0x30   : > { %8610 = vmatprep.subr.bf16.mxu1 %v9980_v24 }
  0x31   : > { %7215 = vmatmul.mubr.msk.f32.vlgmr.msra.gmra.mrb[2].mxu0 %vm498_vm0, %v6113_v27  ;;  %v6143_v27 = vld [vmem:[%s11775_s3 + $0xb8] sm:$0xff] }
  0x32   : > { %8676 = vmatpush3.bf16.msra.mxu0 %v9970_v21  ;;  %v8669_v29 = vpack.c.bf16 %v6143_v27, %v6142_v26  ;;  %v6208_v26 = vld [vmem:[%s11774_s2 + $0x140] sm:$0xff]  ;;  %v6209_v27 = vld [vmem:[%s11774_s2 + $0x148] sm:$0xff] }
  0x33   : > { %8678 = vmatprep.subr.bf16.mxu0 %v9993_v28  ;;  %8612 = vmatpush3.bf16.msra.mxu1 %v9980_v24 }
  0x34   : > { %8614 = vmatprep.subr.bf16.mxu1 %v10003_v31 }
  0x36   : > { %8680 = vmatpush3.bf16.msra.mxu0 %v9993_v28 }
  0x37   : > { %8682 = vmatprep.subr.bf16.mxu0 %v10008_v32  ;;  %8616 = vmatpush3.bf16.msra.mxu1 %v10003_v31 }
  0x38   : > { %8618 = vmatprep.subr.bf16.mxu1 %v8617_v44 }
  0x3a   : > { %8684 = vmatpush3.bf16.msra.mxu0 %v10008_v32 }
  0x3b   : > { %8686 = vmatprep.subr.bf16.mxu0 %v10020_v35  ;;  %8620 = vmatpush3.bf16.msra.mxu1 %v8617_v44 }
  0x3c   : > { %8622 = vmatprep.subr.bf16.mxu1 %v8621_v47 }
  0x3e   : > { %8688 = vmatpush3.bf16.msra.mxu0 %v10020_v35 }
  0x3f   : > { %8690 = vmatprep.subr.bf16.mxu0 %v10031_v38  ;;  %8624 = vmatpush3.bf16.msra.mxu1 %v8621_v47 }
  0x40   : > { %8626 = vmatprep.subr.bf16.mxu1 %v10065_v50 }
  0x42   : > { %8692 = vmatpush3.bf16.msra.mxu0 %v10031_v38 }
  0x43   : > { %8694 = vmatprep.subr.bf16.mxu0 %v10041_v41 }
  0x46   : > { %8696 = vmatpush3.bf16.msra.mxu0 %v10041_v41 }
  0x47   : > { %8706 = vmatprep.subr.bf16.mxu0 %v9930_v10 }
  0xfc   : > { %v7194_v51 = vpop.f32.mrb[0].mxu0  ;;  %v10068_v52 = vpop.f32.mrb[0].mxu1 }
  0xfd   : > { %v571_v53 = vpop.f32.mrb[1].mxu0  ;;  %v10070_v54 = vpop.f32.mrb[1].mxu1 }
  0xfe   : > { %7322 = vmatprep.mubr.msk.f32.mxu0 %vm785_vm1, %v571_v53 }
  0xff   : > { %7323 = vmatmul.mubr.msk.f32.vlgmr.msra.gmra.mrb[4].mxu0 %vm785_vm1, %v7194_v51 }
 0x100   : > { %8708 = vmatpush3.bf16.msra.mxu0 %v9930_v10  ;;  %v6132_v10 = vld [vmem:[%s11775_s3 + $0x60] sm:$0xff] }
 0x101   : > { %8710 = vmatprep.subr.bf16.mxu0 %v9957_v18  ;;  %v8649_v12 = vpack.c.bf16 %v6133_v11, %v6132_v10 }
 0x104   : > { %v10082_v57 = vpop.f32.mrb[2].mxu0  ;;  %8712 = vmatpush3.bf16.msra.mxu0 %v9957_v18  ;;  %v8657_v18 = vpack.c.bf16 %v6137_v17, %v6136_v16  ;;  %v6206_v17 = vld [vmem:[%s11774_s2 + $0x130] sm:$0xff] }
 0x105   : > { %v763_v58 = vpop.f32.mrb[3].mxu0  ;;  %8714 = vmatprep.subr.bf16.mxu0 %v9980_v24 }
 0x106   : > { %7241 = vmatprep.mubr.msk.f32.mxu1 %vm785_vm1, %v763_v58 }
 0x107   : > { %7242 = vmatmul.mubr.msk.f32.vlgmr.msra.gmra.mrb[2].mxu1 %vm785_vm1, %v10082_v57 }
 0x108   : > { %8628 = vmatpush3.bf16.msra.mxu1 %v10065_v50  ;;  %7268 = vmatprep.mubr.msk.f32.mxu1 %vm785_vm1, %v571_v53  ;;  %v6182_v53 = vld [vmem:[%s11775_s3 + $0xe0] sm:$0xff] }
 0x109   : > { %8630 = vmatprep.subr.bf16.mxu1 %v10085_v59  ;;  %8716 = vmatpush3.bf16.msra.mxu0 %v9980_v24  ;;  %v6141_v24 = vld [vmem:[%s11775_s3 + $0xa8] sm:$0xff] }
 0x10a   : > { %8718 = vmatprep.subr.bf16.mxu0 %v10003_v31  ;;  %v8665_v25 = vpack.c.bf16 %v6141_v24, %v6140_v23  ;;  %v6218_v23 = vld [vmem:[%s11775_s3 + $0x120] sm:$0xff]  ;;  %v6219_v24 = vld [vmem:[%s11775_s3 + $0x128] sm:$0xff] }
 0x10c   : > { %8632 = vmatpush3.bf16.msra.mxu1 %v10085_v59 }
 0x10d   : > { %8634 = vmatprep.subr.bf16.mxu1 %v10100_v62  ;;  %8720 = vmatpush3.bf16.msra.mxu0 %v10003_v31  ;;  %v6149_v31 = vld [vmem:[%s11798_s1 + $0x68] sm:$0x3f] }
 0x10e   : > { %8722 = vmatprep.subr.bf16.mxu0 %v8617_v44 }
 0x110   : > { %8636 = vmatpush3.bf16.msra.mxu1 %v10100_v62 }
 0x111   : > { %8638 = vmatprep.subr.bf16.mxu1 %v10112_v1  ;;  %8724 = vmatpush3.bf16.msra.mxu0 %v8617_v44  ;;  %v6169_v44 = vld [vmem:[%s11774_s2 + $0xe8] sm:$0xff] }
 0x112   : > { %8726 = vmatprep.subr.bf16.mxu0 %v8621_v47 }
 0x114   : > { %8640 = vmatpush3.bf16.msra.mxu1 %v10112_v1 }
 0x115   : > { %8642 = vmatprep.subr.bf16.mxu1 %v10123_v4  ;;  %8728 = vmatpush3.bf16.msra.mxu0 %v8621_v47  ;;  %v6181_v47 = vld [vmem:[%s11775_s3 + $0xd8] sm:$0xff] }
 0x116   : > { %8730 = vmatprep.subr.bf16.mxu0 %v10065_v50 }
 0x118   : > { %8644 = vmatpush3.bf16.msra.mxu1 %v10123_v4 }
 0x119   : > { %8646 = vmatprep.subr.bf16.mxu1 %v10133_v9 }
 0x11c   : > { %8648 = vmatpush3.bf16.msra.mxu1 %v10133_v9 }
 0x11d   : > { %8650 = vmatprep.subr.bf16.mxu1 %v8649_v12 }
 0x11f   : > { %7269 = vmatmul.mubr.msk.f32.vlgmr.msra.gmra.mrb[2].mxu1 %vm785_vm1, %v7194_v51  ;;  %v6161_v51 = vld [vmem:[%s11798_s1 + $0x28] sm:$0x3f] }
 0x120   : > { %8652 = vmatpush3.bf16.msra.mxu1 %v8649_v12  ;;  %7295 = vmatprep.mubr.msk.f32.mxu1 %vm785_vm1, %v763_v58 }
 0x121   : > { %8654 = vmatprep.subr.bf16.mxu1 %v8653_v15 }
 0x124   : > { %8656 = vmatpush3.bf16.msra.mxu1 %v8653_v15 }
 0x125   : > { %8658 = vmatprep.subr.bf16.mxu1 %v8657_v18 }
 0x128   : > { %8660 = vmatpush3.bf16.msra.mxu1 %v8657_v18 }
 0x129   : > { %8662 = vmatprep.subr.bf16.mxu1 %v8661_v22 }
 0x12c   : > { %8664 = vmatpush3.bf16.msra.mxu1 %v8661_v22 }
 0x12d   : > { %8666 = vmatprep.subr.bf16.mxu1 %v8665_v25 }
 0x130   : > { %8668 = vmatpush3.bf16.msra.mxu1 %v8665_v25 }
 0x131   : > { %8670 = vmatprep.subr.bf16.mxu1 %v8669_v29 }
 0x134   : > { %8672 = vmatpush3.bf16.msra.mxu1 %v8669_v29 }
 0x135   : > { %8698 = vmatprep.subr.bf16.mxu1 %v9914_v5 }
 0x137   : > { %7296 = vmatmul.mubr.msk.f32.vlgmr.msra.gmra.mrb[4].mxu1 %vm785_vm1, %v10082_v57  ;;  %v6173_v57 = vld [vmem:[%s11774_s2 + $0x108] sm:$0xff] }
 0x138   : > { %8700 = vmatpush3.bf16.msra.mxu1 %v9914_v5  ;;  %7333 = vmatprep.mubr.msk.f32.mxu1 %vm498_vm0, %v6148_v30  ;;  %v8825_v61 = vpack.c.bf16 %v6173_v57, %v6172_v56  ;;  %v6220_v30 = vld [vmem:[%s11775_s3 + $0x130] sm:$0xff] }
 0x139   : > { %8702 = vmatprep.subr.bf16.mxu1 %v9916_v7 }
 0x13c   : > { %8704 = vmatpush3.bf16.msra.mxu1 %v9916_v7 }
 0x13d   : > { %8754 = vmatprep.subr.bf16.mxu1 %v8649_v12 }
 0x13f   : > { %7334 = vmatmul.mubr.msk.f32.vlgmr.msra.gmra.mrb[6].mxu1 %vm498_vm0, %v6149_v31  ;;  %v6221_v31 = vld [vmem:[%s11775_s3 + $0x138] sm:$0xff] }
 0x140   : > { %8756 = vmatpush3.bf16.msra.mxu1 %v8649_v12  ;;  %v6192_v12 = vld [vmem:[%s11798_s1 + $0x70] sm:$0xff] }
 0x141   : > { %8758 = vmatprep.subr.bf16.mxu1 %v8653_v15 }
 0x144   : > { %8760 = vmatpush3.bf16.msra.mxu1 %v8653_v15  ;;  %v6205_v15 = vld [vmem:[%s11774_s2 + $0x128] sm:$0xff] }
 0x145   : > { %8762 = vmatprep.subr.bf16.mxu1 %v8657_v18  ;;  %v10367_v16 = vpack.c.bf16 %v6205_v15, %v6204_v14  ;;  %v6250_v15 = vld [vmem:[%s11774_s2 + $0x1b0] sm:$0xff] }
 0x148   : > { %8764 = vmatpush3.bf16.msra.mxu1 %v8657_v18  ;;  %v6207_v18 = vld [vmem:[%s11774_s2 + $0x138] sm:$0xff] }
 0x149   : > { %8766 = vmatprep.subr.bf16.mxu1 %v8661_v22 }
 0x14c   : > { %8768 = vmatpush3.bf16.msra.mxu1 %v8661_v22  ;;  %v6200_v22 = vld [vmem:[%s11798_s1 + $0x30] sm:$0xff] }
 0x14d   : > { %8770 = vmatprep.subr.bf16.mxu1 %v8665_v25 }
 0x150   : > { %8772 = vmatpush3.bf16.msra.mxu1 %v8665_v25  ;;  %v10387_v25 = vpack.c.bf16 %v6207_v18, %v6206_v17  ;;  %v6241_v17 = vld [vmem:[%s11798_s1 + $0x48] sm:$0x3f] }
 0x151   : > { %8774 = vmatprep.subr.bf16.mxu1 %v8669_v29 }
 0x154   : > { %8776 = vmatpush3.bf16.msra.mxu1 %v8669_v29  ;;  %v10401_v29 = vpack.c.bf16 %v6219_v24, %v6218_v23  ;;  %v6252_v23 = vld [vmem:[%s11774_s2 + $0x1c0] sm:$0xff]  ;;  %v6253_v24 = vld [vmem:[%s11774_s2 + $0x1c8] sm:$0xff] }
 0x155   : > { %8778 = vmatprep.subr.bf16.mxu1 %v9970_v21 }
 0x20a   : > { %v10192_v33 = vpop.f32.mrb[4].mxu1 }
 0x20b   : > { %v10194_v34 = vpop.f32.mrb[5].mxu1 }
 0x212   : > { %v7335_v36 = vpop.f32.mrb[6].mxu1 }
 0x213   : > { %v1186_v37 = vpop.f32.mrb[7].mxu1 }
 0x214   : > { %7360 = vmatprep.mubr.msk.f32.mxu0 %vm785_vm1, %v1186_v37  ;;  %7414 = vmatprep.mubr.msk.f32.mxu1 %vm785_vm1, %v1186_v37  ;;  %v6210_v37 = vld [vmem:[%s11774_s2 + $0x150] sm:$0xff] }
 0x215   : > { %7361 = vmatmul.mubr.msk.f32.vlgmr.msra.gmra.mrb[6].mxu0 %vm785_vm1, %v7335_v36  ;;  %7415 = vmatmul.mubr.msk.f32.vlgmr.msra.gmra.mrb[8].mxu1 %vm785_vm1, %v7335_v36  ;;  %v10410_v36 = vpack.c.bf16 %v6209_v27, %v6208_v26  ;;  %v6264_v26 = vld [vmem:[%s11775_s3 + $0x1b0] sm:$0xff]  ;;  %v6265_v27 = vld [vmem:[%s11775_s3 + $0x1b8] sm:$0xff] }
 0x216   : > { %8732 = vmatpush3.bf16.msra.mxu0 %v10065_v50  ;;  %8780 = vmatpush3.bf16.msra.mxu1 %v9970_v21  ;;  %v6164_v21 = vld [vmem:[%s11774_s2 + $0xc0] sm:$0xff]  ;;  %v6171_v50 = vld [vmem:[%s11774_s2 + $0xf8] sm:$0xff] }
 0x217   : > { %7387 = vmatprep.mubr.msk.f32.mxu0 %vm785_vm1, %v10070_v54  ;;  %7441 = vmatprep.mubr.msk.f32.mxu1 %vm785_vm1, %v10070_v54  ;;  %v6183_v54 = vld [vmem:[%s11775_s3 + $0xe8] sm:$0xff]  ;;  %v8821_v55 = vpack.c.bf16 %v6171_v50, %v6170_v49  ;;  %v6226_v49 = vld [vmem:[%s11775_s3 + $0x160] sm:$0xff] }
 0x218   : > { %8734 = vmatprep.subr.bf16.mxu0 %v10085_v59  ;;  %8782 = vmatprep.subr.bf16.mxu1 %v9993_v28  ;;  %v8841_v58 = vpack.c.bf16 %v6183_v54, %v6182_v53  ;;  %v6227_v50 = vld [vmem:[%s11775_s3 + $0x168] sm:$0xff]  ;;  %v6228_v53 = vld [vmem:[%s11775_s3 + $0x170] sm:$0xff]  ;;  %v6229_v54 = vld [vmem:[%s11775_s3 + $0x178] sm:$0xff] }
 0x21a   : > { %8736 = vmatpush3.bf16.msra.mxu0 %v10085_v59  ;;  %8784 = vmatpush3.bf16.msra.mxu1 %v9993_v28  ;;  %v6165_v28 = vld [vmem:[%s11774_s2 + $0xc8] sm:$0xff]  ;;  %v6184_v59 = vld [vmem:[%s11775_s3 + $0xf0] sm:$0xff] }
 0x21b   : > { %8738 = vmatprep.subr.bf16.mxu0 %v10100_v62  ;;  %8786 = vmatprep.subr.bf16.mxu1 %v10008_v32  ;;  %v8845_v0 = vpack.c.bf16 %v6185_v60, %v6184_v59  ;;  %v6233_v59 = vld [vmem:[%s11798_s1 + $0x88] sm:$0x3f]  ;;  %v6244_v60 = vld [vmem:[%s11774_s2 + $0x180] sm:$0xff] }
 0x21e   : > { %8740 = vmatpush3.bf16.msra.mxu0 %v10100_v62  ;;  %8788 = vmatpush3.bf16.msra.mxu1 %v10008_v32  ;;  %v10230_v32 = vpack.c.bf16 %v6165_v28, %v6164_v21  ;;  %v6174_v62 = vld [vmem:[%s11774_s2 + $0x110] sm:$0xff]  ;;  %v6211_v21 = vld [vmem:[%s11774_s2 + $0x158] sm:$0xff] }
 0x21f   : > { %8742 = vmatprep.subr.bf16.mxu0 %v10112_v1  ;;  %8790 = vmatprep.subr.bf16.mxu1 %v10020_v35  ;;  %v8829_v3 = vpack.c.bf16 %v6175_v63, %v6174_v62  ;;  %v6201_v28 = vld [vmem:[%s11798_s1 + $0x38] sm:$0x3f]  ;;  %v6246_v63 = vld [vmem:[%s11774_s2 + $0x190] sm:$0xff] }
 0x222   : > { %8744 = vmatpush3.bf16.msra.mxu0 %v10112_v1  ;;  %8792 = vmatpush3.bf16.msra.mxu1 %v10020_v35  ;;  %v6166_v35 = vld [vmem:[%s11774_s2 + $0xd0] sm:$0xff]  ;;  %v6186_v1 = vld [vmem:[%s11775_s3 + $0x100] sm:$0xff] }
 0x223   : > { %8746 = vmatprep.subr.bf16.mxu0 %v10123_v4  ;;  %8794 = vmatprep.subr.bf16.mxu1 %v10031_v38  ;;  %v10251_v43 = vpack.c.bf16 %v6167_v39, %v6166_v35  ;;  %v6222_v35 = vld [vmem:[%s11775_s3 + $0x140] sm:$0xff]  ;;  %v6223_v39 = vld [vmem:[%s11775_s3 + $0x148] sm:$0xff] }
 0x226   : > { %8748 = vmatpush3.bf16.msra.mxu0 %v10123_v4  ;;  %8796 = vmatpush3.bf16.msra.mxu1 %v10031_v38  ;;  %v6160_v38 = vld [vmem:[%s11798_s1 + $0x20] sm:$0xff]  ;;  %v8849_v4 = vpack.c.bf16 %v6187_v2, %v6186_v1 }
 0x227   : > { %8750 = vmatprep.subr.bf16.mxu0 %v10133_v9  ;;  %8798 = vmatprep.subr.bf16.mxu1 %v10041_v41 }
 0x22a   : > { %8752 = vmatpush3.bf16.msra.mxu0 %v10133_v9  ;;  %8800 = vmatpush3.bf16.msra.mxu1 %v10041_v41  ;;  %v6168_v41 = vld [vmem:[%s11774_s2 + $0xe0] sm:$0xff]  ;;  %v8853_v9 = vpack.c.bf16 %v6189_v8, %v6188_v6  ;;  %v6259_v6 = vld [vmem:[%s11775_s3 + $0x188] sm:$0xff] }
 0x22b   : > { %8802 = vmatprep.subr.bf16.mxu0 %v9914_v5  ;;  %8810 = vmatprep.subr.bf16.mxu1 %v10230_v32  ;;  %v10276_v48 = vpack.c.bf16 %v6169_v44, %v6168_v41  ;;  %v6224_v41 = vld [vmem:[%s11775_s3 + $0x150] sm:$0xff]  ;;  %v6225_v44 = vld [vmem:[%s11775_s3 + $0x158] sm:$0xff] }
 0x22d   : > { %7388 = vmatmul.mubr.msk.f32.vlgmr.msra.gmra.mrb[6].mxu0 %vm785_vm1, %v10068_v52  ;;  %7442 = vmatmul.mubr.msk.f32.vlgmr.msra.gmra.mrb[8].mxu1 %vm785_vm1, %v10068_v52  ;;  %v10290_v52 = vpack.c.bf16 %v6181_v47, %v6180_v46  ;;  %v6214_v46 = vld [vmem:[%s11774_s2 + $0x170] sm:$0xff]  ;;  %v6215_v47 = vld [vmem:[%s11774_s2 + $0x178] sm:$0xff] }
 0x22e   : > { %8804 = vmatpush3.bf16.msra.mxu0 %v9914_v5  ;;  %7452 = vmatprep.mubr.msk.f32.mxu0 %vm498_vm0, %v6160_v38  ;;  %v8933_v38 = vpack.c.bf16 %v6211_v21, %v6210_v37  ;;  %v6266_v37 = vld [vmem:[%s11775_s3 + $0x1c0] sm:$0xff]  ;;  %v6267_v21 = vld [vmem:[%s11775_s3 + $0x1c8] sm:$0xff] }
 0x22f   : > { %8806 = vmatprep.subr.bf16.mxu0 %v9916_v7  ;;  %8812 = vmatpush3.bf16.msra.mxu1 %v10230_v32 }
 0x230   : > { %8814 = vmatprep.subr.bf16.mxu1 %v10251_v43 }
 0x232   : > { %8808 = vmatpush3.bf16.msra.mxu0 %v9916_v7 }
 0x233   : > { %8834 = vmatprep.subr.bf16.mxu0 %v10267_v45  ;;  %8816 = vmatpush3.bf16.msra.mxu1 %v10251_v43 }
 0x234   : > { %8818 = vmatprep.subr.bf16.mxu1 %v10276_v48 }
 0x235   : > { %7453 = vmatmul.mubr.msk.f32.vlgmr.msra.gmra.mrb[8].mxu0 %vm498_vm0, %v6161_v51  ;;  %v8941_v51 = vpack.c.bf16 %v6215_v47, %v6214_v46 }
 0x236   : > { %8836 = vmatpush3.bf16.msra.mxu0 %v10267_v45 }
 0x237   : > { %8838 = vmatprep.subr.bf16.mxu0 %v10290_v52  ;;  %8820 = vmatpush3.bf16.msra.mxu1 %v10276_v48 }
 0x238   : > { %8822 = vmatprep.subr.bf16.mxu1 %v8821_v55 }
 0x23a   : > { %8840 = vmatpush3.bf16.msra.mxu0 %v10290_v52 }
 0x23b   : > { %8842 = vmatprep.subr.bf16.mxu0 %v8841_v58  ;;  %8824 = vmatpush3.bf16.msra.mxu1 %v8821_v55 }
 0x23c   : > { %8826 = vmatprep.subr.bf16.mxu1 %v8825_v61 }
 0x23e   : > { %8844 = vmatpush3.bf16.msra.mxu0 %v8841_v58 }
 0x23f   : > { %8846 = vmatprep.subr.bf16.mxu0 %v8845_v0  ;;  %8828 = vmatpush3.bf16.msra.mxu1 %v8825_v61 }
 0x240   : > { %8830 = vmatprep.subr.bf16.mxu1 %v8829_v3 }
 0x242   : > { %8848 = vmatpush3.bf16.msra.mxu0 %v8845_v0 }
 0x243   : > { %8850 = vmatprep.subr.bf16.mxu0 %v8849_v4  ;;  %8832 = vmatpush3.bf16.msra.mxu1 %v8829_v3 }
 0x244   : > { %8858 = vmatprep.subr.bf16.mxu1 %v9914_v5 }
 0x246   : > { %8852 = vmatpush3.bf16.msra.mxu0 %v8849_v4 }
 0x247   : > { %8854 = vmatprep.subr.bf16.mxu0 %v8853_v9 }
 0x24a   : > { %8856 = vmatpush3.bf16.msra.mxu0 %v8853_v9 }
 0x24b   : > { %8866 = vmatprep.subr.bf16.mxu0 %v10230_v32 }
 0x308   : > { %v7454_v10 = vpop.f32.mrb[8].mxu0 }
 0x309   : > { %v1582_v11 = vpop.f32.mrb[9].mxu0 }
 0x30a   : > { %7479 = vmatprep.mubr.msk.f32.mxu1 %vm785_vm1, %v1582_v11  ;;  %7506 = vmatprep.mubr.msk.f32.mxu0 %vm785_vm1, %v1582_v11 }
 0x30b   : > { %7480 = vmatmul.mubr.msk.f32.vlgmr.msra.gmra.mrb[2].mxu1 %vm785_vm1, %v7454_v10  ;;  %7507 = vmatmul.mubr.msk.f32.vlgmr.msra.gmra.mrb[4].mxu0 %vm785_vm1, %v7454_v10  ;;  %v6249_v10 = vld [vmem:[%s11774_s2 + $0x1a8] sm:$0xff] }
 0x30c   : > { %8860 = vmatpush3.bf16.msra.mxu1 %v9914_v5  ;;  %7517 = vmatprep.mubr.msk.f32.mxu1 %vm498_vm0, %v6192_v12  ;;  %v6260_v12 = vld [vmem:[%s11775_s3 + $0x190] sm:$0xff] }
 0x30d   : > { %8862 = vmatprep.subr.bf16.mxu1 %v9916_v7  ;;  %8868 = vmatpush3.bf16.msra.mxu0 %v10230_v32  ;;  %v10424_v32 = vpack.c.bf16 %v6221_v31, %v6220_v30  ;;  %v6254_v30 = vld [vmem:[%s11774_s2 + $0x1d0] sm:$0xff]  ;;  %v6255_v31 = vld [vmem:[%s11774_s2 + $0x1d8] sm:$0xff] }
 0x30e   : > { %8870 = vmatprep.subr.bf16.mxu0 %v10251_v43 }
 0x310   : > { %8864 = vmatpush3.bf16.msra.mxu1 %v9916_v7 }
 0x311   : > { %8890 = vmatprep.subr.bf16.mxu1 %v10267_v45  ;;  %8872 = vmatpush3.bf16.msra.mxu0 %v10251_v43  ;;  %v8953_v43 = vpack.c.bf16 %v6223_v39, %v6222_v35  ;;  %v6268_v35 = vld [vmem:[%s11775_s3 + $0x1d0] sm:$0xff]  ;;  %v6269_v39 = vld [vmem:[%s11775_s3 + $0x1d8] sm:$0xff] }
 0x312   : > { %8874 = vmatprep.subr.bf16.mxu0 %v10276_v48 }
 0x313   : > { %7518 = vmatmul.mubr.msk.f32.vlgmr.msra.gmra.mrb[10].mxu1 %vm498_vm0, %v6193_v13  ;;  %v6261_v13 = vld [vmem:[%s11775_s3 + $0x198] sm:$0xff] }
 0x314   : > { %8892 = vmatpush3.bf16.msra.mxu1 %v10267_v45  ;;  %v8937_v45 = vpack.c.bf16 %v6213_v42, %v6212_v40  ;;  %v10558_v18 = vpack.c.bf16 %v6261_v13, %v6260_v12  ;;  %v6291_v12 = vld [vmem:[%s11778_s6 + $0x68] sm:$0xff]  ;;  %v6292_v13 = vld [vmem:[%s11778_s6 + $0x70] sm:$0xff] }
 0x315   : > { %8894 = vmatprep.subr.bf16.mxu1 %v10290_v52  ;;  %8876 = vmatpush3.bf16.msra.mxu0 %v10276_v48  ;;  %v8957_v48 = vpack.c.bf16 %v6225_v44, %v6224_v41  ;;  %v6273_v41 = vld [vmem:[%s11798_s1 + $0x98] sm:$0x3f] }
 0x316   : > { %8878 = vmatprep.subr.bf16.mxu0 %v8821_v55 }
 0x318   : > { %8896 = vmatpush3.bf16.msra.mxu1 %v10290_v52  ;;  %v8961_v52 = vpack.c.bf16 %v6227_v50, %v6226_v49 }
 0x319   : > { %8898 = vmatprep.subr.bf16.mxu1 %v8841_v58  ;;  %8880 = vmatpush3.bf16.msra.mxu0 %v8821_v55  ;;  %v8965_v55 = vpack.c.bf16 %v6229_v54, %v6228_v53 }
 0x31a   : > { %8882 = vmatprep.subr.bf16.mxu0 %v8825_v61 }
 0x31c   : > { %8900 = vmatpush3.bf16.msra.mxu1 %v8841_v58  ;;  %v6232_v58 = vld [vmem:[%s11798_s1 + $0x80] sm:$0xff] }
 0x31d   : > { %8902 = vmatprep.subr.bf16.mxu1 %v8845_v0  ;;  %8884 = vmatpush3.bf16.msra.mxu0 %v8825_v61  ;;  %v6245_v61 = vld [vmem:[%s11774_s2 + $0x188] sm:$0xff] }
 0x31e   : > { %8886 = vmatprep.subr.bf16.mxu0 %v8829_v3  ;;  %v10501_v62 = vpack.c.bf16 %v6245_v61, %v6244_v60 }
 0x320   : > { %8904 = vmatpush3.bf16.msra.mxu1 %v8845_v0  ;;  %v6247_v0 = vld [vmem:[%s11774_s2 + $0x198] sm:$0xff] }
 0x321   : > { %8906 = vmatprep.subr.bf16.mxu1 %v8849_v4  ;;  %8888 = vmatpush3.bf16.msra.mxu0 %v8829_v3  ;;  %v6240_v3 = vld [vmem:[%s11798_s1 + $0x40] sm:$0xff]  ;;  %v10521_v8 = vpack.c.bf16 %v6247_v0, %v6246_v63 }
 0x322   : > { %8914 = vmatprep.subr.bf16.mxu0 %v9914_v5 }
 0x324   : > { %8908 = vmatpush3.bf16.msra.mxu1 %v8849_v4  ;;  %v6258_v4 = vld [vmem:[%s11775_s3 + $0x180] sm:$0xff] }
 0x325   : > { %8910 = vmatprep.subr.bf16.mxu1 %v8853_v9  ;;  %v10535_v11 = vpack.c.bf16 %v6259_v6, %v6258_v4  ;;  %v6290_v4 = vld [vmem:[%s11778_s6 + $0x60] sm:$0xff] }
 0x326   : > { %v3066_v6 = vld [vmem:[%s11777_s5] sm:$0x1f] }
 0x328   : > { %8912 = vmatpush3.bf16.msra.mxu1 %v8853_v9  ;;  %v6248_v9 = vld [vmem:[%s11774_s2 + $0x1a0] sm:$0xff] }
 0x329   : > { %8922 = vmatprep.subr.bf16.mxu1 %v10367_v16  ;;  %v10544_v14 = vpack.c.bf16 %v6249_v10, %v6248_v9  ;;  %v6304_v10 = vld [vmem:[%s11779_s7 + $0x58] sm:$0xff] }
 0x3e6   : > { %v7519_v19 = vpop.f32.mrb[10].mxu1 }
 0x3e7   : > { %v1852_v20 = vpop.f32.mrb[11].mxu1 }
 0x3e8   : > { %7544 = vmatprep.mubr.msk.f32.mxu0 %vm785_vm1, %v1852_v20  ;;  %7571 = vmatprep.mubr.msk.f32.mxu1 %vm785_vm1, %v1852_v20  ;;  %v6263_v20 = vld [vmem:[%s11775_s3 + $0x1a8] sm:$0xff] }
 0x3e9   : > { %7545 = vmatmul.mubr.msk.f32.vlgmr.msra.gmra.mrb[6].mxu0 %vm785_vm1, %v7519_v19  ;;  %7572 = vmatmul.mubr.msk.f32.vlgmr.msra.gmra.mrb[8].mxu1 %vm785_vm1, %v7519_v19  ;;  %v6262_v19 = vld [vmem:[%s11775_s3 + $0x1a0] sm:$0xff] }
 0x3ea   : > { %8916 = vmatpush3.bf16.msra.mxu0 %v9914_v5  ;;  %7582 = vmatprep.mubr.msk.f32.mxu0 %vm498_vm0, %v6200_v22 }
 0x3eb   : > { %8918 = vmatprep.subr.bf16.mxu0 %v9916_v7  ;;  %8924 = vmatpush3.bf16.msra.mxu1 %v10367_v16 }
 0x3ec   : > { %8926 = vmatprep.subr.bf16.mxu1 %v10387_v25 }
 0x3ee   : > { %8920 = vmatpush3.bf16.msra.mxu0 %v9916_v7 }
 0x3ef   : > { %8946 = vmatprep.subr.bf16.mxu0 %v10401_v29  ;;  %8928 = vmatpush3.bf16.msra.mxu1 %v10387_v25 }
 0x3f0   : > { %8930 = vmatprep.subr.bf16.mxu1 %v10410_v36 }
 0x3f1   : > { %7583 = vmatmul.mubr.msk.f32.vlgmr.msra.gmra.mrb[10].mxu0 %vm498_vm0, %v6201_v28  ;;  %v9053_v28 = vpack.c.bf16 %v6255_v31, %v6254_v30  ;;  %v6310_v31 = vld [vmem:[%s11779_s7 + $0x88] sm:$0xff] }
 0x3f2   : > { %8948 = vmatpush3.bf16.msra.mxu0 %v10401_v29 }
 0x3f3   : > { %8950 = vmatprep.subr.bf16.mxu0 %v10424_v32  ;;  %8932 = vmatpush3.bf16.msra.mxu1 %v10410_v36 }
 0x3f4   : > { %8934 = vmatprep.subr.bf16.mxu1 %v8933_v38 }
 0x3f6   : > { %8952 = vmatpush3.bf16.msra.mxu0 %v10424_v32 }
 0x3f7   : > { %8954 = vmatprep.subr.bf16.mxu0 %v8953_v43  ;;  %8936 = vmatpush3.bf16.msra.mxu1 %v8933_v38 }
 0x3f8   : > { %8938 = vmatprep.subr.bf16.mxu1 %v8937_v45 }
 0x3fa   : > { %8956 = vmatpush3.bf16.msra.mxu0 %v8953_v43 }
 0x3fb   : > { %8958 = vmatprep.subr.bf16.mxu0 %v8957_v48  ;;  %8940 = vmatpush3.bf16.msra.mxu1 %v8937_v45 }
 0x3fc   : > { %8942 = vmatprep.subr.bf16.mxu1 %v8941_v51 }
 0x3fe   : > { %8960 = vmatpush3.bf16.msra.mxu0 %v8957_v48 }
 0x3ff   : > { %8962 = vmatprep.subr.bf16.mxu0 %v8961_v52  ;;  %8944 = vmatpush3.bf16.msra.mxu1 %v8941_v51 }
 0x400   : > { %8970 = vmatprep.subr.bf16.mxu1 %v9914_v5 }
 0x402   : > { %8964 = vmatpush3.bf16.msra.mxu0 %v8961_v52 }
 0x403   : > { %8966 = vmatprep.subr.bf16.mxu0 %v8965_v55 }
 0x406   : > { %8968 = vmatpush3.bf16.msra.mxu0 %v8965_v55 }
 0x407   : > { %8978 = vmatprep.subr.bf16.mxu0 %v10367_v16 }
 0x4c4   : > { %v7584_v56 = vpop.f32.mrb[10].mxu0 }
 0x4c5   : > { %v2096_v57 = vpop.f32.mrb[11].mxu0 }
 0x4c6   : > { %7609 = vmatprep.mubr.msk.f32.mxu1 %vm785_vm1, %v2096_v57  ;;  %7636 = vmatprep.mubr.msk.f32.mxu0 %vm785_vm1, %v2096_v57  ;;  %v6280_v57 = vld [vmem:[%s11776_s4] ss:$0 sm:$0xff] }
 0x4c7   : > { %7610 = vmatmul.mubr.msk.f32.vlgmr.msra.gmra.mrb[2].mxu1 %vm785_vm1, %v7584_v56  ;;  %7637 = vmatmul.mubr.msk.f32.vlgmr.msra.gmra.mrb[4].mxu0 %vm785_vm1, %v7584_v56 }
 0x4c8   : > { %8972 = vmatpush3.bf16.msra.mxu1 %v9914_v5  ;;  %7647 = vmatprep.mubr.msk.f32.mxu1 %vm498_vm0, %v6232_v58 }
 0x4c9   : > { %8974 = vmatprep.subr.bf16.mxu1 %v9916_v7  ;;  %8980 = vmatpush3.bf16.msra.mxu0 %v10367_v16  ;;  %v6251_v16 = vld [vmem:[%s11774_s2 + $0x1b8] sm:$0xff] }
 0x4ca   : > { %8982 = vmatprep.subr.bf16.mxu0 %v10387_v25  ;;  %v9045_v22 = vpack.c.bf16 %v6251_v16, %v6250_v15  ;;  %v10697_v16 = vpack.c.bf16 %v6292_v13, %v6291_v12  ;;  %v3154_v12 = vld [vmem:[%s11778_s6 + $0x48] sm:$0xff]  ;;  %v3164_v13 = vld [vmem:[%s11779_s7 + $0x40] sm:$0xff] }
 0x4cc   : > { %8976 = vmatpush3.bf16.msra.mxu1 %v9916_v7 }
 0x4cd   : > { %9002 = vmatprep.subr.bf16.mxu1 %v10401_v29  ;;  %8984 = vmatpush3.bf16.msra.mxu0 %v10387_v25  ;;  %v9065_v25 = vpack.c.bf16 %v6263_v20, %v6262_v19  ;;  %v6293_v19 = vld [vmem:[%s11778_s6 + $0x78] sm:$0xff]  ;;  %v6294_v20 = vld [vmem:[%s11778_s6 + $0x80] sm:$0xff] }
 0x4ce   : > { %8986 = vmatprep.subr.bf16.mxu0 %v10410_v36 }
 0x4cf   : > { %7648 = vmatmul.mubr.msk.f32.vlgmr.msra.gmra.mrb[12].mxu1 %vm498_vm0, %v6233_v59 }
 0x4d0   : > { %9004 = vmatpush3.bf16.msra.mxu1 %v10401_v29  ;;  %v9049_v29 = vpack.c.bf16 %v6253_v24, %v6252_v23  ;;  %v10722_v23 = vpack.c.bf16 %v6294_v20, %v6293_v19  ;;  %v6308_v24 = vld [vmem:[%s11779_s7 + $0x78] sm:$0xff]  ;;  %v10906_v19 = vld [vmem:[%s11778_s6 + $0x50] sm:$0xf] }
 0x4d1   : > { %9006 = vmatprep.subr.bf16.mxu1 %v10424_v32  ;;  %8988 = vmatpush3.bf16.msra.mxu0 %v10410_v36  ;;  %v9069_v36 = vpack.c.bf16 %v6265_v27, %v6264_v26  ;;  %v6295_v26 = vld [vmem:[%s11778_s6 + $0x88] sm:$0xff]  ;;  %v6296_v27 = vld [vmem:[%s11778_s6 + $0x90] sm:$0xff] }
 0x4d2   : > { %8990 = vmatprep.subr.bf16.mxu0 %v8933_v38  ;;  %v10742_v30 = vpack.c.bf16 %v6296_v27, %v6295_v26  ;;  %v10911_v20 = vld [vmem:[%s11779_s7 + $0x50] sm:$0xf]  ;;  %v6347_v26 = vld [vmem:[%s11779_s7 + $0xb8] sm:$0xff]  ;;  %v6335_v27 = vld [vmem:[%s11778_s6 + $0xc0] sm:$0xff] }
 0x4d4   : > { %9008 = vmatpush3.bf16.msra.mxu1 %v10424_v32  ;;  %v9073_v32 = vpack.c.bf16 %v6267_v21, %v6266_v37  ;;  %v6297_v37 = vld [vmem:[%s11778_s6 + $0x98] sm:$0xff]  ;;  %v6298_v21 = vld [vmem:[%s11778_s6 + $0xa0] sm:$0xff] }
 0x4d5   : > { %9010 = vmatprep.subr.bf16.mxu1 %v8953_v43  ;;  %8992 = vmatpush3.bf16.msra.mxu0 %v8933_v38  ;;  %v9077_v38 = vpack.c.bf16 %v6269_v39, %v6268_v35  ;;  %v6312_v35 = vld [vmem:[%s11779_s7 + $0x98] sm:$0xff]  ;;  %v6313_v39 = vld [vmem:[%s11779_s7 + $0xa0] sm:$0xff] }
 0x4d6   : > { %8994 = vmatprep.subr.bf16.mxu0 %v8937_v45 }
 0x4d8   : > { %9012 = vmatpush3.bf16.msra.mxu1 %v8953_v43  ;;  %v6272_v43 = vld [vmem:[%s11798_s1 + $0x90] sm:$0xff]  ;;  %s9710_s1 = scalar_lea.vmem %s9709_s23, 32 }
 0x4d9   : > { %9014 = vmatprep.subr.bf16.mxu1 %v8957_v48  ;;  %8996 = vmatpush3.bf16.msra.mxu0 %v8937_v45  ;;  %p9712_p1 = scmp.lt.s32.totalorder %s9710_s1, %s9704_s16 }
 0x4da   : > { %8998 = vmatprep.subr.bf16.mxu0 %v8941_v51 }
 0x4db   : > { %p9713_p2 = por %p9712_p1, %p9711_p0 }
 0x4dc   : > { %9016 = vmatpush3.bf16.msra.mxu1 %v8957_v48 }
 0x4dd   : > { %9018 = vmatprep.subr.bf16.mxu1 %v8961_v52  ;;  %9000 = vmatpush3.bf16.msra.mxu0 %v8941_v51  ;;  %p9714_p3 = pnand %p9713_p2, %p9707_p13 }
 0x4de   : > { %9026 = vmatprep.subr.bf16.mxu0 %v9914_v5 }
 0x4e0   : > { %9020 = vmatpush3.bf16.msra.mxu1 %v8961_v52  ;;  %v9768_v52 = vmov 0.0|0.0  }
 0x4e1   : > { %9022 = vmatprep.subr.bf16.mxu1 %v8965_v55 }
 0x4e4   : > { %9024 = vmatpush3.bf16.msra.mxu1 %v8965_v55 }
 0x4e5   : > { %9034 = vmatprep.subr.bf16.mxu1 %v10501_v62 }
 0x5a2   : > { %v7649_v1 = vpop.f32.mrb[12].mxu1 }
 0x5a3   : > { %v2366_v2 = vpop.f32.mrb[13].mxu1 }
 0x5a4   : > { %7674 = vmatprep.mubr.msk.f32.mxu0 %vm785_vm1, %v2366_v2  ;;  %7701 = vmatprep.mubr.msk.f32.mxu1 %vm785_vm1, %v2366_v2 }
 0x5a5   : > { %7675 = vmatmul.mubr.msk.f32.vlgmr.msra.gmra.mrb[6].mxu0 %vm785_vm1, %v7649_v1  ;;  %7702 = vmatmul.mubr.msk.f32.vlgmr.msra.gmra.mrb[8].mxu1 %vm785_vm1, %v7649_v1  ;;  %v5425_v1 = vld [vmem:[%s11781_s9] sm:$0xff] }
 0x5a6   : > { %9028 = vmatpush3.bf16.msra.mxu0 %v9914_v5  ;;  %7712 = vmatprep.mubr.msk.f32.mxu0 %vm498_vm0, %v6240_v3  ;;  %v6289_v3 = vld [vmem:[%s11778_s6 + $0x58] sm:$0xff] }
 0x5a7   : > { %9030 = vmatprep.subr.bf16.mxu0 %v9916_v7  ;;  %9036 = vmatpush3.bf16.msra.mxu1 %v10501_v62  ;;  %v10669_v9 = vpack.c.bf16 %v6290_v4, %v6289_v3  ;;  %v3152_v3 = vld [vmem:[%s11778_s6 + $0x38] sm:$0xff]  ;;  %v3162_v4 = vld [vmem:[%s11779_s7 + $0x30] sm:$0xff] }
 0x5a8   : > { %9038 = vmatprep.subr.bf16.mxu1 %v10521_v8 }
 0x5aa   : > { %9032 = vmatpush3.bf16.msra.mxu0 %v9916_v7 }
 0x5ab   : > { %9058 = vmatprep.subr.bf16.mxu0 %v10535_v11  ;;  %9040 = vmatpush3.bf16.msra.mxu1 %v10521_v8 }
 0x5ac   : > { %9042 = vmatprep.subr.bf16.mxu1 %v10544_v14 }
 0x5ad   : > { %7713 = vmatmul.mubr.msk.f32.vlgmr.msra.gmra.mrb[12].mxu0 %vm498_vm0, %v6241_v17  ;;  %v6306_v17 = vld [vmem:[%s11779_s7 + $0x68] sm:$0xff] }
 0x5ae   : > { %9060 = vmatpush3.bf16.msra.mxu0 %v10535_v11 }
 0x5af   : > { %9062 = vmatprep.subr.bf16.mxu0 %v10558_v18  ;;  %9044 = vmatpush3.bf16.msra.mxu1 %v10544_v14 }
 0x5b0   : > { %9046 = vmatprep.subr.bf16.mxu1 %v9045_v22 }
 0x5b2   : > { %9064 = vmatpush3.bf16.msra.mxu0 %v10558_v18 }
 0x5b3   : > { %9066 = vmatprep.subr.bf16.mxu0 %v9065_v25  ;;  %9048 = vmatpush3.bf16.msra.mxu1 %v9045_v22 }
 0x5b4   : > { %9050 = vmatprep.subr.bf16.mxu1 %v9049_v29 }
 0x5b6   : > { %9068 = vmatpush3.bf16.msra.mxu0 %v9065_v25 }
 0x5b7   : > { %9070 = vmatprep.subr.bf16.mxu0 %v9069_v36  ;;  %9052 = vmatpush3.bf16.msra.mxu1 %v9049_v29 }
 0x5b8   : > { %9054 = vmatprep.subr.bf16.mxu1 %v9053_v28 }
 0x5ba   : > { %9072 = vmatpush3.bf16.msra.mxu0 %v9069_v36 }
 0x5bb   : > { %9074 = vmatprep.subr.bf16.mxu0 %v9073_v32  ;;  %9056 = vmatpush3.bf16.msra.mxu1 %v9053_v28 }
 0x5bc   : > { %9082 = vmatprep.subr.bf16.mxu1 %v9914_v5 }
 0x5be   : > { %9076 = vmatpush3.bf16.msra.mxu0 %v9073_v32 }
 0x5bf   : > { %9078 = vmatprep.subr.bf16.mxu0 %v9077_v38 }
 0x5c2   : > { %9080 = vmatpush3.bf16.msra.mxu0 %v9077_v38 }
 0x5c3   : > { %9090 = vmatprep.subr.bf16.mxu0 %v10501_v62 }
 0x680   : > { %v7714_v40 = vpop.f32.mrb[12].mxu0 }
 0x681   : > { %v2610_v42 = vpop.f32.mrb[13].mxu0 }
 0x682   : > { %7739 = vmatprep.mubr.msk.f32.mxu1 %vm785_vm1, %v2610_v42  ;;  %7766 = vmatprep.mubr.msk.f32.mxu0 %vm785_vm1, %v2610_v42  ;;  %v10787_v42 = vld [vmem:[%s11779_s7 + $0xa8] sm:$0xf] }
 0x683   : > { %7740 = vmatmul.mubr.msk.f32.vlgmr.msra.gmra.mrb[2].mxu1 %vm785_vm1, %v7714_v40  ;;  %7767 = vmatmul.mubr.msk.f32.vlgmr.msra.gmra.mrb[4].mxu0 %vm785_vm1, %v7714_v40  ;;  %v10782_v40 = vld [vmem:[%s11778_s6 + $0xa8] sm:$0xf] }
 0x684   : > { %9084 = vmatpush3.bf16.msra.mxu1 %v9914_v5  ;;  %7777 = vmatprep.mubr.msk.f32.mxu1 %vm498_vm0, %v6272_v43  ;;  %v3145_v43 = vld [vmem:[%s11778_s6] sm:$0xff] }
 0x685   : > { %9086 = vmatprep.subr.bf16.mxu1 %v9916_v7  ;;  %9092 = vmatpush3.bf16.msra.mxu0 %v10501_v62 }
 0x686   : > { %9094 = vmatprep.subr.bf16.mxu0 %v10521_v8 }
 0x688   : > { %9088 = vmatpush3.bf16.msra.mxu1 %v9916_v7 }
 0x689   : > { %9114 = vmatprep.subr.bf16.mxu1 %v10535_v11  ;;  %9096 = vmatpush3.bf16.msra.mxu0 %v10521_v8  ;;  %v6283_v8 = vld [vmem:[%s11777_s5 + $0x28] sm:$0x1f] }
 0x68a   : > { %9098 = vmatprep.subr.bf16.mxu0 %v10544_v14 }
 0x68b   : > { %7778 = vmatmul.mubr.msk.f32.vlgmr.msra.gmra.mrb[14].mxu1 %vm498_vm0, %v6273_v41  ;;  %v3146_v41 = vld [vmem:[%s11778_s6 + $0x8] sm:$0xff] }
 0x68c   : > { %9116 = vmatpush3.bf16.msra.mxu1 %v10535_v11  ;;  %v6305_v11 = vld [vmem:[%s11779_s7 + $0x60] sm:$0xff] }
 0x68d   : > { %9118 = vmatprep.subr.bf16.mxu1 %v10558_v18  ;;  %9100 = vmatpush3.bf16.msra.mxu0 %v10544_v14  ;;  %v6286_v14 = vld [vmem:[%s11777_s5 + $0x8] sm:$0x1f]  ;;  %v10693_v15 = vpack.c.bf16 %v6305_v11, %v6304_v10  ;;  %v3153_v11 = vld [vmem:[%s11778_s6 + $0x40] sm:$0xff] }
 0x68e   : > { %9102 = vmatprep.subr.bf16.mxu0 %v9045_v22 }
 0x690   : > { %9120 = vmatpush3.bf16.msra.mxu1 %v10558_v18  ;;  %v6307_v18 = vld [vmem:[%s11779_s7 + $0x70] sm:$0xff] }
 0x691   : > { %9122 = vmatprep.subr.bf16.mxu1 %v9065_v25  ;;  %9104 = vmatpush3.bf16.msra.mxu0 %v9045_v22  ;;  %v10716_v22 = vpack.c.bf16 %v6307_v18, %v6306_v17  ;;  %v10893_v17 = vpack.c.bf16 %v3154_v12, %v3153_v11  ;;  %v6385_v11 = vld [vmem:[%s11779_s7 + $0x120] sm:$0xff]  ;;  %v6373_v12 = vld [vmem:[%s11778_s6 + $0x128] sm:$0xff] }
 0x692   : > { %9106 = vmatprep.subr.bf16.mxu0 %v9049_v29 }
 0x694   : > { %9124 = vmatpush3.bf16.msra.mxu1 %v9065_v25  ;;  %v6309_v25 = vld [vmem:[%s11779_s7 + $0x80] sm:$0xff] }
 0x695   : > { %9126 = vmatprep.subr.bf16.mxu1 %v9069_v36  ;;  %9108 = vmatpush3.bf16.msra.mxu0 %v9049_v29  ;;  %v10738_v29 = vpack.c.bf16 %v6309_v25, %v6308_v24  ;;  %v6319_v24 = vld [vmem:[%s11777_s5 + $0x30] sm:$0x1f] }
 0x696   : > { %9110 = vmatprep.subr.bf16.mxu0 %v9053_v28  ;;  %v6346_v25 = vld [vmem:[%s11779_s7 + $0xb0] sm:$0xff] }
 0x698   : > { %9128 = vmatpush3.bf16.msra.mxu1 %v9069_v36  ;;  %v6311_v36 = vld [vmem:[%s11779_s7 + $0x90] sm:$0xff] }
 0x699   : > { %9130 = vmatprep.subr.bf16.mxu1 %v9073_v32  ;;  %9112 = vmatpush3.bf16.msra.mxu0 %v9053_v28  ;;  %v10758_v28 = vpack.c.bf16 %v6311_v36, %v6310_v31  ;;  %v11025_v31 = vpack.c.bf16 %v6347_v26, %v6346_v25  ;;  %v6378_v25 = vld [vmem:[%s11778_s6 + $0x150] sm:$0xff] }
 0x69a   : > { %9137 = vmatprep.subr.bf16.mxu0 %v9768_v52 }
 0x69c   : > { %9132 = vmatpush3.bf16.msra.mxu1 %v9073_v32  ;;  %v10762_v32 = vpack.c.bf16 %v6298_v21, %v6297_v37  ;;  %v6348_v37 = vld [vmem:[%s11779_s7 + $0xc0] sm:$0xff]  ;;  %v6349_v21 = vld [vmem:[%s11779_s7 + $0xc8] sm:$0xff] }
 0x69d   : > { %9134 = vmatprep.subr.bf16.mxu1 %v9077_v38 }
 0x6a0   : > { %9136 = vmatpush3.bf16.msra.mxu1 %v9077_v38  ;;  %v10772_v38 = vpack.c.bf16 %v6313_v39, %v6312_v35  ;;  %v9296_v35 = vpack.c.bf16 %v6349_v21, %v6348_v37  ;;  %v6392_v37 = vld [vmem:[%s11779_s7 + $0x158] sm:$0xf] }
 0x6a1   : > { %9141 = vmatprep.subr.bf16.mxu1 %v9768_v52 }
 0x756   : > { %v7741_v5 = vpop.f32.mrb[2].mxu1  ;;  %v7768_v7 = vpop.f32.mrb[4].mxu0 }
 0x757   : > { %v9588_v44 = vadd.f32 %v7768_v7, %v10192_v33  ;;  %v2704_v45 = vpop.f32.mrb[3].mxu1  ;;  %v2794_v46 = vpop.f32.mrb[5].mxu0  ;;  %v9770_v33 = vmov 0.0   ;;  %v3157_v7 = vld [vmem:[%s11779_s7 + $0x8] sm:$0xff] }
 0x758   : > { %v9589_v47 = vadd.f32 %v2794_v46, %v10194_v34 }
 0x759   : > { %v3050_v48 = vmax.f32 %v7741_v5, %v9588_v44  ;;  %v3156_v5 = vld [vmem:[%s11779_s7] sm:$0xff] }
 0x75a   : > { %v3049_v49 = vmax.f32 %v2704_v45, %v9589_v47 }
 0x75e   : > { %v7779_v50 = vpop.f32.mrb[14].mxu1 }
 0x75f   : > { %v2880_v51 = vpop.f32.mrb[15].mxu1 }
 0x760   : > { %7804 = vmatprep.mubr.msk.f32.mxu0 %vm785_vm1, %v2880_v51  ;;  %7831 = vmatprep.mubr.msk.f32.mxu1 %vm785_vm1, %v2880_v51  ;;  %v3148_v51 = vld [vmem:[%s11778_s6 + $0x18] sm:$0xff] }
 0x761   : > { %7805 = vmatmul.mubr.msk.f32.vlgmr.msra.gmra.mrb[6].mxu0 %vm785_vm1, %v7779_v50  ;;  %7832 = vmatmul.mubr.msk.f32.vlgmr.msra.gmra.mrb[8].mxu1 %vm785_vm1, %v7779_v50  ;;  %v3147_v50 = vld [vmem:[%s11778_s6 + $0x10] sm:$0xff] }
 0x762   : > { %7838 = vmatprep.mubr.msk.f32.mxu0 %vm9769_vm2, %v9770_v33  ;;  %7845 = vmatprep.mubr.msk.f32.mxu1 %vm9769_vm2, %v9770_v33 }
 0x834   : > { %v7806_v34 = vpop.f32.mrb[6].mxu0  ;;  %v7833_v53 = vpop.f32.mrb[8].mxu1 }
 0x835   : > { %v3052_v54 = vmax.f32 %v7806_v34, %v7833_v53  ;;  %v2961_v55 = vpop.f32.mrb[7].mxu0  ;;  %v3038_v56 = vpop.f32.mrb[9].mxu1  ;;  %v3158_v34 = vld [vmem:[%s11779_s7 + $0x10] sm:$0xff]  ;;  %v3159_v53 = vld [vmem:[%s11779_s7 + $0x18] sm:$0xff] }
 0x836   : > { %v3051_v58 = vmax.f32 %v2961_v55, %v3038_v56  ;;  %v10829_v56 = vpack.c.bf16 %v3148_v51, %v3147_v50  ;;  %v6355_v50 = vld [vmem:[%s11779_s7 + $0xf8] sm:$0xff] }
 0x837   : > { %v3054_v59 = vmax.f32 %v3050_v48, %v3052_v54  ;;  %v10809_v48 = vpack.c.bf16 %v3146_v41, %v3145_v43  ;;  %v6340_v43 = vld [vmem:[%s11778_s6 + $0xe8] sm:$0xff] }
 0x838   : > { %v3053_v60 = vmax.f32 %v3049_v49, %v3051_v58  ;;  %v10811_v49 = vpack.c.bf16 %v3157_v7, %v3156_v5  ;;  %v3149_v58 = vld [vmem:[%s11778_s6 + $0x20] sm:$0xff] }
 0x839   : > { %v3063_v61 = vadd.f32 %v6280_v57, %v3054_v59  ;;  %v3150_v59 = vld [vmem:[%s11778_s6 + $0x28] sm:$0xff]  ;;  %v6352_v7 = vld [vmem:[%s11779_s7 + $0xe0] sm:$0xff] }
 0x83a   : > { %v3062_v62 = vadd.f32 %v6280_v57, %v3053_v60  ;;  %v10831_v57 = vpack.c.bf16 %v3159_v53, %v3158_v34  ;;  %v3160_v60 = vld [vmem:[%s11779_s7 + $0x20] sm:$0xff] }
 0x83b   : > { %v3065_v63 = vmax.f32 %v3063_v61, 0.0  ;;  %v3161_v61 = vld [vmem:[%s11779_s7 + $0x28] sm:$0xff]  ;;  %v6343_v34 = vld [vmem:[%s11778_s6 + $0x100] sm:$0xf] }
 0x83c   : > { %v3064_v0 = vmax.f32 %v3062_v62, 0.0  ;;  %v10853_v62 = vpack.c.bf16 %v3150_v59, %v3149_v58  ;;  %v6356_v53 = vld [vmem:[%s11779_s7 + $0x100] sm:$0xf]  ;;  %v6370_v58 = vld [vmem:[%s11778_s6 + $0x110] sm:$0xff] }
 0x83e   : > { %v10647_v2 = vpack.c.bf16 %v3065_v63, %v3064_v0  ;;  %v10855_v63 = vpack.c.bf16 %v3161_v61, %v3160_v60  ;;  %v3151_v0 = vld [vmem:[%s11778_s6 + $0x30] sm:$0xff]  ;;  %v6382_v60 = vld [vmem:[%s11779_s7 + $0x108] sm:$0xff] }
 0x83f   : > { %v6383_v61 = vld [vmem:[%s11779_s7 + $0x110] sm:$0xff] }
 0x840   : > { %9140 = vmatpush3.bf16.msk.msra.mxu0 %vm10643_vm5, %v10647_v2  ;;  %9144 = vmatpush3.bf16.msk.msra.mxu1 %vm10643_vm5, %v10647_v2 }
 0x841   : > { %9145 = vmatprep.subr.bf16.mxu0 %v9768_v52  ;;  %9149 = vmatprep.subr.bf16.mxu1 %v9768_v52 }
 0x843   : > { %7839 = vmatmul.mubr.msk.f32.vlgmr.msra.gmra.mrb[14].mxu0 %vm3067_vm6, %v3066_v6  ;;  %7846 = vmatmul.mubr.msk.f32.vlgmr.msra.gmra.mrb[16].mxu1 %vm3067_vm6, %v6283_v8  ;;  %v3163_v6 = vld [vmem:[%s11779_s7 + $0x38] sm:$0xff]  ;;  %v10873_v8 = vpack.c.bf16 %v3152_v3, %v3151_v0  ;;  %v6372_v0 = vld [vmem:[%s11778_s6 + $0x120] sm:$0xff] }
 0x844   : > { %9148 = vmatpush3.bf16.msk.msra.mxu0 %vm10643_vm5, %v10647_v2  ;;  %7852 = vmatprep.mubr.msk.f32.mxu0 %vm9769_vm2, %v9770_v33  ;;  %v10875_v10 = vpack.c.bf16 %v3163_v6, %v3162_v4  ;;  %v6366_v4 = vld [vmem:[%s11777_s5 + $0x18] sm:$0x1f]  ;;  %v11163_v6 = vpack.c.bf16 %v6383_v61, %v6382_v60  ;;  %v6413_v61 = vld [vmem:[%s11778_s6 + $0x1a0] sm:$0xff] }
 0x845   : > { %9179 = vmatprep.subr.bf16.mxu0 %v9768_v52  ;;  %9151 = vmatpush3.bf16.msra.mxu1 %v10669_v9  ;;  %v6425_v60 = vld [vmem:[%s11779_s7 + $0x198] sm:$0xff] }
 0x846   : > { %9152 = vmatprep.subr.bf16.mxu1 %v9768_v52  ;;  %7877 = vmatprep.mubr.msk.f32.mxu1 %vm9769_vm2, %v9770_v33 }
 0x847   : > { %7853 = vmatmul.mubr.msk.f32.vlgmr.msra.gmra.mrb[16].mxu0 %vm3067_vm6, %v6286_v14  ;;  %v3165_v14 = vld [vmem:[%s11779_s7 + $0x48] sm:$0xff] }
 0x848   : > { %9181 = vmatpush3.bf16.msra.mxu0 %v10693_v15  ;;  %7927 = vmatprep.mubr.msk.f32.mxu0 %vm9769_vm2, %v9770_v33  ;;  %v10895_v18 = vpack.c.bf16 %v3165_v14, %v3164_v13  ;;  %v6374_v13 = vld [vmem:[%s11778_s6 + $0x130] sm:$0xff] }
 0x849   : > { %9182 = vmatprep.subr.bf16.mxu0 %v9768_v52  ;;  %9154 = vmatpush3.bf16.msra.mxu1 %v10697_v16 }
 0x84a   : > { %9155 = vmatprep.subr.bf16.mxu1 %v9768_v52 }
 0x84c   : > { %9184 = vmatpush3.bf16.msra.mxu0 %v10716_v22 }
 0x84d   : > { %9185 = vmatprep.subr.bf16.mxu0 %v9768_v52  ;;  %9157 = vmatpush3.bf16.msra.mxu1 %v10722_v23 }
 0x84e   : > { %9158 = vmatprep.subr.bf16.mxu1 %v9768_v52 }
 0x850   : > { %9187 = vmatpush3.bf16.msra.mxu0 %v10738_v29 }
 0x851   : > { %9188 = vmatprep.subr.bf16.mxu0 %v9768_v52  ;;  %9160 = vmatpush3.bf16.msra.mxu1 %v10742_v30 }
 0x852   : > { %9161 = vmatprep.subr.bf16.mxu1 %v9768_v52 }
 0x854   : > { %9190 = vmatpush3.bf16.msra.mxu0 %v10758_v28 }
 0x855   : > { %9191 = vmatprep.subr.bf16.mxu0 %v9768_v52  ;;  %9163 = vmatpush3.bf16.msra.mxu1 %v10762_v32 }
 0x856   : > { %7875 = vmatprep.subr.mxu1 %v9770_v33 }
 0x858   : > { %9193 = vmatpush3.bf16.msra.mxu0 %v10772_v38 }
 0x859   : > { %7925 = vmatprep.subr.mxu0 %v9770_v33  ;;  %7876 = vmatpush3.msk.msra.mxu1 %vm3333_vm7, %v10782_v40 }
 0x85a   : > { %9164 = vmatprep.subr.bf16.mxu1 %v9768_v52 }
 0x85c   : > { %7926 = vmatpush3.msk.msra.mxu0 %vm3333_vm7, %v10787_v42 }
 0x85d   : > { %9194 = vmatprep.subr.bf16.mxu0 %v9768_v52 }
 0x916   : > { %v3141_v44 = vpop.f32.mrb[14].mxu0  ;;  %v10807_v45 = vpop.f32.mrb[16].mxu1 }
 0x917   : > { %v7840_v46 = vpop.f32.mrb[15].mxu0  ;;  %v7847_v47 = vpop.f32.mrb[17].mxu1 }
 0x918   : > { %v6342_v46 = vld [vmem:[%s11778_s6 + $0xf8] sm:$0xff] }
 0x91a   : > { %v3313_v54 = vpop.f32.mrb[16].mxu0 }
 0x91b   : > { %v7854_v55 = vpop.f32.mrb[17].mxu0  ;;  %7878 = vmatmul.mubr.msk.f32.vlgmr.msra.gmra.mrb[18].mxu1 %vm3329_vm8, %v3313_v54  ;;  %7928 = vmatmul.mubr.msk.f32.vlgmr.msra.gmra.mrb[18].mxu0 %vm3329_vm8, %v3313_v54 }
 0x91c   : > { %9166 = vmatpush3.bf16.msra.mxu1 %v10809_v48  ;;  %9196 = vmatpush3.bf16.msra.mxu0 %v10811_v49 }
 0x91d   : > { %9167 = vmatprep.subr.bf16.mxu1 %v9768_v52  ;;  %9197 = vmatprep.subr.bf16.mxu0 %v9768_v52 }
 0x91e   : > { %7902 = vmatprep.mubr.msk.f32.mxu1 %vm9769_vm2, %v9770_v33  ;;  %7952 = vmatprep.mubr.msk.f32.mxu0 %vm9769_vm2, %v9770_v33 }
 0x920   : > { %9169 = vmatpush3.bf16.msra.mxu1 %v10829_v56  ;;  %9199 = vmatpush3.bf16.msra.mxu0 %v10831_v57 }
 0x921   : > { %9170 = vmatprep.subr.bf16.mxu1 %v9768_v52  ;;  %9200 = vmatprep.subr.bf16.mxu0 %v9768_v52 }
 0x924   : > { %9172 = vmatpush3.bf16.msra.mxu1 %v10853_v62  ;;  %9202 = vmatpush3.bf16.msra.mxu0 %v10855_v63 }
 0x925   : > { %9173 = vmatprep.subr.bf16.mxu1 %v9768_v52  ;;  %9203 = vmatprep.subr.bf16.mxu0 %v9768_v52 }
 0x928   : > { %9175 = vmatpush3.bf16.msra.mxu1 %v10873_v8  ;;  %9205 = vmatpush3.bf16.msra.mxu0 %v10875_v10 }
 0x929   : > { %9176 = vmatprep.subr.bf16.mxu1 %v9768_v52  ;;  %9206 = vmatprep.subr.bf16.mxu0 %v9768_v52 }
 0x92c   : > { %9178 = vmatpush3.bf16.msra.mxu1 %v10893_v17  ;;  %9208 = vmatpush3.bf16.msra.mxu0 %v10895_v18 }
 0x92d   : > { %7900 = vmatprep.subr.mxu1 %v9770_v33  ;;  %7950 = vmatprep.subr.mxu0 %v9770_v33 }
 0x930   : > { %7901 = vmatpush3.msk.msra.mxu1 %vm3333_vm7, %v10906_v19  ;;  %7951 = vmatpush3.msk.msra.mxu0 %vm3333_vm7, %v10911_v20 }
 0x931   : > { %7903 = vmatmul.mubr.msk.f32.vlgmr.msra.gmra.mrb[18].mxu1 %vm3329_vm8, %v3141_v44  ;;  %7953 = vmatmul.mubr.msk.f32.vlgmr.msra.gmra.mrb[18].mxu0 %vm3329_vm8, %v3141_v44  ;;  %v6353_v44 = vld [vmem:[%s11779_s7 + $0xe8] sm:$0xff] }
 0x932   : > { %9209 = vmatprep.subr.bf16.mxu1 %v9768_v52  ;;  %7959 = vmatprep.mubr.msk.f32.mxu1 %vm9769_vm2, %v9770_v33  ;;  %v9302_v47 = vpack.c.bf16 %v6353_v44, %v6352_v7  ;;  %v6402_v44 = vld [vmem:[%s11777_s5 + $0x20] sm:$0x1f] }
 0x933   : > { %9212 = vmatpush3.bf16.msk.msra.mxu1 %vm10643_vm5, %v10647_v2  ;;  %9213 = vmatprep.subr.bf16.mxu0 %v9768_v52 }
 0x934   : > { %9243 = vmatprep.subr.bf16.mxu1 %v9768_v52  ;;  %9215 = vmatpush3.bf16.msra.mxu0 %v10669_v9 }
 0x935   : > { %9216 = vmatprep.subr.bf16.mxu0 %v9768_v52  ;;  %7984 = vmatprep.mubr.msk.f32.mxu0 %vm9769_vm2, %v9770_v33 }
 0x936   : > { %7960 = vmatmul.mubr.msk.f32.vlgmr.msra.gmra.mrb[20].mxu1 %vm3067_vm6, %v6319_v24  ;;  %v6376_v24 = vld [vmem:[%s11778_s6 + $0x140] sm:$0xff] }
 0x937   : > { %9245 = vmatpush3.bf16.msra.mxu1 %v10693_v15  ;;  %8034 = vmatprep.mubr.msk.f32.mxu1 %vm9769_vm2, %v9770_v33 }
 0x938   : > { %9246 = vmatprep.subr.bf16.mxu1 %v9768_v52  ;;  %9218 = vmatpush3.bf16.msra.mxu0 %v10697_v16  ;;  %v6333_v16 = vld [vmem:[%s11778_s6 + $0xb0] sm:$0xff] }
 0x939   : > { %9219 = vmatprep.subr.bf16.mxu0 %v9768_v52 }
 0x93b   : > { %9248 = vmatpush3.bf16.msra.mxu1 %v10716_v22  ;;  %v6334_v22 = vld [vmem:[%s11778_s6 + $0xb8] sm:$0xff] }
 0x93c   : > { %9249 = vmatprep.subr.bf16.mxu1 %v9768_v52  ;;  %9221 = vmatpush3.bf16.msra.mxu0 %v10722_v23  ;;  %v10997_v23 = vpack.c.bf16 %v6334_v22, %v6333_v16  ;;  %v6388_v16 = vld [vmem:[%s11779_s7 + $0x138] sm:$0xff]  ;;  %v6389_v22 = vld [vmem:[%s11779_s7 + $0x140] sm:$0xff] }
 0x93d   : > { %9222 = vmatprep.subr.bf16.mxu0 %v9768_v52  ;;  %v9370_v26 = vpack.c.bf16 %v6389_v22, %v6388_v16 }
 0x93f   : > { %9251 = vmatpush3.bf16.msra.mxu1 %v10738_v29  ;;  %v6336_v29 = vld [vmem:[%s11778_s6 + $0xc8] sm:$0xff] }
 0x940   : > { %9252 = vmatprep.subr.bf16.mxu1 %v9768_v52  ;;  %9224 = vmatpush3.bf16.msra.mxu0 %v10742_v30  ;;  %v6330_v30 = vld [vmem:[%s11777_s5 + $0x10] sm:$0x1f]  ;;  %v11029_v36 = vpack.c.bf16 %v6336_v29, %v6335_v27  ;;  %v6390_v29 = vld [vmem:[%s11779_s7 + $0x148] sm:$0xff] }
 0x941   : > { %9225 = vmatprep.subr.bf16.mxu0 %v9768_v52 }
 0x943   : > { %9254 = vmatpush3.bf16.msra.mxu1 %v10758_v28  ;;  %v6337_v28 = vld [vmem:[%s11778_s6 + $0xd0] sm:$0xff] }
 0x944   : > { %9255 = vmatprep.subr.bf16.mxu1 %v9768_v52  ;;  %9227 = vmatpush3.bf16.msra.mxu0 %v10762_v32  ;;  %v6338_v32 = vld [vmem:[%s11778_s6 + $0xd8] sm:$0xff] }
 0x945   : > { %7982 = vmatprep.subr.mxu0 %v9770_v33  ;;  %v9284_v39 = vpack.c.bf16 %v6338_v32, %v6337_v28  ;;  %v6395_v32 = vld [vmem:[%s11777_s5 + $0x40] sm:$0x1f] }
 0x947   : > { %9257 = vmatpush3.bf16.msra.mxu1 %v10772_v38  ;;  %v6350_v38 = vld [vmem:[%s11779_s7 + $0xd0] sm:$0xff] }
 0x948   : > { %8032 = vmatprep.subr.mxu1 %v9770_v33  ;;  %7983 = vmatpush3.msk.msra.mxu0 %vm3333_vm7, %v10782_v40  ;;  %v6351_v40 = vld [vmem:[%s11779_s7 + $0xd8] sm:$0xff] }
 0x949   : > { %9228 = vmatprep.subr.bf16.mxu0 %v9768_v52  ;;  %v9299_v41 = vpack.c.bf16 %v6351_v40, %v6350_v38  ;;  %v6418_v40 = vld [vmem:[%s11779_s7 + $0x160] sm:$0xff] }
 0x94b   : > { %8033 = vmatpush3.msk.msra.mxu1 %vm3333_vm7, %v10787_v42  ;;  %v6339_v42 = vld [vmem:[%s11778_s6 + $0xe0] sm:$0xff] }
 0x94c   : > { %9258 = vmatprep.subr.bf16.mxu1 %v9768_v52  ;;  %v9287_v5 = vpack.c.bf16 %v6340_v43, %v6339_v42  ;;  %v6419_v42 = vld [vmem:[%s11779_s7 + $0x168] sm:$0xff] }
 0xa09   : > { %v3712_v9 = vpop.f32.mrb[20].mxu1 }
 0xa0a   : > { %v7961_v15 = vpop.f32.mrb[21].mxu1  ;;  %7985 = vmatmul.mubr.msk.f32.vlgmr.msra.gmra.mrb[20].mxu0 %vm3329_vm8, %v3712_v9  ;;  %8035 = vmatmul.mubr.msk.f32.vlgmr.msra.gmra.mrb[22].mxu1 %vm3329_vm8, %v3712_v9 }
 0xa0b   : > { %9230 = vmatpush3.bf16.msra.mxu0 %v10809_v48  ;;  %9260 = vmatpush3.bf16.msra.mxu1 %v10811_v49  ;;  %v6354_v49 = vld [vmem:[%s11779_s7 + $0xf0] sm:$0xff] }
 0xa0c   : > { %9231 = vmatprep.subr.bf16.mxu0 %v9768_v52  ;;  %9261 = vmatprep.subr.bf16.mxu1 %v9768_v52  ;;  %v9305_v51 = vpack.c.bf16 %v6355_v50, %v6354_v49  ;;  %v6409_v49 = vld [vmem:[%s11778_s6 + $0x180] sm:$0xff]  ;;  %v6410_v50 = vld [vmem:[%s11778_s6 + $0x188] sm:$0xff] }
 0xa0d   : > { %8009 = vmatprep.mubr.msk.f32.mxu0 %vm9769_vm2, %v9770_v33  ;;  %8059 = vmatprep.mubr.msk.f32.mxu1 %vm9769_vm2, %v9770_v33 }
 0xa0f   : > { %9233 = vmatpush3.bf16.msra.mxu0 %v10829_v56  ;;  %9263 = vmatpush3.bf16.msra.mxu1 %v10831_v57  ;;  %v6359_v56 = vld [vmem:[%s11777_s5 + $0x38] sm:$0x1f]  ;;  %v6369_v57 = vld [vmem:[%s11778_s6 + $0x108] sm:$0xff] }
 0xa10   : > { %9234 = vmatprep.subr.bf16.mxu0 %v9768_v52  ;;  %9264 = vmatprep.subr.bf16.mxu1 %v9768_v52  ;;  %v11139_v59 = vpack.c.bf16 %v6370_v58, %v6369_v57 }
 0xa13   : > { %9236 = vmatpush3.bf16.msra.mxu0 %v10853_v62  ;;  %9266 = vmatpush3.bf16.msra.mxu1 %v10855_v63  ;;  %v6371_v63 = vld [vmem:[%s11778_s6 + $0x118] sm:$0xff] }
 0xa14   : > { %9237 = vmatprep.subr.bf16.mxu0 %v9768_v52  ;;  %9267 = vmatprep.subr.bf16.mxu1 %v9768_v52 }
 0xa17   : > { %9239 = vmatpush3.bf16.msra.mxu0 %v10873_v8  ;;  %9269 = vmatpush3.bf16.msra.mxu1 %v10875_v10  ;;  %v11167_v8 = vpack.c.bf16 %v6372_v0, %v6371_v63  ;;  %v6384_v10 = vld [vmem:[%s11779_s7 + $0x118] sm:$0xff] }
 0xa18   : > { %9240 = vmatprep.subr.bf16.mxu0 %v9768_v52  ;;  %9270 = vmatprep.subr.bf16.mxu1 %v9768_v52  ;;  %v9364_v14 = vpack.c.bf16 %v6385_v11, %v6384_v10  ;;  %v6428_v10 = vld [vmem:[%s11779_s7 + $0x1b0] sm:$0xf] }
 0xa1b   : > { %9242 = vmatpush3.bf16.msra.mxu0 %v10893_v17  ;;  %9272 = vmatpush3.bf16.msra.mxu1 %v10895_v18  ;;  %v9352_v17 = vpack.c.bf16 %v6374_v13, %v6373_v12  ;;  %v6386_v18 = vld [vmem:[%s11779_s7 + $0x128] sm:$0xff] }
 0xa1c   : > { %8007 = vmatprep.subr.mxu0 %v9770_v33  ;;  %8057 = vmatprep.subr.mxu1 %v9770_v33  ;;  %v6431_v13 = vld [vmem:[%s11777_s5 + $0x48] sm:$0x1f] }
 0xa1f   : > { %8008 = vmatpush3.msk.msra.mxu0 %vm3333_vm7, %v10906_v19  ;;  %8058 = vmatpush3.msk.msra.mxu1 %vm3333_vm7, %v10911_v20  ;;  %v6387_v19 = vld [vmem:[%s11779_s7 + $0x130] sm:$0xff]  ;;  %v6375_v20 = vld [vmem:[%s11778_s6 + $0x138] sm:$0xff] }
 0xa20   : > { %8010 = vmatmul.mubr.msk.f32.vlgmr.msra.gmra.mrb[20].mxu0 %vm3329_vm8, %v10807_v45  ;;  %8060 = vmatmul.mubr.msk.f32.vlgmr.msra.gmra.mrb[22].mxu1 %vm3329_vm8, %v10807_v45  ;;  %v6341_v45 = vld [vmem:[%s11778_s6 + $0xf0] sm:$0xff]  ;;  %v9367_v9 = vpack.c.bf16 %v6387_v19, %v6386_v18  ;;  %v9355_v15 = vpack.c.bf16 %v6376_v24, %v6375_v20 }
 0xa21   : > { %9273 = vmatprep.subr.bf16.mxu0 %v9768_v52  ;;  %8066 = vmatprep.mubr.msk.f32.mxu0 %vm9769_vm2, %v9770_v33  ;;  %v9290_v48 = vpack.c.bf16 %v6342_v46, %v6341_v45  ;;  %v11301_v45 = vpack.c.bf16 %v6419_v42, %v6418_v40  ;;  %v5855_v42 = vld [vmem:[%s11783_s11 + $0x20] sm:$0xff] }
 0xa22   : > { %9276 = vmatpush3.bf16.msk.msra.mxu0 %vm10643_vm5, %v10647_v2  ;;  %9277 = vmatprep.subr.bf16.mxu1 %v9768_v52 }
 0xa23   : > { %9279 = vmatpush3.bf16.msra.mxu1 %v10997_v23  ;;  %9292 = vmatprep.subr.bf16.mxu0 %v9768_v52 }
 0xa24   : > { %9280 = vmatprep.subr.bf16.mxu1 %v9768_v52  ;;  %8091 = vmatprep.mubr.msk.f32.mxu1 %vm9769_vm2, %v9770_v33 }
 0xa25   : > { %8067 = vmatmul.mubr.msk.f32.vlgmr.msra.gmra.mrb[22].mxu0 %vm3067_vm6, %v6330_v30  ;;  %v6391_v30 = vld [vmem:[%s11779_s7 + $0x150] sm:$0xff] }
 0xa26   : > { %9294 = vmatpush3.bf16.msra.mxu0 %v11025_v31  ;;  %8116 = vmatprep.mubr.msk.f32.mxu0 %vm9769_vm2, %v9770_v33 }
 0xa27   : > { %9282 = vmatpush3.bf16.msra.mxu1 %v11029_v36  ;;  %9295 = vmatprep.subr.bf16.mxu0 %v9768_v52 }
 0xa28   : > { %9283 = vmatprep.subr.bf16.mxu1 %v9768_v52 }
 0xa2a   : > { %9297 = vmatpush3.bf16.msra.mxu0 %v9296_v35 }
 0xa2b   : > { %9285 = vmatpush3.bf16.msra.mxu1 %v9284_v39  ;;  %9298 = vmatprep.subr.bf16.mxu0 %v9768_v52 }
 0xa2c   : > { %9286 = vmatprep.subr.bf16.mxu1 %v9768_v52 }
 0xa2e   : > { %9300 = vmatpush3.bf16.msra.mxu0 %v9299_v41 }
 0xa2f   : > { %9288 = vmatpush3.bf16.msra.mxu1 %v9287_v5  ;;  %9301 = vmatprep.subr.bf16.mxu0 %v9768_v52 }
 0xa30   : > { %9289 = vmatprep.subr.bf16.mxu1 %v9768_v52 }
 0xa32   : > { %9303 = vmatpush3.bf16.msra.mxu0 %v9302_v47 }
 0xa33   : > { %9291 = vmatpush3.bf16.msra.mxu1 %v9290_v48  ;;  %9304 = vmatprep.subr.bf16.mxu0 %v9768_v52 }
 0xa34   : > { %8089 = vmatprep.subr.mxu1 %v9770_v33 }
 0xa36   : > { %9306 = vmatpush3.bf16.msra.mxu0 %v9305_v51 }
 0xa37   : > { %8090 = vmatpush3.msk.msra.mxu1 %vm3333_vm7, %v6343_v34  ;;  %8114 = vmatprep.subr.mxu0 %v9770_v33 }
 0xa38   : > { %9307 = vmatprep.subr.bf16.mxu1 %v9768_v52 }
 0xa3a   : > { %8115 = vmatpush3.msk.msra.mxu0 %vm3333_vm7, %v6356_v53 }
 0xa3b   : > { %9311 = vmatprep.subr.bf16.mxu0 %v9768_v52 }
 0xaf8   : > { %v4073_v54 = vpop.f32.mrb[22].mxu0 }
 0xaf9   : > { %v8068_v55 = vpop.f32.mrb[23].mxu0  ;;  %8092 = vmatmul.mubr.msk.f32.vlgmr.msra.gmra.mrb[18].mxu1 %vm3329_vm8, %v4073_v54  ;;  %8117 = vmatmul.mubr.msk.f32.vlgmr.msra.gmra.mrb[18].mxu0 %vm3329_vm8, %v4073_v54  ;;  %v6423_v54 = vld [vmem:[%s11779_s7 + $0x188] sm:$0xff] }
 0xafa   : > { %9310 = vmatpush3.bf16.msk.msra.mxu1 %vm10643_vm5, %v10647_v2  ;;  %8123 = vmatprep.mubr.msk.f32.mxu1 %vm9769_vm2, %v9770_v33  ;;  %v6411_v55 = vld [vmem:[%s11778_s6 + $0x190] sm:$0xff] }
 0xafb   : > { %9313 = vmatpush3.bf16.msra.mxu0 %v10997_v23  ;;  %9326 = vmatprep.subr.bf16.mxu1 %v9768_v52  ;;  %v6377_v23 = vld [vmem:[%s11778_s6 + $0x148] sm:$0xff] }
 0xafc   : > { %9314 = vmatprep.subr.bf16.mxu0 %v9768_v52  ;;  %8148 = vmatprep.mubr.msk.f32.mxu0 %vm9769_vm2, %v9770_v33  ;;  %v9358_v27 = vpack.c.bf16 %v6378_v25, %v6377_v23  ;;  %v5429_v25 = vld [vmem:[%s11781_s9 + $0x20] sm:$0xff] }
 0xafd   : > { %8124 = vmatmul.mubr.msk.f32.vlgmr.msra.gmra.mrb[24].mxu1 %vm3067_vm6, %v6359_v56  ;;  %v6412_v56 = vld [vmem:[%s11778_s6 + $0x198] sm:$0xff] }
 0xafe   : > { %9328 = vmatpush3.bf16.msra.mxu1 %v11025_v31  ;;  %8173 = vmatprep.mubr.msk.f32.mxu1 %vm9769_vm2, %v9770_v33  ;;  %v9373_v31 = vpack.c.bf16 %v6391_v30, %v6390_v29  ;;  %v9423_v58 = vpack.c.bf16 %v6412_v56, %v6411_v55  ;;  %v5431_v29 = vld [vmem:[%s11781_s9 + $0x30] sm:$0xff]  ;;  %v5432_v30 = vld [vmem:[%s11781_s9 + $0x38] sm:$0xff]  ;;  %v6438_v56 = vld [vmem:[%s11780_s8] ss:$0 sm:$0xff] }
 0xaff   : > { %9316 = vmatpush3.bf16.msra.mxu0 %v11029_v36  ;;  %9329 = vmatprep.subr.bf16.mxu1 %v9768_v52  ;;  %v6379_v36 = vld [vmem:[%s11778_s6 + $0x158] sm:$0xf] }
 0xb00   : > { %9317 = vmatprep.subr.bf16.mxu0 %v9768_v52 }
 0xb02   : > { %9331 = vmatpush3.bf16.msra.mxu1 %v9296_v35  ;;  %v6405_v35 = vld [vmem:[%s11778_s6 + $0x160] sm:$0xff] }
 0xb03   : > { %9319 = vmatpush3.bf16.msra.mxu0 %v9284_v39  ;;  %9332 = vmatprep.subr.bf16.mxu1 %v9768_v52  ;;  %v6406_v39 = vld [vmem:[%s11778_s6 + $0x168] sm:$0xff] }
 0xb04   : > { %9320 = vmatprep.subr.bf16.mxu0 %v9768_v52  ;;  %v11277_v38 = vpack.c.bf16 %v6406_v39, %v6405_v35  ;;  %v5853_v35 = vld [vmem:[%s11783_s11 + $0x10] sm:$0xff] }
 0xb06   : > { %9334 = vmatpush3.bf16.msra.mxu1 %v9299_v41  ;;  %v6407_v41 = vld [vmem:[%s11778_s6 + $0x170] sm:$0xff] }
 0xb07   : > { %9322 = vmatpush3.bf16.msra.mxu0 %v9287_v5  ;;  %9335 = vmatprep.subr.bf16.mxu1 %v9768_v52  ;;  %v6408_v5 = vld [vmem:[%s11778_s6 + $0x178] sm:$0xff] }
 0xb08   : > { %9323 = vmatprep.subr.bf16.mxu0 %v9768_v52  ;;  %v11305_v46 = vpack.c.bf16 %v6408_v5, %v6407_v41  ;;  %v5857_v5 = vld [vmem:[%s11783_s11 + $0x30] sm:$0xff] }
 0xb0a   : > { %9337 = vmatpush3.bf16.msra.mxu1 %v9302_v47  ;;  %v6420_v47 = vld [vmem:[%s11779_s7 + $0x170] sm:$0xff] }
 0xb0b   : > { %9325 = vmatpush3.bf16.msra.mxu0 %v9290_v48  ;;  %9338 = vmatprep.subr.bf16.mxu1 %v9768_v52  ;;  %v6421_v48 = vld [vmem:[%s11779_s7 + $0x178] sm:$0xff] }
 0xb0c   : > { %8146 = vmatprep.subr.mxu0 %v9770_v33 }
 0xb0e   : > { %9340 = vmatpush3.bf16.msra.mxu1 %v9305_v51  ;;  %v9432_v51 = vpack.c.bf16 %v6421_v48, %v6420_v47  ;;  %v5861_v48 = vld [vmem:[%s11783_s11 + $0x50] sm:$0xff] }
 0xb0f   : > { %8147 = vmatpush3.msk.msra.mxu0 %vm3333_vm7, %v6343_v34  ;;  %8171 = vmatprep.subr.mxu1 %v9770_v33  ;;  %v9420_v34 = vpack.c.bf16 %v6410_v50, %v6409_v49  ;;  %v5862_v49 = vld [vmem:[%s11783_s11 + $0x58] sm:$0xff] }
 0xb10   : > { %9341 = vmatprep.subr.bf16.mxu0 %v9768_v52  ;;  %v9568_v50 = vpack.c.bf16 %v5862_v49, %v5861_v48  ;;  %v6475_v49 = vld [vmem:[%s11781_s9 + $0x150] sm:$0xff] }
 0xb12   : > { %8172 = vmatpush3.msk.msra.mxu1 %vm3333_vm7, %v6356_v53  ;;  %v6422_v53 = vld [vmem:[%s11779_s7 + $0x180] sm:$0xff] }
 0xb13   : > { %9345 = vmatprep.subr.bf16.mxu1 %v9768_v52  ;;  %v9435_v57 = vpack.c.bf16 %v6423_v54, %v6422_v53 }
 0xbd0   : > { %v4323_v62 = vpop.f32.mrb[24].mxu1 }
 0xbd1   : > { %v8125_v3 = vpop.f32.mrb[25].mxu1  ;;  %8149 = vmatmul.mubr.msk.f32.vlgmr.msra.gmra.mrb[20].mxu0 %vm3329_vm8, %v4323_v62  ;;  %8174 = vmatmul.mubr.msk.f32.vlgmr.msra.gmra.mrb[22].mxu1 %vm3329_vm8, %v4323_v62  ;;  %v6414_v62 = vld [vmem:[%s11778_s6 + $0x1a8] sm:$0xff] }
 0xbd2   : > { %9344 = vmatpush3.bf16.msk.msra.mxu0 %vm10643_vm5, %v10647_v2  ;;  %8180 = vmatprep.mubr.msk.f32.mxu0 %vm9769_vm2, %v9770_v33  ;;  %v9426_v0 = vpack.c.bf16 %v6414_v62, %v6413_v61  ;;  %v6426_v3 = vld [vmem:[%s11779_s7 + $0x1a0] sm:$0xff] }
 0xbd3   : > { %9347 = vmatpush3.bf16.msra.mxu1 %v11139_v59  ;;  %9360 = vmatprep.subr.bf16.mxu0 %v9768_v52 }
 0xbd4   : > { %9348 = vmatprep.subr.bf16.mxu1 %v9768_v52  ;;  %8205 = vmatprep.mubr.msk.f32.mxu1 %vm9769_vm2, %v9770_v33 }
 0xbd5   : > { %8181 = vmatmul.mubr.msk.f32.vlgmr.msra.gmra.mrb[24].mxu0 %vm3067_vm6, %v6366_v4  ;;  %v6427_v4 = vld [vmem:[%s11779_s7 + $0x1a8] sm:$0xff] }
 0xbd6   : > { %9362 = vmatpush3.bf16.msra.mxu0 %v11163_v6  ;;  %8230 = vmatprep.mubr.msk.f32.mxu0 %vm9769_vm2, %v9770_v33 }
 0xbd7   : > { %9350 = vmatpush3.bf16.msra.mxu1 %v11167_v8  ;;  %9363 = vmatprep.subr.bf16.mxu0 %v9768_v52 }
 0xbd8   : > { %9351 = vmatprep.subr.bf16.mxu1 %v9768_v52 }
 0xbda   : > { %9365 = vmatpush3.bf16.msra.mxu0 %v9364_v14 }
 0xbdb   : > { %9353 = vmatpush3.bf16.msra.mxu1 %v9352_v17  ;;  %9366 = vmatprep.subr.bf16.mxu0 %v9768_v52 }
 0xbdc   : > { %9354 = vmatprep.subr.bf16.mxu1 %v9768_v52 }
 0xbde   : > { %9368 = vmatpush3.bf16.msra.mxu0 %v9367_v9 }
 0xbdf   : > { %9356 = vmatpush3.bf16.msra.mxu1 %v9355_v15  ;;  %9369 = vmatprep.subr.bf16.mxu0 %v9768_v52 }
 0xbe0   : > { %9357 = vmatprep.subr.bf16.mxu1 %v9768_v52 }
 0xbe2   : > { %9371 = vmatpush3.bf16.msra.mxu0 %v9370_v26 }
 0xbe3   : > { %9359 = vmatpush3.bf16.msra.mxu1 %v9358_v27  ;;  %9372 = vmatprep.subr.bf16.mxu0 %v9768_v52 }
 0xbe4   : > { %8203 = vmatprep.subr.mxu1 %v9770_v33 }
 0xbe6   : > { %9374 = vmatpush3.bf16.msra.mxu0 %v9373_v31 }
 0xbe7   : > { %8204 = vmatpush3.msk.msra.mxu1 %vm3333_vm7, %v6379_v36  ;;  %8228 = vmatprep.subr.mxu0 %v9770_v33 }
 0xbe8   : > { %9375 = vmatprep.subr.bf16.mxu1 %v9768_v52 }
 0xbea   : > { %8229 = vmatpush3.msk.msra.mxu0 %vm3333_vm7, %v6392_v37 }
 0xbeb   : > { %9379 = vmatprep.subr.bf16.mxu0 %v9768_v52 }
 0xca8   : > { %v4543_v21 = vpop.f32.mrb[24].mxu0 }
 0xca9   : > { %v8182_v28 = vpop.f32.mrb[25].mxu0  ;;  %8206 = vmatmul.mubr.msk.f32.vlgmr.msra.gmra.mrb[18].mxu1 %vm3329_vm8, %v4543_v21  ;;  %8231 = vmatmul.mubr.msk.f32.vlgmr.msra.gmra.mrb[18].mxu0 %vm3329_vm8, %v4543_v21 }
 0xcaa   : > { %9378 = vmatpush3.bf16.msk.msra.mxu1 %vm10643_vm5, %v10647_v2  ;;  %8237 = vmatprep.mubr.msk.f32.mxu1 %vm9769_vm2, %v9770_v33  ;;  %v5851_v28 = vld [vmem:[%s11783_s11] sm:$0xff] }
 0xcab   : > { %9381 = vmatpush3.bf16.msra.mxu0 %v11139_v59  ;;  %9394 = vmatprep.subr.bf16.mxu1 %v9768_v52  ;;  %v6424_v59 = vld [vmem:[%s11779_s7 + $0x190] sm:$0xff] }
 0xcac   : > { %9382 = vmatprep.subr.bf16.mxu0 %v9768_v52  ;;  %8262 = vmatprep.mubr.msk.f32.mxu0 %vm9769_vm2, %v9770_v33  ;;  %v9438_v63 = vpack.c.bf16 %v6425_v60, %v6424_v59  ;;  %v6441_v59 = vld [vmem:[%s11781_s9 + $0x58] sm:$0xff] }
 0xcad   : > { %8238 = vmatmul.mubr.msk.f32.vlgmr.msra.gmra.mrb[26].mxu1 %vm3067_vm6, %v6395_v32  ;;  %v5852_v32 = vld [vmem:[%s11783_s11 + $0x8] sm:$0xff] }
 0xcae   : > { %9396 = vmatpush3.bf16.msra.mxu1 %v11163_v6  ;;  %8287 = vmatprep.mubr.msk.f32.mxu1 %vm9769_vm2, %v9770_v33  ;;  %v9441_v6 = vpack.c.bf16 %v6427_v4, %v6426_v3  ;;  %v9553_v39 = vpack.c.bf16 %v5852_v32, %v5851_v28  ;;  %v6444_v4 = vld [vmem:[%s11781_s9 + $0x70] sm:$0xff]  ;;  %v6464_v28 = vld [vmem:[%s11781_s9 + $0x100] sm:$0xff]  ;;  %v6465_v32 = vld [vmem:[%s11781_s9 + $0x108] sm:$0xff] }
 0xcaf   : > { %9384 = vmatpush3.bf16.msra.mxu0 %v11167_v8  ;;  %9397 = vmatprep.subr.bf16.mxu1 %v9768_v52  ;;  %v6415_v8 = vld [vmem:[%s11778_s6 + $0x1b0] sm:$0xf] }
 0xcb0   : > { %9385 = vmatprep.subr.bf16.mxu0 %v9768_v52 }
 0xcb2   : > { %9399 = vmatpush3.bf16.msra.mxu1 %v9364_v14 }
 0xcb3   : > { %9387 = vmatpush3.bf16.msra.mxu0 %v9352_v17  ;;  %9400 = vmatprep.subr.bf16.mxu1 %v9768_v52 }
 0xcb4   : > { %9388 = vmatprep.subr.bf16.mxu0 %v9768_v52 }
 0xcb6   : > { %9402 = vmatpush3.bf16.msra.mxu1 %v9367_v9  ;;  %v5427_v9 = vld [vmem:[%s11781_s9 + $0x10] sm:$0xff] }
 0xcb7   : > { %9390 = vmatpush3.bf16.msra.mxu0 %v9355_v15  ;;  %9403 = vmatprep.subr.bf16.mxu1 %v9768_v52  ;;  %v5428_v15 = vld [vmem:[%s11781_s9 + $0x18] sm:$0xff] }
 0xcb8   : > { %9391 = vmatprep.subr.bf16.mxu0 %v9768_v52  ;;  %v9481_v23 = vpack.c.bf16 %v5428_v15, %v5427_v9  ;;  %v6455_v15 = vld [vmem:[%s11781_s9 + $0xc0] sm:$0xff] }
 0xcba   : > { %9405 = vmatpush3.bf16.msra.mxu1 %v9370_v26  ;;  %v5430_v26 = vld [vmem:[%s11781_s9 + $0x28] sm:$0xff] }
 0xcbb   : > { %9393 = vmatpush3.bf16.msra.mxu0 %v9358_v27  ;;  %9406 = vmatprep.subr.bf16.mxu1 %v9768_v52  ;;  %v9484_v27 = vpack.c.bf16 %v5430_v26, %v5429_v25  ;;  %v6458_v25 = vld [vmem:[%s11781_s9 + $0xd8] sm:$0xff] }
 0xcbc   : > { %8260 = vmatprep.subr.mxu0 %v9770_v33 }
 0xcbe   : > { %9408 = vmatpush3.bf16.msra.mxu1 %v9373_v31  ;;  %v9487_v31 = vpack.c.bf16 %v5432_v30, %v5431_v29  ;;  %v6460_v29 = vld [vmem:[%s11781_s9 + $0xe8] sm:$0xff] }
 0xcbf   : > { %8261 = vmatpush3.msk.msra.mxu0 %vm3333_vm7, %v6379_v36  ;;  %8285 = vmatprep.subr.mxu1 %v9770_v33  ;;  %v5433_v36 = vld [vmem:[%s11781_s9 + $0x40] sm:$0xff] }
 0xcc0   : > { %9409 = vmatprep.subr.bf16.mxu0 %v9768_v52 }
 0xcc2   : > { %8286 = vmatpush3.msk.msra.mxu1 %vm3333_vm7, %v6392_v37  ;;  %v5434_v37 = vld [vmem:[%s11781_s9 + $0x48] sm:$0xff] }
 0xcc3   : > { %9413 = vmatprep.subr.bf16.mxu1 %v9768_v52  ;;  %v9490_v21 = vpack.c.bf16 %v5434_v37, %v5433_v36  ;;  %v6463_v36 = vld [vmem:[%s11781_s9 + $0xf8] sm:$0xff] }
 0xd80   : > { %v4793_v43 = vpop.f32.mrb[26].mxu1 }
 0xd81   : > { %v8239_v7 = vpop.f32.mrb[27].mxu1  ;;  %8263 = vmatmul.mubr.msk.f32.vlgmr.msra.gmra.mrb[20].mxu0 %vm3329_vm8, %v4793_v43  ;;  %8288 = vmatmul.mubr.msk.f32.vlgmr.msra.gmra.mrb[22].mxu1 %vm3329_vm8, %v4793_v43  ;;  %v5856_v43 = vld [vmem:[%s11783_s11 + $0x28] sm:$0xff] }
 0xd82   : > { %9412 = vmatpush3.bf16.msk.msra.mxu0 %vm10643_vm5, %v10647_v2  ;;  %8294 = vmatprep.mubr.msk.f32.mxu0 %vm9769_vm2, %v9770_v33  ;;  %v9559_v41 = vpack.c.bf16 %v5856_v43, %v5855_v42  ;;  %v5858_v7 = vld [vmem:[%s11783_s11 + $0x38] sm:$0xff]  ;;  %v6468_v42 = vld [vmem:[%s11781_s9 + $0x120] sm:$0xff]  ;;  %v6469_v43 = vld [vmem:[%s11781_s9 + $0x128] sm:$0xff] }
 0xd83   : > { %9415 = vmatpush3.bf16.msra.mxu1 %v11277_v38  ;;  %9428 = vmatprep.subr.bf16.mxu0 %v9768_v52 }
 0xd84   : > { %9416 = vmatprep.subr.bf16.mxu1 %v9768_v52  ;;  %8319 = vmatprep.mubr.msk.f32.mxu1 %vm9769_vm2, %v9770_v33 }
 0xd85   : > { %8295 = vmatmul.mubr.msk.f32.vlgmr.msra.gmra.mrb[26].mxu0 %vm3067_vm6, %v6402_v44  ;;  %v9562_v44 = vpack.c.bf16 %v5858_v7, %v5857_v5  ;;  %v6470_v5 = vld [vmem:[%s11781_s9 + $0x130] sm:$0xff]  ;;  %v6471_v7 = vld [vmem:[%s11781_s9 + $0x138] sm:$0xff] }
 0xd86   : > { %9430 = vmatpush3.bf16.msra.mxu0 %v11301_v45  ;;  %8344 = vmatprep.mubr.msk.f32.mxu0 %vm9769_vm2, %v9770_v33 }
 0xd87   : > { %9418 = vmatpush3.bf16.msra.mxu1 %v11305_v46  ;;  %9431 = vmatprep.subr.bf16.mxu0 %v9768_v52 }
 0xd88   : > { %9419 = vmatprep.subr.bf16.mxu1 %v9768_v52 }
 0xd8a   : > { %9433 = vmatpush3.bf16.msra.mxu0 %v9432_v51 }
 0xd8b   : > { %9421 = vmatpush3.bf16.msra.mxu1 %v9420_v34  ;;  %9434 = vmatprep.subr.bf16.mxu0 %v9768_v52 }
 0xd8c   : > { %9422 = vmatprep.subr.bf16.mxu1 %v9768_v52 }
 0xd8e   : > { %9436 = vmatpush3.bf16.msra.mxu0 %v9435_v57 }
 0xd8f   : > { %9424 = vmatpush3.bf16.msra.mxu1 %v9423_v58  ;;  %9437 = vmatprep.subr.bf16.mxu0 %v9768_v52 }
 0xd90   : > { %9425 = vmatprep.subr.bf16.mxu1 %v9768_v52 }
 0xd92   : > { %9439 = vmatpush3.bf16.msra.mxu0 %v9438_v63 }
 0xd93   : > { %9427 = vmatpush3.bf16.msra.mxu1 %v9426_v0  ;;  %9440 = vmatprep.subr.bf16.mxu0 %v9768_v52 }
 0xd94   : > { %8317 = vmatprep.subr.mxu1 %v9770_v33 }
 0xd96   : > { %9442 = vmatpush3.bf16.msra.mxu0 %v9441_v6 }
 0xd97   : > { %8318 = vmatpush3.msk.msra.mxu1 %vm3333_vm7, %v6415_v8  ;;  %8342 = vmatprep.subr.mxu0 %v9770_v33 }
 0xd98   : > { %9443 = vmatprep.subr.bf16.mxu1 %v9768_v52 }
 0xd9a   : > { %8343 = vmatpush3.msk.msra.mxu0 %vm3333_vm7, %v6428_v10 }
 0xd9b   : > { %9447 = vmatprep.subr.bf16.mxu0 %v9768_v52 }
 0xe58   : > { %v5013_v11 = vpop.f32.mrb[26].mxu0 }
 0xe59   : > { %v8296_v12 = vpop.f32.mrb[27].mxu0  ;;  %8320 = vmatmul.mubr.msk.f32.vlgmr.msra.gmra.mrb[18].mxu1 %vm3329_vm8, %v5013_v11  ;;  %8345 = vmatmul.mubr.msk.f32.vlgmr.msra.gmra.mrb[18].mxu0 %vm3329_vm8, %v5013_v11  ;;  %v6447_v11 = vld [vmem:[%s11781_s9 + $0x88] sm:$0xff] }
 0xe5a   : > { %9446 = vmatpush3.bf16.msk.msra.mxu1 %vm10643_vm5, %v10647_v2  ;;  %8351 = vmatprep.mubr.msk.f32.mxu1 %vm9769_vm2, %v9770_v33  ;;  %v5426_v2 = vld [vmem:[%s11781_s9 + $0x8] sm:$0xff] }
 0xe5b   : > { %9462 = vmatprep.subr.bf16.mxu1 %v9768_v52  ;;  %9449 = vmatpush3.bf16.msra.mxu0 %v11277_v38  ;;  %v9478_v24 = vpack.c.bf16 %v5426_v2, %v5425_v1  ;;  %v5854_v38 = vld [vmem:[%s11783_s11 + $0x18] sm:$0xff] }
 0xe5c   : > { %9450 = vmatprep.subr.bf16.mxu0 %v9768_v52  ;;  %8376 = vmatprep.mubr.msk.f32.mxu0 %vm9769_vm2, %v9770_v33  ;;  %v9556_v40 = vpack.c.bf16 %v5854_v38, %v5853_v35  ;;  %v6449_v1 = vld [vmem:[%s11781_s9 + $0x98] sm:$0xff]  ;;  %v9526_v35 = vpack.c.bf16 %v6465_v32, %v6464_v28 }
 0xe5d   : > { %8352 = vmatmul.mubr.msk.f32.vlgmr.msra.gmra.mrb[28].mxu1 %vm3067_vm6, %v6431_v13  ;;  %v6448_v13 = vld [vmem:[%s11781_s9 + $0x90] sm:$0xff]  ;;  %v6467_v38 = vld [vmem:[%s11781_s9 + $0x118] sm:$0xff] }
 0xe5e   : > { %9464 = vmatpush3.bf16.msra.mxu1 %v11301_v45  ;;  %8401 = vmatprep.mubr.msk.f32.mxu1 %vm9769_vm2, %v9770_v33  ;;  %v5859_v45 = vld [vmem:[%s11783_s11 + $0x40] sm:$0xff]  ;;  %v9505_v2 = vpack.c.bf16 %v6449_v1, %v6448_v13 }
 0xe5f   : > { %9465 = vmatprep.subr.bf16.mxu1 %v9768_v52  ;;  %9452 = vmatpush3.bf16.msra.mxu0 %v11305_v46  ;;  %v5860_v46 = vld [vmem:[%s11783_s11 + $0x48] sm:$0xff] }
 0xe60   : > { %9453 = vmatprep.subr.bf16.mxu0 %v9768_v52  ;;  %v9565_v47 = vpack.c.bf16 %v5860_v46, %v5859_v45  ;;  %v6473_v45 = vld [vmem:[%s11781_s9 + $0x140] sm:$0xff]  ;;  %v6474_v46 = vld [vmem:[%s11781_s9 + $0x148] sm:$0xff] }
 0xe62   : > { %9467 = vmatpush3.bf16.msra.mxu1 %v9432_v51 }
 0xe63   : > { %9468 = vmatprep.subr.bf16.mxu1 %v9768_v52  ;;  %9455 = vmatpush3.bf16.msra.mxu0 %v9420_v34 }
 0xe64   : > { %9456 = vmatprep.subr.bf16.mxu0 %v9768_v52 }
 0xe66   : > { %9470 = vmatpush3.bf16.msra.mxu1 %v9435_v57 }
 0xe67   : > { %9471 = vmatprep.subr.bf16.mxu1 %v9768_v52  ;;  %9458 = vmatpush3.bf16.msra.mxu0 %v9423_v58  ;;  %v6440_v58 = vld [vmem:[%s11781_s9 + $0x50] sm:$0xff] }
 0xe68   : > { %9459 = vmatprep.subr.bf16.mxu0 %v9768_v52  ;;  %v9493_v61 = vpack.c.bf16 %v6441_v59, %v6440_v58  ;;  %v6481_v58 = vld [vmem:[%s11781_s9 + $0x180] sm:$0xff]  ;;  %v6482_v59 = vld [vmem:[%s11781_s9 + $0x188] sm:$0xff] }
 0xe6a   : > { %9473 = vmatpush3.bf16.msra.mxu1 %v9438_v63  ;;  %v6442_v63 = vld [vmem:[%s11781_s9 + $0x60] sm:$0xff] }
 0xe6b   : > { %9474 = vmatprep.subr.bf16.mxu1 %v9768_v52  ;;  %9461 = vmatpush3.bf16.msra.mxu0 %v9426_v0  ;;  %v6443_v0 = vld [vmem:[%s11781_s9 + $0x68] sm:$0xff] }
 0xe6c   : > { %8374 = vmatprep.subr.mxu0 %v9770_v33  ;;  %v9496_v3 = vpack.c.bf16 %v6443_v0, %v6442_v63  ;;  %v5863_v63 = vld [vmem:[%s11783_s11 + $0x60] sm:$0xff]  ;;  %v5864_v0 = vld [vmem:[%s11783_s11 + $0x68] sm:$0xff] }
 0xe6e   : > { %9476 = vmatpush3.bf16.msra.mxu1 %v9441_v6  ;;  %v6445_v6 = vld [vmem:[%s11781_s9 + $0x78] sm:$0xff] }
 0xe6f   : > { %8399 = vmatprep.subr.mxu1 %v9770_v33  ;;  %8375 = vmatpush3.msk.msra.mxu0 %vm3333_vm7, %v6415_v8  ;;  %v9499_v8 = vpack.c.bf16 %v6445_v6, %v6444_v4  ;;  %v5865_v4 = vld [vmem:[%s11783_s11 + $0x70] sm:$0xff]  ;;  %v5942_v6 = vld [vmem:[%s11785_s13] sm:$0xff] }
 0xe70   : > { %9477 = vmatprep.subr.bf16.mxu0 %v9768_v52 }
 0xe72   : > { %8400 = vmatpush3.msk.msra.mxu1 %vm3333_vm7, %v6428_v10  ;;  %v6446_v10 = vld [vmem:[%s11781_s9 + $0x80] sm:$0xff] }
 0xe73   : > { %9552 = vmatprep.subr.bf16.mxu1 %v9768_v52  ;;  %v9502_v12 = vpack.c.bf16 %v6447_v11, %v6446_v10 }
 0xf2c   : > { %v11415_v14 = vpop.f32.mrb[18].mxu1  ;;  %v11417_v17 = vpop.f32.mrb[18].mxu0 }
 0xf2d   : > { %v5412_v18 = vmax.f32 %v11415_v14, %v11417_v17  ;;  %v8321_v19 = vpop.f32.mrb[19].mxu1  ;;  %v8346_v20 = vpop.f32.mrb[19].mxu0  ;;  %v6451_v14 = vld [vmem:[%s11781_s9 + $0xa0] sm:$0xff]  ;;  %v6452_v17 = vld [vmem:[%s11781_s9 + $0xa8] sm:$0xff] }
 0xf2e   : > { %v6453_v20 = vld [vmem:[%s11781_s9 + $0xb0] sm:$0xff] }
 0xf30   : > { %v5263_v16 = vpop.f32.mrb[28].mxu1 }
 0xf31   : > { %v8353_v22 = vpop.f32.mrb[29].mxu1  ;;  %8377 = vmatmul.mubr.msk.f32.vlgmr.msra.gmra.mrb[20].mxu0 %vm3329_vm8, %v5263_v16  ;;  %8402 = vmatmul.mubr.msk.f32.vlgmr.msra.gmra.mrb[22].mxu1 %vm3329_vm8, %v5263_v16  ;;  %v6456_v16 = vld [vmem:[%s11781_s9 + $0xc8] sm:$0xff] }
 0xf32   : > { %9479 = vmatpush3.bf16.msra.mxu0 %v9478_v24  ;;  %8424 = vmatprep.mubr.msk.f32.mxu0 %vm9769_vm2, %v9770_v33  ;;  %v6454_v24 = vld [vmem:[%s11781_s9 + $0xb8] sm:$0xff]  ;;  %v9514_v22 = vpack.c.bf16 %v6456_v16, %v6455_v15  ;;  %v5950_v16 = vld [vmem:[%s11785_s13 + $0x40] sm:$0xff] }
 0xf33   : > { %9480 = vmatprep.subr.bf16.mxu0 %v9768_v52  ;;  %8549 = vmatprep.mubr.msk.f32.mxu1 %vm9769_vm2, %v9770_v33  ;;  %v9511_v9 = vpack.c.bf16 %v6454_v24, %v6453_v20  ;;  %v5948_v24 = vld [vmem:[%s11785_s13 + $0x30] sm:$0xff] }
 0xf34   : > { %9554 = vmatpush3.bf16.msra.mxu1 %v9553_v39  ;;  %v6466_v39 = vld [vmem:[%s11781_s9 + $0x110] sm:$0xff] }
 0xf35   : > { %9555 = vmatprep.subr.bf16.mxu1 %v9768_v52 }
 0xf36   : > { %9482 = vmatpush3.bf16.msra.mxu0 %v9481_v23  ;;  %v6457_v23 = vld [vmem:[%s11781_s9 + $0xd0] sm:$0xff] }
 0xf37   : > { %9483 = vmatprep.subr.bf16.mxu0 %v9768_v52  ;;  %v9517_v26 = vpack.c.bf16 %v6458_v25, %v6457_v23  ;;  %v5952_v25 = vld [vmem:[%s11785_s13 + $0x50] sm:$0xf] }
 0xf38   : > { %9557 = vmatpush3.bf16.msra.mxu1 %v9556_v40  ;;  %v9529_v40 = vpack.c.bf16 %v6467_v38, %v6466_v39 }
 0xf39   : > { %9558 = vmatprep.subr.bf16.mxu1 %v9768_v52 }
 0xf3a   : > { %9485 = vmatpush3.bf16.msra.mxu0 %v9484_v27  ;;  %v6459_v27 = vld [vmem:[%s11781_s9 + $0xe0] sm:$0xff] }
 0xf3b   : > { %9486 = vmatprep.subr.bf16.mxu0 %v9768_v52  ;;  %v9520_v30 = vpack.c.bf16 %v6460_v29, %v6459_v27 }
 0xf3c   : > { %9560 = vmatpush3.bf16.msra.mxu1 %v9559_v41  ;;  %v9532_v41 = vpack.c.bf16 %v6469_v43, %v6468_v42 }
 0xf3d   : > { %9561 = vmatprep.subr.bf16.mxu1 %v9768_v52 }
 0xf3e   : > { %9488 = vmatpush3.bf16.msra.mxu0 %v9487_v31  ;;  %v6462_v31 = vld [vmem:[%s11781_s9 + $0xf0] sm:$0xff] }
 0xf3f   : > { %9489 = vmatprep.subr.bf16.mxu0 %v9768_v52  ;;  %v9523_v37 = vpack.c.bf16 %v6463_v36, %v6462_v31 }
 0xf40   : > { %9563 = vmatpush3.bf16.msra.mxu1 %v9562_v44  ;;  %v9535_v44 = vpack.c.bf16 %v6471_v7, %v6470_v5 }
 0xf41   : > { %9564 = vmatprep.subr.bf16.mxu1 %v9768_v52 }
 0xf42   : > { %9491 = vmatpush3.bf16.msra.mxu0 %v9490_v21 }
 0xf43   : > { %9492 = vmatprep.subr.bf16.mxu0 %v9768_v52 }
 0xf44   : > { %9566 = vmatpush3.bf16.msra.mxu1 %v9565_v47  ;;  %v9538_v47 = vpack.c.bf16 %v6474_v46, %v6473_v45 }
 0xf45   : > { %9567 = vmatprep.subr.bf16.mxu1 %v9768_v52 }
 0xf48   : > { %9569 = vmatpush3.bf16.msra.mxu1 %v9568_v50  ;;  %v6476_v50 = vld [vmem:[%s11781_s9 + $0x158] sm:$0xff] }
 0xf49   : > { %9570 = vmatprep.subr.bf16.mxu1 %v9768_v52 }
0x1004   : > { %v5336_v51 = vpop.f32.mrb[20].mxu0  ;;  %v5407_v34 = vpop.f32.mrb[22].mxu1 }
0x1005   : > { %v5413_v53 = vmax.f32 %v5336_v51, %v5407_v34  ;;  %v8378_v54 = vpop.f32.mrb[21].mxu0  ;;  %v8403_v55 = vpop.f32.mrb[23].mxu1  ;;  %v9541_v51 = vpack.c.bf16 %v6476_v50, %v6475_v49  ;;  %v6477_v34 = vld [vmem:[%s11781_s9 + $0x160] sm:$0xff] }
0x1006   : > { %v6479_v55 = vld [vmem:[%s11781_s9 + $0x170] sm:$0xff] }
0x1007   : > { %v5414_v57 = vmax.f32 %v5412_v18, %v5413_v53  ;;  %v9508_v18 = vpack.c.bf16 %v6452_v17, %v6451_v14  ;;  %v6478_v53 = vld [vmem:[%s11781_s9 + $0x168] sm:$0xff]  ;;  %v5945_v14 = vld [vmem:[%s11785_s13 + $0x18] sm:$0xff] }
0x1008   : > { %v9544_v54 = vpack.c.bf16 %v6478_v53, %v6477_v34 }
0x1009   : > { %v5422_v60 = vadd.f32 %v6438_v56, %v5414_v57  ;;  %v6480_v56 = vld [vmem:[%s11781_s9 + $0x178] sm:$0xff] }
0x100a   : > { %v9547_v57 = vpack.c.bf16 %v6480_v56, %v6479_v55 }
0x100b   : > { %v11510_v62 = vmax.f32 %v5422_v60, 0.0  ;;  %v9550_v60 = vpack.c.bf16 %v6482_v59, %v6481_v58 }
0x100d   : > { %8425 = vmatmul.mubr.msk.f32.vlgmr.msra.gmra.mrb[28].mxu0 %vm5435_vm9, %v11510_v62  ;;  %v5521_v19 = vrot.slane %v11510_v62, 1  ;;  %v5606_v21 = vrot.slane %v11510_v62, 2  ;;  %v5691_v48 = vrot.slane %v11510_v62, 3 }
0x100e   : > { %9494 = vmatpush3.bf16.msra.mxu0 %v9493_v61  ;;  %8447 = vmatprep.mubr.msk.f32.mxu0 %vm9769_vm2, %v9770_v33  ;;  %v5776_v61 = vrot.slane %v11510_v62, 4  ;;  %v5424_v62 = vld [vmem:[%s11782_s10] sm:$0x1] }
0x100f   : > { %9495 = vmatprep.subr.bf16.mxu0 %v9768_v52 }
0x1012   : > { %9497 = vmatpush3.bf16.msra.mxu0 %v9496_v3  ;;  %v9571_v3 = vpack.c.bf16 %v5864_v0, %v5863_v63 }
0x1013   : > { %9498 = vmatprep.subr.bf16.mxu0 %v9768_v52 }
0x1014   : > { %9572 = vmatpush3.bf16.msra.mxu1 %v9571_v3 }
0x1015   : > { %8547 = vmatprep.subr.mxu1 %v9770_v33 }
0x1016   : > { %9500 = vmatpush3.bf16.msra.mxu0 %v9499_v8  ;;  %v5943_v8 = vld [vmem:[%s11785_s13 + $0x8] sm:$0xff] }
0x1017   : > { %9501 = vmatprep.subr.bf16.mxu0 %v9768_v52  ;;  %v9574_v13 = vpack.c.bf16 %v5943_v8, %v5942_v6 }
0x1018   : > { %8548 = vmatpush3.msra.mxu1 %v5865_v4 }
0x1019   : > { %9573 = vmatprep.subr.bf16.mxu1 %v9768_v52 }
0x101a   : > { %9503 = vmatpush3.bf16.msra.mxu0 %v9502_v12 }
0x101b   : > { %9504 = vmatprep.subr.bf16.mxu0 %v9768_v52 }
0x101e   : > { %9506 = vmatpush3.bf16.msra.mxu0 %v9505_v2  ;;  %v5944_v2 = vld [vmem:[%s11785_s13 + $0x10] sm:$0xff] }
0x101f   : > { %9507 = vmatprep.subr.bf16.mxu0 %v9768_v52  ;;  %v9577_v17 = vpack.c.bf16 %v5945_v14, %v5944_v2 }
0x1021   : > { %8448 = vmatmul.mubr.msk.f32.vlgmr.msra.gmra.mrb[28].mxu0 %vm5435_vm9, %v5521_v19  ;;  %v5947_v19 = vld [vmem:[%s11785_s13 + $0x28] sm:$0xff] }
0x1022   : > { %9509 = vmatpush3.bf16.msra.mxu0 %v9508_v18  ;;  %8470 = vmatprep.mubr.msk.f32.mxu0 %vm9769_vm2, %v9770_v33  ;;  %v5946_v18 = vld [vmem:[%s11785_s13 + $0x20] sm:$0xff] }
0x1023   : > { %9510 = vmatprep.subr.bf16.mxu0 %v9768_v52  ;;  %v9580_v20 = vpack.c.bf16 %v5947_v19, %v5946_v18 }
0x1026   : > { %9512 = vmatpush3.bf16.msra.mxu0 %v9511_v9  ;;  %v5949_v9 = vld [vmem:[%s11785_s13 + $0x38] sm:$0xff] }
0x1027   : > { %9513 = vmatprep.subr.bf16.mxu0 %v9768_v52  ;;  %v9583_v15 = vpack.c.bf16 %v5949_v9, %v5948_v24 }
0x102a   : > { %9515 = vmatpush3.bf16.msra.mxu0 %v9514_v22  ;;  %v5951_v22 = vld [vmem:[%s11785_s13 + $0x48] sm:$0xff] }
0x102b   : > { %9516 = vmatprep.subr.bf16.mxu0 %v9768_v52  ;;  %v9586_v23 = vpack.c.bf16 %v5951_v22, %v5950_v16 }
0x102e   : > { %9518 = vmatpush3.bf16.msra.mxu0 %v9517_v26 }
0x102f   : > { %9519 = vmatprep.subr.bf16.mxu0 %v9768_v52 }
0x1032   : > { %9521 = vmatpush3.bf16.msra.mxu0 %v9520_v30 }
0x1033   : > { %9522 = vmatprep.subr.bf16.mxu0 %v9768_v52 }
0x1035   : > { %8471 = vmatmul.mubr.msk.f32.vlgmr.msra.gmra.mrb[28].mxu0 %vm5435_vm9, %v5606_v21 }
0x1036   : > { %9524 = vmatpush3.bf16.msra.mxu0 %v9523_v37  ;;  %8493 = vmatprep.mubr.msk.f32.mxu0 %vm9769_vm2, %v9770_v33 }
0x1037   : > { %9525 = vmatprep.subr.bf16.mxu0 %v9768_v52 }
0x103a   : > { %9527 = vmatpush3.bf16.msra.mxu0 %v9526_v35 }
0x103b   : > { %9528 = vmatprep.subr.bf16.mxu0 %v9768_v52 }
0x103e   : > { %9530 = vmatpush3.bf16.msra.mxu0 %v9529_v40 }
0x103f   : > { %9531 = vmatprep.subr.bf16.mxu0 %v9768_v52 }
0x1042   : > { %9533 = vmatpush3.bf16.msra.mxu0 %v9532_v41 }
0x1043   : > { %9534 = vmatprep.subr.bf16.mxu0 %v9768_v52 }
0x1046   : > { %9536 = vmatpush3.bf16.msra.mxu0 %v9535_v44 }
0x1047   : > { %9537 = vmatprep.subr.bf16.mxu0 %v9768_v52 }
0x1049   : > { %8494 = vmatmul.mubr.msk.f32.vlgmr.msra.gmra.mrb[28].mxu0 %vm5435_vm9, %v5691_v48 }
0x104a   : > { %9539 = vmatpush3.bf16.msra.mxu0 %v9538_v47  ;;  %8516 = vmatprep.mubr.msk.f32.mxu0 %vm9769_vm2, %v9770_v33 }
0x104b   : > { %9540 = vmatprep.subr.bf16.mxu0 %v9768_v52 }
0x104e   : > { %9542 = vmatpush3.bf16.msra.mxu0 %v9541_v51 }
0x104f   : > { %9543 = vmatprep.subr.bf16.mxu0 %v9768_v52 }
0x1052   : > { %9545 = vmatpush3.bf16.msra.mxu0 %v9544_v54 }
0x1053   : > { %9546 = vmatprep.subr.bf16.mxu0 %v9768_v52 }
0x1056   : > { %9548 = vmatpush3.bf16.msra.mxu0 %v9547_v57 }
0x1057   : > { %9549 = vmatprep.subr.bf16.mxu0 %v9768_v52 }
0x105a   : > { %9551 = vmatpush3.bf16.msra.mxu0 %v9550_v60 }
0x105d   : > { %8517 = vmatmul.mubr.msk.f32.vlgmr.msra.gmra.mrb[28].mxu0 %vm5435_vm9, %v5776_v61 }
0x1130   : > { %v5845_v10 = vpop.f32.mrb[28].mxu0 }
0x1131   : > { %v9590_v11 = vadd.f32 %v5845_v10, %v5424_v62  ;;  %v8518_v12 = vpop.f32.mrb[29].mxu0 }
0x1133   : > { %v5850_v1 = vmax.f32 %v9590_v11, 0.0 }
0x1135   : > { %8550 = vmatmul.mubr.msk.f32.vlgmr.msra.gmra.mrb[30].mxu1 %vm5867_vm10, %v5850_v1 }
0x1136   : > { %9575 = vmatpush3.bf16.msra.mxu1 %v9574_v13  ;;  %8574 = vmatprep.mubr.msk.f32.mxu1 %vm9769_vm2, %v9770_v33 }
0x1137   : > { %9576 = vmatprep.subr.bf16.mxu1 %v9768_v52 }
0x113a   : > { %9578 = vmatpush3.bf16.msra.mxu1 %v9577_v17 }
0x113b   : > { %9579 = vmatprep.subr.bf16.mxu1 %v9768_v52 }
0x113e   : > { %9581 = vmatpush3.bf16.msra.mxu1 %v9580_v20 }
0x113f   : > { %9582 = vmatprep.subr.bf16.mxu1 %v9768_v52 }
0x1142   : > { %9584 = vmatpush3.bf16.msra.mxu1 %v9583_v15 }
0x1143   : > { %9585 = vmatprep.subr.bf16.mxu1 %v9768_v52  ;;  %v5866_v52 = vld [vmem:[%s11784_s12] sm:$0x1] }
0x1146   : > { %9587 = vmatpush3.bf16.msra.mxu1 %v9586_v23 }
0x1147   : > { %8572 = vmatprep.subr.mxu1 %v9770_v33  ;;  %v5953_v33 = vld [vmem:[%s11786_s14] sm:$0x1] }
0x114a   : > { %8573 = vmatpush3.msk.msra.mxu1 %vm3333_vm7, %v5952_v25 }
0x1208   : > { %v5937_v26 = vpop.f32.mrb[30].mxu1 }
0x1209   : > { %v5938_v27 = vadd.f32 %v5937_v26, %v5866_v52  ;;  %v8551_v29 = vpop.f32.mrb[31].mxu1 }
0x120b   : > { %v5941_v30 = vmax.f32 %v5938_v27, 0.0 }
0x120d   : > { %8575 = vmatmul.mubr.msk.f32.vlgmr.msra.gmra.mrb[32].mxu1 %vm3329_vm8, %v5941_v30 }
0x12e0   : > { %v6026_v31 = vpop.f32.mrb[32].mxu1 }
0x12e1   : > { %v6027_v36 = vadd.f32 %v6026_v31, %v5953_v33  ;;  %v8576_v37 = vpop.f32.mrb[33].mxu1 }
0x12e3   : > { %6031 = vst.msk [vmem:[%s486_s0] sm:$0x1] %vm6030_vm11, %v6027_v36 }
0x12e4   : > { %9717 = shalt.err (!%p9714_p3)
}
0x12e5   : > { %s9718_s30 = scalar_lea.hbm %s11730_s17, 16  ;;  %s9722_s24 = scalar_lea.hbm %s11787_s15, 32 }
0x12e6   : > { %p9719_p4 = scmp.ne.s32.totalorder %s11730_s17, %s9718_s30  ;;  %p9723_p9 = scmp.lt.u32.totalorder %s11730_s17, %s11787_s15 }
0x12e7   : > { %p9724_p10 = scmp.lt.u32.totalorder %s9722_s24, %s9718_s30  ;;  %p9726_p12 = scmp.lt.u32.totalorder %s9718_s30, %s11730_s17 }
0x12e8   : > { %p9720_p7 = pnand %p9719_p4, %p9891_p5 }
0x12e9   : > { %p9725_p11 = por %p9724_p10, %p9723_p9 }
0x12ea   : > { %p9721_p8 = pneg %p9720_p7 }
0x12eb   : > { %p9727_p13 = por %p9726_p12, %p9725_p11 }
0x12ed   : > { %p9728_p0 = pnand %p9727_p13, %p9721_p8 }
0x12ef   : > { %9731 = shalt.err (!%p9728_p0)
}
0x12f0   : > { %9661 = dma.vmem_to_hbm [thread:$0]  (%p9891_p5), %s11732_s20, 16, %s11730_s17, %s6033_s26  }
0x12f1 PF: > { %p9667_p1 = scmp.ge.s32.totalorder %s9766_s21, 2  ;;  %s6057_s1 = sand.u32 1, %s9754_s18  }
0x12f2   : > { %s6058_s16 = scalar_lea.sflag [#allocation3], %s6057_s1 }
0x12f3   : > { %p9664_p2 = pnand %p9667_p1, %p9895_p6 }
0x12f5   : > { %9749 = dma.done.wait (!%p9664_p2), %s6058_s16, 16  }
0x12f6   : > { %9751 = vsyncadd (!%p9664_p2), %s6058_s16, 4294967280  ;;  %s11802_s21 = sld [smem:[#allocation6_spill]]  ;;  %s11803_s23 = sld [smem:[#allocation5_spill]] }
0x12f7   : > { %s11804_s20 = sld [smem:[#allocation7_spill]]  ;;  %s11805_s18 = smov %s9758_s19 }
0x12fc   : > { %p25_p3 = scmp.ge.s32.totalorder %s11802_s21, 4   ;;  %s11806_s19 = smov %s11803_s23 }
0x12fe   :  { %27 = sbr.rel (!%p25_p3) target bundleno = 6 (0x6), region = 153 }
0x1305   :  { %6062 = vsyncpa [#allocation3], 1 }
0x1306   :  { %6064 = vsyncpa [#allocation3 + $0x1], 1 }

</bundles_post_ra>
